<compile_context>
chip_gen: v6e
topology: v6e:2x2x1
jax: 0.10.0
libtpu: 0.0.40
codegen_flags: <defaults>
</compile_context>

<pallas_src>
import functools

import jax
import jax.numpy as jnp
from jax.experimental import pallas as pl
from jax.experimental.pallas import tpu as pltpu


Z_SIZE = 16
IN_DIM = 28 * 28          # 784
D_PAD = 896               # 7 * 128 -> lane-dense padding of 784
LANE = 128                # vreg lane width
ENC_PAD = 2 * LANE        # encoder head: [mu|0] in lanes 0:128, [ls|0] in 128:256


def _round_up(v, m):
    return (v + m - 1) // m * m


def _choose_tiling(B, block_b):
    """Pick (bm, Bp, n_tiles).

    bm is a multiple of 16 (bf16 LHS sublane tile), batch padding stays small
    (Bp - B < 16 * n_tiles), and we force >=2 grid steps when the batch allows
    it: v7x has 2 TensorCores and "parallel" only helps with >=2 steps, while
    on 1-TC chips an extra step costs only ~0.35 us.
    """
    Bp0 = _round_up(B, 16)
    min_tiles = 2 if Bp0 >= 32 else 1
    n_tiles = max(min_tiles, pl.cdiv(Bp0, block_b))
    bm = _round_up(pl.cdiv(Bp0, n_tiles), 16)
    Bp = bm * n_tiles
    return bm, Bp, n_tiles


def _vae_kernel(z_size,
                x_ref, noise_ref, b_ref,
                ew1, ew2, ew3, ew4, dw1, dw2, dw3, dw4,
                dec_ref, enc_ref):
    """Fused VAE forward for one (bm, D_PAD) batch tile.

    Weights are bf16 and resident in VMEM across the whole grid; hidden
    activations are bf16 (cast once per layer), MXU accumulation is f32.
    """
    f32 = jnp.float32
    bf16 = jnp.bfloat16

    def dense(h, w_ref, bias_row, n_out, relu, out_dtype):
        y = jnp.dot(h, w_ref[...], preferred_element_type=f32)
        y = y + b_ref[bias_row:bias_row + 1, :n_out]          # (1, n_out) f32
        if relu:
            y = jnp.maximum(y, 0.0)
        return y.astype(out_dtype)

    x = x_ref[...]                                             # (bm, 896) bf16

    # ---- encoder: 896(=784 pad) -> 512 -> 256 -> 128 -> 256 (mu|ls blocks) ----
    h = dense(x, ew1, 0, 512, relu=True, out_dtype=bf16)
    h = dense(h, ew2, 1, 256, relu=True, out_dtype=bf16)
    h = dense(h, ew3, 2, 128, relu=True, out_dtype=bf16)
    enc = dense(h, ew4, 3, ENC_PAD, relu=False, out_dtype=f32)  # (bm, 256) f32

    # ---- reparameterization (lane dense): mu / log_sigma each occupy lanes
    # 0:z of their own 128-lane block (zeros elsewhere); noise is zero-padded
    # to 128 lanes, so z_hat lanes z:128 come out exactly 0 (exp(0) * 0 + 0).
    mu_blk = enc[:, :LANE]                                      # 128-lane aligned slice
    ls_blk = enc[:, LANE:]
    z_hat = mu_blk + jnp.exp(ls_blk * 0.5) * noise_ref[...]     # (bm, 128) f32

    # ---- decoder: 128(=z pad) -> 128 -> 256 -> 512 -> 896; mse => no sigmoid ----
    d = dense(z_hat.astype(bf16), dw1, 4, 128, relu=True, out_dtype=bf16)
    d = dense(d, dw2, 5, 256, relu=True, out_dtype=bf16)
    d = dense(d, dw3, 6, 512, relu=True, out_dtype=bf16)
    dec = dense(d, dw4, 7, D_PAD, relu=False, out_dtype=dec_ref.dtype)

    dec_ref[...] = dec
    enc_ref[...] = enc


def vae_forward(x, noise, params, z_size=Z_SIZE, block_b=512, unpad=True):
    """x: (B, 784) f32, noise: (B, z_size) f32, params: flat list of 16 f32 arrays."""
    (ew1, eb1, ew2, eb2, ew3, eb3, ew4, eb4,
     dw1, db1, dw2, db2, dw3, db3, dw4, db4) = params
    assert 2 * z_size <= LANE

    B = x.shape[0]
    bm, Bp, n_tiles = _choose_tiling(B, block_b)

    # --- batched inputs: bf16 x (halves the input DMA; the kernel computes in
    # bf16 anyway), f32 noise zero-padded to a full 128-lane block ---
    x_p = jnp.zeros((Bp, D_PAD), jnp.bfloat16).at[:B, :IN_DIM].set(
        x.astype(jnp.bfloat16))
    noise_p = jnp.zeros((Bp, LANE), jnp.float32).at[:B, :z_size].set(noise)

    def pad2(w, r, c):
        return jnp.zeros((r, c), w.dtype).at[:w.shape[0], :w.shape[1]].set(w)

    # Encoder head split layout: mu weights in cols 0:z of lane-block 0,
    # log_sigma weights in cols 0:z of lane-block 1 -> extraction in the kernel
    # is a free 128-lane-aligned slice (no masked lane ops, no roll).
    ew4_split = (jnp.zeros((128, ENC_PAD), ew4.dtype)
                 .at[:, :z_size].set(ew4[:, :z_size])
                 .at[:, LANE:LANE + z_size].set(ew4[:, z_size:2 * z_size]))

    ws = [
        pad2(ew1, D_PAD, 512),          # input dim 784 -> 896 (padded x lanes are 0)
        ew2, ew3,
        ew4_split,                      # (128, 256) split mu|log_sigma head
        pad2(dw1, LANE, 128),           # z=16 -> 128 rows (z_hat lanes z:128 are 0)
        dw2, dw3,
        pad2(dw4, 512, D_PAD),          # final output 784 -> 896 lanes
    ]
    # TODO(synk): optional int8 (v5e/v6e) / fp8-e4m3 (v7x) weight quantization
    # would shrink the resident weights further; bf16 kept here for accuracy.
    ws = [w.astype(jnp.bfloat16) for w in ws]

    # --- pack the 8 bias vectors into one (8, 896) f32 array (zero padded);
    # bias row 3 uses the same split (mu | log_sigma) lane-block layout ---
    biases = jnp.zeros((8, D_PAD), jnp.float32)
    for i, b in enumerate([eb1, eb2, eb3, None, db1, db2, db3, db4]):
        if b is not None:
            biases = biases.at[i, :b.shape[-1]].set(b.reshape(-1))
    eb4f = eb4.reshape(-1)
    biases = (biases.at[3, :z_size].set(eb4f[:z_size])
                    .at[3, LANE:LANE + z_size].set(eb4f[z_size:2 * z_size]))

    grid = (n_tiles,)

    def batch_spec(n):
        return pl.BlockSpec((bm, n), lambda i: (i, 0))

    def const_spec(a):
        # Constant index_map -> DMA'd once, resident across the whole grid.
        # (pl.Buffered(1) could reclaim the weights' second buffer on v7x's
        # smaller VMEM, but the total footprint here is ~10 MiB so it is not
        # needed.)
        return pl.BlockSpec(a.shape, lambda i: (0, 0))

    flops = 2 * Bp * (D_PAD * 512 + 512 * 256 + 256 * 128 + 128 * ENC_PAD
                      + 128 * 128 + 128 * 256 + 256 * 512 + 512 * D_PAD)
    w_bytes = sum(int(w.size) * w.dtype.itemsize for w in ws) + int(biases.size) * 4
    io_bytes = Bp * (D_PAD * 2 * 2        # x + dec, bf16
                     + ENC_PAD * 4        # enc, f32
                     + LANE * 4)          # noise, f32
    cost = pl.CostEstimate(flops=int(flops),
                           transcendentals=int(Bp * LANE),
                           bytes_accessed=int(w_bytes + io_bytes))

    kernel = functools.partial(_vae_kernel, z_size)
    dec_p, enc = pl.pallas_call(
        kernel,
        out_shape=(jax.ShapeDtypeStruct((Bp, D_PAD), jnp.bfloat16),
                   jax.ShapeDtypeStruct((Bp, ENC_PAD), jnp.float32)),
        grid=grid,
        in_specs=[batch_spec(D_PAD),               # x tile (bf16, 896 lanes)
                  batch_spec(LANE),                # noise tile (f32, 128 lanes)
                  const_spec(biases)]              # packed biases (one DMA)
                 + [const_spec(w) for w in ws],    # 8 resident bf16 weights
        out_specs=(batch_spec(D_PAD),              # dec (bf16, lane dense 896)
                   batch_spec(ENC_PAD)),           # enc (f32, lane dense 256)
        compiler_params=pltpu.CompilerParams(
            dimension_semantics=("parallel",),
            vmem_limit_bytes=48 * 1024 * 1024),
        cost_estimate=cost,
    )(x_p, noise_p, biases, *ws)

    mu = enc[:B, :z_size]
    log_sigma = enc[:B, LANE:LANE + z_size]
    if not unpad:
        # Production path: hand the padded bf16 reconstruction (Bp, 896) to a
        # fused/padded loss and skip the HBM re-copy of the largest output.
        return dec_p, mu, log_sigma
    dec = dec_p[:B, :IN_DIM].astype(jnp.float32)   # module-semantics (B, 784) f32
    return dec, mu, log_sigma


def init_params(key, z_size=Z_SIZE):
    """Deterministic synthetic init.  Weights stored as (in, out); biases as (1, out)."""
    enc_dims = [(IN_DIM, 512), (512, 256), (256, 128), (128, 2 * z_size)]
    dec_dims = [(z_size, 128), (128, 256), (256, 512), (512, IN_DIM)]
    params = []
    for (fan_in, fan_out) in enc_dims + dec_dims:
        key, kw, kb = jax.random.split(key, 3)
        scale = 1.0 / jnp.sqrt(jnp.float32(fan_in))
        w = jax.random.uniform(kw, (fan_in, fan_out), jnp.float32, -scale, scale)
        b = jax.random.uniform(kb, (1, fan_out), jnp.float32, -scale, scale)
        params += [w, b]
    return params


def vae_forward_ref(x, noise, params, z_size=Z_SIZE):
    """Pure-JAX f32 reference of the PyTorch forward, for correctness checking."""
    (ew1, eb1, ew2, eb2, ew3, eb3, ew4, eb4,
     dw1, db1, dw2, db2, dw3, db3, dw4, db4) = params
    h = jnp.maximum(x @ ew1 + eb1, 0.0)
    h = jnp.maximum(h @ ew2 + eb2, 0.0)
    h = jnp.maximum(h @ ew3 + eb3, 0.0)
    enc = h @ ew4 + eb4
    mu, log_sigma = enc[:, :z_size], enc[:, z_size:]
    z_hat = mu + jnp.exp(log_sigma / 2.0) * noise
    d = jnp.maximum(z_hat @ dw1 + db1, 0.0)
    d = jnp.maximum(d @ dw2 + db2, 0.0)
    d = jnp.maximum(d @ dw3 + db3, 0.0)
    dec = d @ dw4 + db4
    return dec, mu, log_sigma


if __name__ == "__main__":
    key = jax.random.PRNGKey(0)
    kp, kx, kn = jax.random.split(key, 3)

    B = 32                                  # exercises the >=2-tile grid path
    params = init_params(kp, Z_SIZE)
    x = jax.random.uniform(kx, (B, IN_DIM), jnp.float32)        # flattened "images"
    noise = jax.random.normal(kn, (B, Z_SIZE), jnp.float32)     # randn_like(log_sigma)

    dec, mu, log_sigma = vae_forward(x, noise, params, Z_SIZE)
    jax.block_until_ready((dec, mu, log_sigma))

    dec_r, mu_r, ls_r = vae_forward_ref(x, noise, params, Z_SIZE)
    assert dec.shape == (B, IN_DIM) and mu.shape == (B, Z_SIZE) and log_sigma.shape == (B, Z_SIZE)
    # bf16 weights/activations inside the kernel vs f32 reference -> relaxed tolerances.
    assert jnp.allclose(dec, dec_r, atol=5e-2, rtol=5e-2)
    assert jnp.allclose(mu, mu_r, atol=2e-2, rtol=2e-2)
    assert jnp.allclose(log_sigma, ls_r, atol=2e-2, rtol=2e-2)

    print("KERNEL_OK")
</pallas_src>

<mosaic_0001>
module attributes {stable_mosaic.version = 11 : i64} {
  func.func @_vae_kernel(%arg0: i32, %arg1: memref<16x896xbf16, #tpu.memory_space<vmem>>, %arg2: memref<16x128xf32, #tpu.memory_space<vmem>>, %arg3: memref<8x896xf32, #tpu.memory_space<vmem>>, %arg4: memref<896x512xbf16, #tpu.memory_space<vmem>>, %arg5: memref<512x256xbf16, #tpu.memory_space<vmem>>, %arg6: memref<256x128xbf16, #tpu.memory_space<vmem>>, %arg7: memref<128x256xbf16, #tpu.memory_space<vmem>>, %arg8: memref<128x128xbf16, #tpu.memory_space<vmem>>, %arg9: memref<128x256xbf16, #tpu.memory_space<vmem>>, %arg10: memref<256x512xbf16, #tpu.memory_space<vmem>>, %arg11: memref<512x896xbf16, #tpu.memory_space<vmem>>, %arg12: memref<16x896xbf16, #tpu.memory_space<vmem>>, %arg13: memref<16x256xf32, #tpu.memory_space<vmem>>) attributes {dimension_semantics = [#tpu.dimension_semantics<parallel>], iteration_bounds = array<i64: 2>, scalar_prefetch = 0 : i64, scratch_operands = 0 : i64, tpu.core_type = #tpu.core_type<tc>, window_params = [{transform_indices = @transform_0, window_bounds = array<i64: 16, 896>}, {transform_indices = @transform_1, window_bounds = array<i64: 16, 128>}, {pipeline_mode = #tpu.pipeline_mode<synchronous>, transform_indices = @transform_2, window_bounds = array<i64: 8, 896>}, {pipeline_mode = #tpu.pipeline_mode<synchronous>, transform_indices = @transform_3, window_bounds = array<i64: 896, 512>}, {pipeline_mode = #tpu.pipeline_mode<synchronous>, transform_indices = @transform_4, window_bounds = array<i64: 512, 256>}, {pipeline_mode = #tpu.pipeline_mode<synchronous>, transform_indices = @transform_5, window_bounds = array<i64: 256, 128>}, {pipeline_mode = #tpu.pipeline_mode<synchronous>, transform_indices = @transform_6, window_bounds = array<i64: 128, 256>}, {pipeline_mode = #tpu.pipeline_mode<synchronous>, transform_indices = @transform_7, window_bounds = array<i64: 128, 128>}, {pipeline_mode = #tpu.pipeline_mode<synchronous>, transform_indices = @transform_8, window_bounds = array<i64: 128, 256>}, {pipeline_mode = #tpu.pipeline_mode<synchronous>, transform_indices = @transform_9, window_bounds = array<i64: 256, 512>}, {pipeline_mode = #tpu.pipeline_mode<synchronous>, transform_indices = @transform_10, window_bounds = array<i64: 512, 896>}, {transform_indices = @transform_11, window_bounds = array<i64: 16, 896>}, {transform_indices = @transform_12, window_bounds = array<i64: 16, 256>}]} {
    %c0 = arith.constant 0 : index
    %c0_0 = arith.constant 0 : index
    %0 = vector.load %arg1[%c0, %c0_0] : memref<16x896xbf16, #tpu.memory_space<vmem>>, vector<16x896xbf16>
    %c0_1 = arith.constant 0 : index
    %c0_2 = arith.constant 0 : index
    %1 = vector.load %arg4[%c0_1, %c0_2] : memref<896x512xbf16, #tpu.memory_space<vmem>>, vector<896x512xbf16>
    %cst = arith.constant dense<0.000000e+00> : vector<16x512xf32>
    %2 = tpu.matmul %0, %1, %cst {dimension_numbers = #tpu.dot_dimension_numbers<[1], [0], [0], [1], [0, 0, 1, 1], [], []>} : vector<16x896xbf16>, vector<896x512xbf16>, vector<16x512xf32> -> vector<16x512xf32>
    %c0_3 = arith.constant 0 : index
    %c0_4 = arith.constant 0 : index
    %3 = vector.load %arg3[%c0_3, %c0_4] : memref<8x896xf32, #tpu.memory_space<vmem>>, vector<1x512xf32>
    %4 = vector.broadcast %3 : vector<1x512xf32> to vector<16x512xf32>
    %5 = arith.addf %2, %4 : vector<16x512xf32>
    %cst_5 = arith.constant 0.000000e+00 : f32
    %6 = vector.broadcast %cst_5 : f32 to vector<16x512xf32>
    %7 = arith.maximumf %5, %6 : vector<16x512xf32>
    %8 = arith.truncf %7 : vector<16x512xf32> to vector<16x512xbf16>
    %c0_6 = arith.constant 0 : index
    %c0_7 = arith.constant 0 : index
    %9 = vector.load %arg5[%c0_6, %c0_7] : memref<512x256xbf16, #tpu.memory_space<vmem>>, vector<512x256xbf16>
    %cst_8 = arith.constant dense<0.000000e+00> : vector<16x256xf32>
    %10 = tpu.matmul %8, %9, %cst_8 {dimension_numbers = #tpu.dot_dimension_numbers<[1], [0], [0], [1], [0, 0, 1, 1], [], []>} : vector<16x512xbf16>, vector<512x256xbf16>, vector<16x256xf32> -> vector<16x256xf32>
    %c1 = arith.constant 1 : index
    %c0_9 = arith.constant 0 : index
    %11 = vector.load %arg3[%c1, %c0_9] : memref<8x896xf32, #tpu.memory_space<vmem>>, vector<1x256xf32>
    %12 = vector.broadcast %11 : vector<1x256xf32> to vector<16x256xf32>
    %13 = arith.addf %10, %12 : vector<16x256xf32>
    %cst_10 = arith.constant 0.000000e+00 : f32
    %14 = vector.broadcast %cst_10 : f32 to vector<16x256xf32>
    %15 = arith.maximumf %13, %14 : vector<16x256xf32>
    %16 = arith.truncf %15 : vector<16x256xf32> to vector<16x256xbf16>
    %c0_11 = arith.constant 0 : index
    %c0_12 = arith.constant 0 : index
    %17 = vector.load %arg6[%c0_11, %c0_12] : memref<256x128xbf16, #tpu.memory_space<vmem>>, vector<256x128xbf16>
    %cst_13 = arith.constant dense<0.000000e+00> : vector<16x128xf32>
    %18 = tpu.matmul %16, %17, %cst_13 {dimension_numbers = #tpu.dot_dimension_numbers<[1], [0], [0], [1], [0, 0, 1, 1], [], []>} : vector<16x256xbf16>, vector<256x128xbf16>, vector<16x128xf32> -> vector<16x128xf32>
    %c2 = arith.constant 2 : index
    %c0_14 = arith.constant 0 : index
    %19 = vector.load %arg3[%c2, %c0_14] : memref<8x896xf32, #tpu.memory_space<vmem>>, vector<1x128xf32>
    %20 = vector.broadcast %19 : vector<1x128xf32> to vector<16x128xf32>
    %21 = arith.addf %18, %20 : vector<16x128xf32>
    %cst_15 = arith.constant 0.000000e+00 : f32
    %22 = vector.broadcast %cst_15 : f32 to vector<16x128xf32>
    %23 = arith.maximumf %21, %22 : vector<16x128xf32>
    %24 = arith.truncf %23 : vector<16x128xf32> to vector<16x128xbf16>
    %c0_16 = arith.constant 0 : index
    %c0_17 = arith.constant 0 : index
    %25 = vector.load %arg7[%c0_16, %c0_17] : memref<128x256xbf16, #tpu.memory_space<vmem>>, vector<128x256xbf16>
    %cst_18 = arith.constant dense<0.000000e+00> : vector<16x256xf32>
    %26 = tpu.matmul %24, %25, %cst_18 {dimension_numbers = #tpu.dot_dimension_numbers<[1], [0], [0], [1], [0, 0, 1, 1], [], []>} : vector<16x128xbf16>, vector<128x256xbf16>, vector<16x256xf32> -> vector<16x256xf32>
    %c3 = arith.constant 3 : index
    %c0_19 = arith.constant 0 : index
    %27 = vector.load %arg3[%c3, %c0_19] : memref<8x896xf32, #tpu.memory_space<vmem>>, vector<1x256xf32>
    %28 = vector.broadcast %27 : vector<1x256xf32> to vector<16x256xf32>
    %29 = arith.addf %26, %28 : vector<16x256xf32>
    %30 = vector.extract_strided_slice %29 {offsets = [0, 0], sizes = [16, 128], strides = [1, 1]} : vector<16x256xf32> to vector<16x128xf32>
    %31 = vector.extract_strided_slice %29 {offsets = [0, 128], sizes = [16, 128], strides = [1, 1]} : vector<16x256xf32> to vector<16x128xf32>
    %cst_20 = arith.constant 5.000000e-01 : f32
    %32 = vector.broadcast %cst_20 : f32 to vector<16x128xf32>
    %33 = arith.mulf %31, %32 : vector<16x128xf32>
    %34 = math.exp %33 : vector<16x128xf32>
    %c0_21 = arith.constant 0 : index
    %c0_22 = arith.constant 0 : index
    %35 = vector.load %arg2[%c0_21, %c0_22] : memref<16x128xf32, #tpu.memory_space<vmem>>, vector<16x128xf32>
    %36 = arith.mulf %34, %35 : vector<16x128xf32>
    %37 = arith.addf %30, %36 : vector<16x128xf32>
    %38 = arith.truncf %37 : vector<16x128xf32> to vector<16x128xbf16>
    %c0_23 = arith.constant 0 : index
    %c0_24 = arith.constant 0 : index
    %39 = vector.load %arg8[%c0_23, %c0_24] : memref<128x128xbf16, #tpu.memory_space<vmem>>, vector<128x128xbf16>
    %cst_25 = arith.constant dense<0.000000e+00> : vector<16x128xf32>
    %40 = tpu.matmul %38, %39, %cst_25 {dimension_numbers = #tpu.dot_dimension_numbers<[1], [0], [0], [1], [0, 0, 1, 1], [], []>} : vector<16x128xbf16>, vector<128x128xbf16>, vector<16x128xf32> -> vector<16x128xf32>
    %c4 = arith.constant 4 : index
    %c0_26 = arith.constant 0 : index
    %41 = vector.load %arg3[%c4, %c0_26] : memref<8x896xf32, #tpu.memory_space<vmem>>, vector<1x128xf32>
    %42 = vector.broadcast %41 : vector<1x128xf32> to vector<16x128xf32>
    %43 = arith.addf %40, %42 : vector<16x128xf32>
    %cst_27 = arith.constant 0.000000e+00 : f32
    %44 = vector.broadcast %cst_27 : f32 to vector<16x128xf32>
    %45 = arith.maximumf %43, %44 : vector<16x128xf32>
    %46 = arith.truncf %45 : vector<16x128xf32> to vector<16x128xbf16>
    %c0_28 = arith.constant 0 : index
    %c0_29 = arith.constant 0 : index
    %47 = vector.load %arg9[%c0_28, %c0_29] : memref<128x256xbf16, #tpu.memory_space<vmem>>, vector<128x256xbf16>
    %cst_30 = arith.constant dense<0.000000e+00> : vector<16x256xf32>
    %48 = tpu.matmul %46, %47, %cst_30 {dimension_numbers = #tpu.dot_dimension_numbers<[1], [0], [0], [1], [0, 0, 1, 1], [], []>} : vector<16x128xbf16>, vector<128x256xbf16>, vector<16x256xf32> -> vector<16x256xf32>
    %c5 = arith.constant 5 : index
    %c0_31 = arith.constant 0 : index
    %49 = vector.load %arg3[%c5, %c0_31] : memref<8x896xf32, #tpu.memory_space<vmem>>, vector<1x256xf32>
    %50 = vector.broadcast %49 : vector<1x256xf32> to vector<16x256xf32>
    %51 = arith.addf %48, %50 : vector<16x256xf32>
    %cst_32 = arith.constant 0.000000e+00 : f32
    %52 = vector.broadcast %cst_32 : f32 to vector<16x256xf32>
    %53 = arith.maximumf %51, %52 : vector<16x256xf32>
    %54 = arith.truncf %53 : vector<16x256xf32> to vector<16x256xbf16>
    %c0_33 = arith.constant 0 : index
    %c0_34 = arith.constant 0 : index
    %55 = vector.load %arg10[%c0_33, %c0_34] : memref<256x512xbf16, #tpu.memory_space<vmem>>, vector<256x512xbf16>
    %cst_35 = arith.constant dense<0.000000e+00> : vector<16x512xf32>
    %56 = tpu.matmul %54, %55, %cst_35 {dimension_numbers = #tpu.dot_dimension_numbers<[1], [0], [0], [1], [0, 0, 1, 1], [], []>} : vector<16x256xbf16>, vector<256x512xbf16>, vector<16x512xf32> -> vector<16x512xf32>
    %c6 = arith.constant 6 : index
    %c0_36 = arith.constant 0 : index
    %57 = vector.load %arg3[%c6, %c0_36] : memref<8x896xf32, #tpu.memory_space<vmem>>, vector<1x512xf32>
    %58 = vector.broadcast %57 : vector<1x512xf32> to vector<16x512xf32>
    %59 = arith.addf %56, %58 : vector<16x512xf32>
    %cst_37 = arith.constant 0.000000e+00 : f32
    %60 = vector.broadcast %cst_37 : f32 to vector<16x512xf32>
    %61 = arith.maximumf %59, %60 : vector<16x512xf32>
    %62 = arith.truncf %61 : vector<16x512xf32> to vector<16x512xbf16>
    %c0_38 = arith.constant 0 : index
    %c0_39 = arith.constant 0 : index
    %63 = vector.load %arg11[%c0_38, %c0_39] : memref<512x896xbf16, #tpu.memory_space<vmem>>, vector<512x896xbf16>
    %cst_40 = arith.constant dense<0.000000e+00> : vector<16x896xf32>
    %64 = tpu.matmul %62, %63, %cst_40 {dimension_numbers = #tpu.dot_dimension_numbers<[1], [0], [0], [1], [0, 0, 1, 1], [], []>} : vector<16x512xbf16>, vector<512x896xbf16>, vector<16x896xf32> -> vector<16x896xf32>
    %c7 = arith.constant 7 : index
    %c0_41 = arith.constant 0 : index
    %65 = vector.load %arg3[%c7, %c0_41] : memref<8x896xf32, #tpu.memory_space<vmem>>, vector<1x896xf32>
    %66 = vector.broadcast %65 : vector<1x896xf32> to vector<16x896xf32>
    %67 = arith.addf %64, %66 : vector<16x896xf32>
    %68 = arith.truncf %67 : vector<16x896xf32> to vector<16x896xbf16>
    %c0_42 = arith.constant 0 : index
    %c0_43 = arith.constant 0 : index
    %69 = vector.load %arg12[%c0_42, %c0_43] : memref<16x896xbf16, #tpu.memory_space<vmem>>, vector<16x896xbf16>
    tpu.vector_store %arg12[%c0_42, %c0_43], %68 {strides = array<i32>} : memref<16x896xbf16, #tpu.memory_space<vmem>>, vector<16x896xbf16>,
    %c0_44 = arith.constant 0 : index
    %c0_45 = arith.constant 0 : index
    %70 = vector.load %arg13[%c0_44, %c0_45] : memref<16x256xf32, #tpu.memory_space<vmem>>, vector<16x256xf32>
    tpu.vector_store %arg13[%c0_44, %c0_45], %29 {strides = array<i32>} : memref<16x256xf32, #tpu.memory_space<vmem>>, vector<16x256xf32>,
    return
  }
  func.func @transform_0(%arg0: i32) -> (i32, i32) {
    %c0_i32 = arith.constant 0 : i32
    %c0_i32_0 = arith.constant 0 : i32
    return %arg0, %c0_i32 : i32, i32
  }
  func.func @transform_1(%arg0: i32) -> (i32, i32) {
    %c0_i32 = arith.constant 0 : i32
    %c0_i32_0 = arith.constant 0 : i32
    return %arg0, %c0_i32 : i32, i32
  }
  func.func @transform_2(%arg0: i32) -> (i32, i32) {
    %c0_i32 = arith.constant 0 : i32
    %c0_i32_0 = arith.constant 0 : i32
    %c0_i32_1 = arith.constant 0 : i32
    return %c0_i32, %c0_i32_0 : i32, i32
  }
  func.func @transform_3(%arg0: i32) -> (i32, i32) {
    %c0_i32 = arith.constant 0 : i32
    %c0_i32_0 = arith.constant 0 : i32
    %c0_i32_1 = arith.constant 0 : i32
    return %c0_i32, %c0_i32_0 : i32, i32
  }
  func.func @transform_4(%arg0: i32) -> (i32, i32) {
    %c0_i32 = arith.constant 0 : i32
    %c0_i32_0 = arith.constant 0 : i32
    %c0_i32_1 = arith.constant 0 : i32
    return %c0_i32, %c0_i32_0 : i32, i32
  }
  func.func @transform_5(%arg0: i32) -> (i32, i32) {
    %c0_i32 = arith.constant 0 : i32
    %c0_i32_0 = arith.constant 0 : i32
    %c0_i32_1 = arith.constant 0 : i32
    return %c0_i32, %c0_i32_0 : i32, i32
  }
  func.func @transform_6(%arg0: i32) -> (i32, i32) {
    %c0_i32 = arith.constant 0 : i32
    %c0_i32_0 = arith.constant 0 : i32
    %c0_i32_1 = arith.constant 0 : i32
    return %c0_i32, %c0_i32_0 : i32, i32
  }
  func.func @transform_7(%arg0: i32) -> (i32, i32) {
    %c0_i32 = arith.constant 0 : i32
    %c0_i32_0 = arith.constant 0 : i32
    %c0_i32_1 = arith.constant 0 : i32
    return %c0_i32, %c0_i32_0 : i32, i32
  }
  func.func @transform_8(%arg0: i32) -> (i32, i32) {
    %c0_i32 = arith.constant 0 : i32
    %c0_i32_0 = arith.constant 0 : i32
    %c0_i32_1 = arith.constant 0 : i32
    return %c0_i32, %c0_i32_0 : i32, i32
  }
  func.func @transform_9(%arg0: i32) -> (i32, i32) {
    %c0_i32 = arith.constant 0 : i32
    %c0_i32_0 = arith.constant 0 : i32
    %c0_i32_1 = arith.constant 0 : i32
    return %c0_i32, %c0_i32_0 : i32, i32
  }
  func.func @transform_10(%arg0: i32) -> (i32, i32) {
    %c0_i32 = arith.constant 0 : i32
    %c0_i32_0 = arith.constant 0 : i32
    %c0_i32_1 = arith.constant 0 : i32
    return %c0_i32, %c0_i32_0 : i32, i32
  }
  func.func @transform_11(%arg0: i32) -> (i32, i32) {
    %c0_i32 = arith.constant 0 : i32
    %c0_i32_0 = arith.constant 0 : i32
    return %arg0, %c0_i32 : i32, i32
  }
  func.func @transform_12(%arg0: i32) -> (i32, i32) {
    %c0_i32 = arith.constant 0 : i32
    %c0_i32_0 = arith.constant 0 : i32
    return %arg0, %c0_i32 : i32, i32
  }
}

</mosaic_0001>

<bundles_post_ra>
// kernel: tpu_custom_call.1
= control target key start
LH: loop header
LB: loop body
LE: loop exit
PB: predicated region body
PF: predicated region fallthrough
CT: control target
= control target key end

     0   :  { %s8974_s0 = inlined_call_operand.hbm [shape: bf16[32,896], index: 0, kind: input, shape index: {}]   ;;  %s8975_s1 = inlined_call_operand.hbm [shape: f32[32,128], index: 1, kind: input, shape index: {}]   ;;  %s8976_s2 = inlined_call_operand.hbm [shape: f32[8,896], index: 2, kind: input, shape index: {}]   ;;  %s8977_s3 = inlined_call_operand.hbm [shape: bf16[896,512], index: 3, kind: input, shape index: {}]   ;;  %s8978_s4 = inlined_call_operand.hbm [shape: bf16[512,256], index: 4, kind: input, shape index: {}]   ;;  %s8979_s5 = inlined_call_operand.hbm [shape: bf16[256,128], index: 5, kind: input, shape index: {}]   ;;  %s8980_s6 = inlined_call_operand.hbm [shape: bf16[128,256], index: 6, kind: input, shape index: {}]   ;;  %s8981_s7 = inlined_call_operand.hbm [shape: bf16[128,128], index: 7, kind: input, shape index: {}]   ;;  %s8982_s8 = inlined_call_operand.hbm [shape: bf16[128,256], index: 8, kind: input, shape index: {}]   ;;  %s8983_s9 = inlined_call_operand.hbm [shape: bf16[256,512], index: 9, kind: input, shape index: {}]   ;;  %s8984_s10 = inlined_call_operand.hbm [shape: bf16[512,896], index: 10, kind: input, shape index: {}]   ;;  %s8985_s11 = inlined_call_operand.hbm [shape: bf16[32,896], index: 11, kind: output, shape index: {0}]   ;;  %s8986_s12 = inlined_call_operand.hbm [shape: f32[32,256], index: 12, kind: output, shape index: {1}]  }
   0x1   :  { %8996 = sst [smem:[#allocation32_spill]] %s8974_s0 }
   0x2   :  { %8997 = sst [smem:[#allocation33_spill]] %s8976_s2 }
   0x3   :  { %8998 = sst [smem:[#allocation34_spill]] %s8977_s3 }
   0x4   :  { %8999 = sst [smem:[#allocation35_spill]] %s8978_s4 }
   0x5   :  { %9000 = sst [smem:[#allocation36_spill]] %s8979_s5 }
   0x6   :  { %9001 = sst [smem:[#allocation37_spill]] %s8980_s6 }
   0x7   :  { %9002 = sst [smem:[#allocation38_spill]] %s8981_s7 }
   0x8   :  { %9003 = sst [smem:[#allocation39_spill]] %s8982_s8 }
   0x9   :  { %9004 = sst [smem:[#allocation40_spill]] %s8983_s9 }
   0xa   :  { %9005 = sst [smem:[#allocation41_spill]] %s8984_s10 }
   0xb   :  { %18 = vsyncpa [#allocation3], 0 }
   0xc   :  { %20 = vsyncpa [#allocation3 + $0x1], 0 }
   0xd   :  { %21 = vsyncpa [#allocation6], 0 }
   0xe   :  { %23 = vsyncpa [#allocation6 + $0x1], 0 }
   0xf   :  { %24 = vsyncpa [#allocation9], 0 }
  0x10   :  { %25 = vsyncpa [#allocation12], 0 }
  0x11   :  { %26 = vsyncpa [#allocation15], 0 }
  0x12   :  { %27 = vsyncpa [#allocation18], 0 }
  0x13   :  { %28 = vsyncpa [#allocation4], 0 }
  0x14   :  { %30 = vsyncpa [#allocation4 + $0x1], 0 }
  0x15   :  { %31 = vsyncpa [#allocation22], 0 }
  0x16   :  { %33 = vsyncpa [#allocation22 + $0x1], 0  ;;  %s8473_s21 = smov 0   ;;  %s8475_s22 = smov 0  }
  0x17   :  { %s8477_s23 = smov 0   ;;  %s8479_s24 = smov 0  }
  0x18 LB: > { %s8380_s25 = smov [#allocation7]   ;;  %s8494_s27 = sadd.s32 4294967295, %s8378_s24   ;;  %s8378_s24 = sphi %s8479_s24, %s9048_s24   ;;  %s8374_s23 = sphi %s8477_s23, %s9047_s23   ;;  %s8370_s22 = sphi %s8475_s22, %s9046_s22   ;;  %s8366_s21 = sphi %s8473_s21, %s9045_s21  }
  0x19   : > { %s350_s26 = sshll.u32 %s8380_s25, 4  ;;  %p6077_p0 = scmp.ge.s32.totalorder %s8378_s24, 1  ;;  %s351_s26 = int_to_ptr.vmem [resolvable:$true] %s350_s26 }
  0x1a   : > { %p8989_p1 = scmp.eq.s32.totalorder %s8494_s27, 0  ;;  %p337_p2 = scmp.lt.s32.totalorder %s8378_s24, 3 }
  0x1b   : > { %s8381_s29 = smov [#allocation8]   ;;  %s8382_s14 = smov [#allocation11]  }
  0x1c   : > { %p8499_p3 = pnand %p6077_p0, %p337_p2  ;;  %s360_s30 = sshll.u32 %s8381_s29, 4  ;;  %s8506_s30 = int_to_ptr.vmem [resolvable:$true] %s360_s30 }
  0x1d   : > { %s386_s15 = sshll.u32 %s8382_s14, 4  ;;  %s7981_s17 = scalar_lea.vmem %s351_s26, 896  ;;  %s8514_s15 = int_to_ptr.vmem [resolvable:$true] %s386_s15 }
  0x1e   : > { %s9006_s28 = scalar_select %p8499_p3, 1, 0 }
  0x1f   : > { %p6916_p5 = pneg %p8499_p3  ;;  %p7982_p8 = scmp.ne.s32.totalorder %s351_s26, %s7981_s17 }
  0x20   : > { %p7989_p11 = scmp.lt.s32.totalorder %s351_s26, %s351_s26  ;;  %p7990_p12 = scmp.lt.s32.totalorder %s7981_s17, %s7981_s17 }
  0x21   : > { %p8510_p6 = pnand %p6916_p5, %p8989_p1 }
  0x22   : > { %p7991_p13 = por %p7990_p12, %p7989_p11 }
  0x23   : > { %p8518_p7 = pneg %p8510_p6 }
  0x25   : > { %p7984_p9 = pnand %p7982_p8, %p8518_p7 }
  0x27   : > { %p7985_p10 = pneg %p7984_p9 }
  0x29   : > { %p7992_p0 = pnand %p7991_p13, %p7985_p10 }
  0x2b   : > { %7995 = shalt.err (!%p7992_p0)
}
  0x2c   : > { %s9009_s2 = sld [smem:[#allocation33_spill]]  ;;  %s8007_s20 = scalar_lea.vmem %s8506_s30, 28672 }
  0x2d   : > { %p8008_p2 = scmp.ne.s32.totalorder %s8506_s30, %s8007_s20  ;;  %p8015_p9 = scmp.lt.s32.totalorder %s8506_s30, %s8506_s30 }
  0x2e   : > { %p8016_p11 = scmp.lt.s32.totalorder %s8007_s20, %s8007_s20 }
  0x2f   : > { %p8010_p5 = pnand %p8008_p2, %p8518_p7 }
  0x30   : > { %p8017_p10 = por %p8016_p11, %p8015_p9 }
  0x31   : > { %p8011_p8 = pneg %p8010_p5 }
  0x32   : > { %6919 = dma.hbm_to_vmem [thread:$0]  (!%p8510_p6), %s9009_s2, 896, %s351_s26, [#allocation6]  }
  0x33   : > { %p8018_p12 = pnand %p8017_p10, %p8011_p8 }
  0x35   : > { %8021 = shalt.err (!%p8018_p12)
}
  0x36   : > { %s8987_s25 = smov 256   ;;  %s8988_s29 = smov 16  }
  0x37   : > { %s9010_s3 = sld [smem:[#allocation34_spill]]  ;;  %s8033_s17 = scalar_lea.vmem %s8514_s15, 2048 }
  0x38   : > { %p8034_p13 = scmp.ne.s32.totalorder %s8514_s15, %s8033_s17  ;;  %p8041_p5 = scmp.lt.s32.totalorder %s8514_s15, %s8514_s15 }
  0x39   : > { %p8042_p8 = scmp.lt.s32.totalorder %s8033_s17, %s8033_s17 }
  0x3a   : > { %p8036_p0 = pnand %p8034_p13, %p8518_p7 }
  0x3b   : > { %p8043_p9 = por %p8042_p8, %p8041_p5 }
  0x3c   : > { %p8037_p2 = pneg %p8036_p0 }
  0x3d   : > { %6922 = dma.hbm_to_vmem [thread:$0]  (!%p8510_p6), %s9010_s3, 28672, %s8506_s30, [#allocation9], %s8987_s25, %s8987_s25, %s8988_s29  }
  0x3e   : > { %p8044_p11 = pnand %p8043_p9, %p8037_p2 }
  0x40   : > { %8047 = shalt.err (!%p8044_p11)
}
  0x41   : > { %s8385_s18 = smov 64   ;;  %s8386_s19 = smov 4  }
  0x42   : > { %s9011_s5 = sld [smem:[#allocation36_spill]]  ;;  %s8387_s30 = smov [#allocation14]  }
  0x43   : > { %s412_s14 = sshll.u32 %s8387_s30, 4  ;;  %s8388_s25 = smov [#allocation17]   ;;  %s413_s14 = int_to_ptr.vmem [resolvable:$true] %s412_s14 }
  0x44   : > { %s438_s29 = sshll.u32 %s8388_s25, 4  ;;  %s8059_s2 = scalar_lea.vmem %s413_s14, 1024  ;;  %s439_s29 = int_to_ptr.vmem [resolvable:$true] %s438_s29 }
  0x45   : > { %p8060_p10 = scmp.ne.s32.totalorder %s413_s14, %s8059_s2  ;;  %p8067_p0 = scmp.lt.s32.totalorder %s413_s14, %s413_s14 }
  0x46   : > { %p8068_p2 = scmp.lt.s32.totalorder %s8059_s2, %s8059_s2 }
  0x47   : > { %p8062_p12 = pnand %p8060_p10, %p8518_p7 }
  0x48   : > { %6928 = dma.hbm_to_vmem [thread:$0]  (!%p8510_p6), %s9011_s5, 2048, %s8514_s15, [#allocation12], %s8385_s18, %s8385_s18, %s8386_s19  }
  0x49   : > { %p8063_p13 = pneg %p8062_p12  ;;  %p8069_p5 = por %p8068_p2, %p8067_p0 }
  0x4b   : > { %p8070_p8 = pnand %p8069_p5, %p8063_p13 }
  0x4d   : > { %8073 = shalt.err (!%p8070_p8)
}
  0x4e   : > { %s9012_s7 = sld [smem:[#allocation38_spill]]  ;;  %s8085_s15 = scalar_lea.vmem %s439_s29, 8192 }
  0x4f   : > { %p8086_p9 = scmp.ne.s32.totalorder %s439_s29, %s8085_s15  ;;  %p8093_p10 = scmp.lt.s32.totalorder %s439_s29, %s439_s29 }
  0x50   : > { %p8094_p12 = scmp.lt.s32.totalorder %s8085_s15, %s8085_s15 }
  0x51   : > { %p8088_p11 = pnand %p8086_p9, %p8518_p7 }
  0x52   : > { %p8095_p1 = por %p8094_p12, %p8093_p10 }
  0x53   : > { %p8089_p4 = pneg %p8088_p11 }
  0x54   : > { %6934 = dma.hbm_to_vmem [thread:$0]  (!%p8510_p6), %s9012_s7, 1024, %s413_s14, [#allocation15], %s8385_s18, %s8385_s18, %s8386_s19  }
  0x55   : > { %p8096_p3 = pnand %p8095_p1, %p8089_p4 }
  0x57   : > { %8099 = shalt.err (!%p8096_p3)
}
  0x58   : > { %s9013_s2 = smov 16   ;;  %s9014_s25 = smov 256  }
  0x59   : > { %s9015_s9 = sld [smem:[#allocation40_spill]]  ;;  %s8389_s18 = smov [#allocation10]  }
  0x5a   : > { %s373_s19 = sshll.u32 %s8389_s18, 4  ;;  %s374_s19 = int_to_ptr.vmem [resolvable:$true] %s373_s19 }
  0x5b   : > { %s8111_s14 = scalar_lea.vmem %s374_s19, 8192  ;;  %p8119_p1 = scmp.lt.s32.totalorder %s374_s19, %s374_s19 }
  0x5c   : > { %p8112_p13 = scmp.ne.s32.totalorder %s374_s19, %s8111_s14  ;;  %p8120_p3 = scmp.lt.s32.totalorder %s8111_s14, %s8111_s14 }
  0x5e   : > { %p8114_p0 = pnand %p8112_p13, %p8518_p7  ;;  %p8121_p4 = por %p8120_p3, %p8119_p1 }
  0x5f   : > { %6940 = dma.hbm_to_vmem [thread:$0]  (!%p8510_p6), %s9015_s9, 8192, %s439_s29, [#allocation18], %s9014_s25, %s9014_s25, %s9013_s2  }
  0x60   : > { %p8115_p2 = pneg %p8114_p0 }
  0x62   : > { %p8122_p5 = pnand %p8121_p4, %p8115_p2 }
  0x64   : > { %8125 = shalt.err (!%p8122_p5)
}
  0x65   : > { %s8991_s17 = smov 128   ;;  %s8992_s20 = smov 8  }
  0x66   : > { %s9016_s4 = sld [smem:[#allocation35_spill]]  ;;  %s8392_s2 = smov [#allocation13]  }
  0x67   : > { %s399_s25 = sshll.u32 %s8392_s2, 4  ;;  %s8393_s26 = smov [#allocation16]   ;;  %s400_s25 = int_to_ptr.vmem [resolvable:$true] %s399_s25 }
  0x68   : > { %s425_s30 = sshll.u32 %s8393_s26, 4  ;;  %s8137_s18 = scalar_lea.vmem %s400_s25, 2048  ;;  %s426_s30 = int_to_ptr.vmem [resolvable:$true] %s425_s30 }
  0x69   : > { %p8138_p8 = scmp.ne.s32.totalorder %s400_s25, %s8137_s18  ;;  %p8145_p10 = scmp.lt.s32.totalorder %s400_s25, %s400_s25 }
  0x6a   : > { %p8146_p12 = scmp.lt.s32.totalorder %s8137_s18, %s8137_s18 }
  0x6b   : > { %p8140_p9 = pnand %p8138_p8, %p8518_p7 }
  0x6c   : > { %6925 = dma.hbm_to_vmem [thread:$0]  (!%p8510_p6), %s9016_s4, 8192, %s374_s19, [#allocation9], %s8991_s17, %s8991_s17, %s8992_s20  }
  0x6d   : > { %p8141_p11 = pneg %p8140_p9  ;;  %p8147_p13 = por %p8146_p12, %p8145_p10 }
  0x6f   : > { %p8148_p0 = pnand %p8147_p13, %p8141_p11 }
  0x71   : > { %8151 = shalt.err (!%p8148_p0)
}
  0x72   : > { %s9017_s6 = sld [smem:[#allocation37_spill]]  ;;  %s8163_s29 = scalar_lea.vmem %s426_s30, 2048 }
  0x73   : > { %p8164_p2 = scmp.ne.s32.totalorder %s426_s30, %s8163_s29  ;;  %p8171_p4 = scmp.lt.s32.totalorder %s426_s30, %s426_s30 }
  0x74   : > { %p8172_p5 = scmp.lt.s32.totalorder %s8163_s29, %s8163_s29 }
  0x75   : > { %p8166_p1 = pnand %p8164_p2, %p8518_p7 }
  0x76   : > { %p8173_p8 = por %p8172_p5, %p8171_p4 }
  0x77   : > { %p8167_p3 = pneg %p8166_p1 }
  0x78   : > { %6931 = dma.hbm_to_vmem [thread:$0]  (!%p8510_p6), %s9017_s6, 2048, %s400_s25, [#allocation12], %s8991_s17, %s8991_s17, %s8992_s20  }
  0x79   : > { %p8174_p9 = pnand %p8173_p8, %p8167_p3 }
  0x7b   : > { %8177 = shalt.err (!%p8174_p9)
}
  0x7c   : > { %s9018_s8 = sld [smem:[#allocation39_spill]]  ;;  %s8394_s25 = smov [#allocation19]  }
  0x7d   : > { %s451_s26 = sshll.u32 %s8394_s25, 4  ;;  %s452_s26 = int_to_ptr.vmem [resolvable:$true] %s451_s26 }
  0x7e   : > { %s8189_s18 = scalar_lea.vmem %s452_s26, 28672  ;;  %p8197_p13 = scmp.lt.s32.totalorder %s452_s26, %s452_s26 }
  0x7f   : > { %p8190_p11 = scmp.ne.s32.totalorder %s452_s26, %s8189_s18  ;;  %p8198_p0 = scmp.lt.s32.totalorder %s8189_s18, %s8189_s18 }
  0x81   : > { %p8192_p10 = pnand %p8190_p11, %p8518_p7  ;;  %p8199_p2 = por %p8198_p0, %p8197_p13 }
  0x82   : > { %6937 = dma.hbm_to_vmem [thread:$0]  (!%p8510_p6), %s9018_s8, 2048, %s426_s30, [#allocation15], %s8991_s17, %s8991_s17, %s8992_s20  }
  0x83   : > { %p8193_p12 = pneg %p8192_p10 }
  0x85   : > { %p8200_p1 = pnand %p8199_p2, %p8193_p12 }
  0x87   : > { %8203 = shalt.err (!%p8200_p1)
}
  0x88   : > { %s8993_s19 = smov 448   ;;  %s8994_s16 = smov 28  }
  0x89   : > { %s9019_s10 = sld [smem:[#allocation41_spill]]  ;;  %s6076_s29 = sadd.s32 4294967294, %s8378_s24  }
  0x8a   : > { %s8615_s15 = sadd.s32 1, %s8378_s24   ;;  %s46_s2 = sadd.s32 1, %s8374_s23 }
  0x8b   : > { %s43_s25 = ssub.s32 %s8378_s24, %s8615_s15  ;;  %p53_p7 = scmp.ne.s32.totalorder %s8374_s23, %s8370_s22 }
  0x8c   : > { %p44_p3 = scmp.eq.s32.totalorder %s43_s25, 0  ;;  %p54_p4 = scmp.eq.s32.totalorder %s8378_s24, 0 }
  0x8d   : > { %p59_p5 = scmp.ne.s32.totalorder %s8370_s22, %s8366_s21  ;;  %p298_p8 = scmp.eq.s32.totalorder %s8494_s27, 1 }
  0x8e   : > { %s8627_s13 = scalar_select %p44_p3, %s8374_s23, %s46_s2  }
  0x8f   : > { %6943 = dma.hbm_to_vmem [thread:$0]  (!%p8510_p6), %s9019_s10, 28672, %s452_s26, [#allocation18], %s8993_s19, %s8993_s19, %s8994_s16  }
  0x90   : > { %p55_p9 = por %p54_p4, %p53_p7  ;;  %p9020_p11 = scmp.eq.s32.totalorder %s8494_s27, 0 }
  0x91   : > { %p8635_p6 = por %p298_p8, %p53_p7  ;;  %p304_p12 = scmp.eq.s32.totalorder %s6076_s29, 1 }
  0x92   : > { %p8631_p10 = por %p9020_p11, %p59_p5  ;;  %p6967_p13 = scmp.lt.s32.totalorder %s8378_s24, 2 }
  0x93   : > { %s9022_s18 = scalar_select %p8635_p6, 1, 0 }
  0x94   : > { %s8641_s30 = sand.u32 1, %s8374_s23   ;;  %p8643_p0 = por %p304_p12, %p59_p5 }
  0x95   : > { %s6868_s2 = smul.u32 56, %s8641_s30  ;;  %p8648_p2 = pnand %p6967_p13, %p55_p9 }
  0x96   : > { %s9023_s14 = scalar_select %p8643_p0, 1, 0 }
  0x97   : > { %s6869_s17 = smul.u32 896, %s8378_s24  ;;  %s9025_s0 = sld [smem:[#allocation32_spill]] }
  0x98   : > { %s469_s3 = scalar_lea.vmem [#allocation2], %s6868_s2  ;;  %s466_s5 = scalar_lea.sflag [#allocation3], %s8641_s30 }
  0x99   : > { %s477_s4 = sshll.u32 %s469_s3, 4  ;;  %p8206_p7 = pneg %p8648_p2  ;;  %s8659_s4 = int_to_ptr.vmem [resolvable:$true] %s477_s4 }
  0x9d   : > { %s8657_s16 = scalar_lea.hbm %s9025_s0, %s6869_s17  ;;  %s8209_s17 = scalar_lea.hbm %s9025_s0, 1792 }
  0x9e   : > { %s8204_s6 = scalar_lea.hbm %s8657_s16, 896  ;;  %p8210_p5 = scmp.lt.s32.totalorder %s8657_s16, %s9025_s0 }
  0x9f   : > { %p8205_p1 = scmp.ne.s32.totalorder %s8657_s16, %s8204_s6  ;;  %p8211_p8 = scmp.lt.s32.totalorder %s8209_s17, %s8204_s6 }
  0xa1   : > { %p8207_p3 = pnand %p8206_p7, %p8205_p1  ;;  %p8212_p9 = por %p8211_p8, %p8210_p5 }
  0xa3   : > { %p8208_p4 = pneg %p8207_p3 }
  0xa5   : > { %p8213_p11 = pnand %p8212_p9, %p8208_p4 }
  0xa7   : > { %8216 = shalt.err (!%p8213_p11)
}
  0xa8   : > { %s8217_s3 = scalar_lea.vmem %s8659_s4, 896  ;;  %s8397_s20 = smov [#allocation2]  }
  0xa9   : > { %p8218_p12 = scmp.ne.s32.totalorder %s8659_s4, %s8217_s3  ;;  %s8222_s2 = sshll.u32 %s8397_s20, 4  ;;  %s8223_s2 = int_to_ptr.vmem [resolvable:$false] %s8222_s2 }
  0xaa   : > { %s8224_s19 = scalar_lea.vmem %s8223_s2, 1792  ;;  %p8225_p3 = scmp.lt.s32.totalorder %s8659_s4, %s8223_s2 }
  0xab   : > { %p8220_p13 = pnand %p8218_p12, %p8206_p7  ;;  %p8226_p0 = scmp.lt.s32.totalorder %s8224_s19, %s8217_s3 }
  0xad   : > { %p8221_p1 = pneg %p8220_p13  ;;  %p8227_p6 = por %p8226_p0, %p8225_p3 }
  0xaf   : > { %p8228_p5 = pnand %p8227_p6, %p8221_p1 }
  0xb1   : > { %8231 = shalt.err (!%p8228_p5)
}
  0xb2   : > { %s9026_s6 = smov 28   ;;  %s9027_s7 = smov 448  }
  0xb3   : > { %6947 = dma.hbm_to_vmem [thread:$0]  (!%p8648_p2), %s8657_s16, 896, %s8659_s4, %s466_s5, %s9027_s7, %s9027_s7, %s9026_s6  }
  0xb4   : > { %s6091_s17 = sshll.u32 %s8641_s30, 4  ;;  %s6762_s29 = sshll.u32 %s8378_s24, 8 }
  0xb5   : > { %s8696_s2 = scalar_lea.hbm %s8975_s1, %s6762_s29  ;;  %s491_s19 = scalar_lea.vmem [#allocation5], %s6091_s17 }
  0xb6   : > { %s498_s0 = sshll.u32 %s491_s19, 4  ;;  %s9028_s8 = sand.u32 1, %s8378_s24   ;;  %s8698_s0 = int_to_ptr.vmem [resolvable:$true] %s498_s0 }
  0xb7   : > { %s488_s9 = scalar_lea.sflag [#allocation6], %s9028_s8  ;;  %s8232_s10 = scalar_lea.hbm %s8696_s2, 256 }
  0xb8   : > { %p8233_p6 = scmp.ne.s32.totalorder %s8696_s2, %s8232_s10  ;;  %s8237_s16 = scalar_lea.hbm %s8975_s1, 512 }
  0xb9   : > { %p8238_p8 = scmp.lt.s32.totalorder %s8696_s2, %s8975_s1  ;;  %p8239_p9 = scmp.lt.s32.totalorder %s8237_s16, %s8232_s10 }
  0xba   : > { %p8235_p0 = pnand %p8233_p6, %p8206_p7 }
  0xbb   : > { %p8240_p11 = por %p8239_p9, %p8238_p8 }
  0xbc   : > { %p8236_p4 = pneg %p8235_p0 }
  0xbe   : > { %p8241_p12 = pnand %p8240_p11, %p8236_p4 }
  0xc0   : > { %8244 = shalt.err (!%p8241_p12)
}
  0xc1   : > { %s8245_s8 = scalar_lea.vmem %s8698_s0, 256  ;;  %s8398_s7 = smov [#allocation5]  }
  0xc2   : > { %p8246_p13 = scmp.ne.s32.totalorder %s8698_s0, %s8245_s8  ;;  %s8250_s17 = sshll.u32 %s8398_s7, 4  ;;  %s8251_s17 = int_to_ptr.vmem [resolvable:$false] %s8250_s17 }
  0xc3   : > { %s8252_s29 = scalar_lea.vmem %s8251_s17, 512  ;;  %p8253_p5 = scmp.lt.s32.totalorder %s8698_s0, %s8251_s17 }
  0xc4   : > { %p8248_p1 = pnand %p8246_p13, %p8206_p7  ;;  %p8254_p6 = scmp.lt.s32.totalorder %s8252_s29, %s8245_s8 }
  0xc6   : > { %p8249_p3 = pneg %p8248_p1  ;;  %p8255_p0 = por %p8254_p6, %p8253_p5 }
  0xc8   : > { %p8256_p8 = pnand %p8255_p0, %p8249_p3 }
  0xca   : > { %8259 = shalt.err (!%p8256_p8)
}
  0xcb   : > { %s9029_s10 = smov 8   ;;  %s9030_s3 = smov 128  }
  0xcc   : > { %6950 = dma.hbm_to_vmem [thread:$0]  (!%p8648_p2), %s8696_s2, 256, %s8698_s0, %s488_s9, %s9030_s3, %s9030_s3, %s9029_s10  }
  0xcd   : > { %p9031_p7 = scmp.ne.s32.totalorder %s9006_s28, 0 }
  0xce   : > { %s8730_s20 = sand.u32 (!%p9031_p7), 1, %s8370_s22  }
  0xcf   : > { %510 = sbr.rel (%p9031_p7) target bundleno = 2300 (0x8fc), region = 64  ;;  %s513_s4 = scalar_lea.sflag (!%p9031_p7), [#allocation3], %s8730_s20 }
  0xd0   : > { %s6870_s19 = smul.u32 (!%p9031_p7), 56, %s8730_s20 }
  0xd2   : > { %s8736_s25 = scalar_lea.vmem (!%p9031_p7), [#allocation2], %s6870_s19 }
  0xd4   : > { %8329 = dma.done.wait (%p8631_p10), %s513_s4, 896  }
  0xd5   : > { %8331 = vsyncadd (%p8631_p10), %s513_s4, 4294966400  ;;  %s521_s0 = sand.u32 1, %s8494_s27   ;;  %s6095_s9 = sshll.u32 %s8730_s20, 4 }
  0xd6   : > { %s522_s28 = scalar_lea.sflag [#allocation6], %s521_s0  ;;  %s8744_s2 = scalar_lea.vmem [#allocation5], %s6095_s9 }
  0xd7   : > { %8333 = dma.done.wait (%p8631_p10), %s522_s28, 256  }
  0xd8   : > { %8335 = vsyncadd (%p8631_p10), %s522_s28, 4294967040  ;;  %p9032_p2 = scmp.eq.s32.totalorder %s8494_s27, 0 }
  0xda   : > { %8337 = dma.done.wait (%p9032_p2), [#allocation6], 896   ;;  %p9033_p4 = pmov %p9032_p2 }
  0xdb   : > { %p9034_p9 = pmov %p9032_p2 }
  0xdc   : > { %8339 = vsyncadd (%p9033_p4), [#allocation6], 4294966400 }
  0xdd   : > { %8341 = dma.done.wait (%p9034_p9), [#allocation9], 36864   ;;  %p9035_p11 = pmov %p9032_p2 }
  0xde   : > { %p9036_p12 = pmov %p9032_p2 }
  0xdf   : > { %8343 = vsyncadd (%p9035_p11), [#allocation9], 4294930432 }
  0xe0   : > { %8345 = dma.done.wait (%p9036_p12), [#allocation12], 4096   ;;  %p9037_p13 = pmov %p9032_p2 }
  0xe1   : > { %p9038_p10 = pmov %p9032_p2 }
  0xe2   : > { %8347 = vsyncadd (%p9037_p13), [#allocation12], 4294963200 }
  0xe3   : > { %8349 = dma.done.wait (%p9038_p10), [#allocation15], 3072   ;;  %p9039_p1 = pmov %p9032_p2 }
  0xe5   : > { %8351 = vsyncadd (%p9039_p1), [#allocation15], 4294964224  ;;  %p9040_p3 = pmov %p9039_p1 }
  0xe6   : > { %p9041_p5 = pmov %p9039_p1 }
  0xe7   : > { %8353 = dma.done.wait (%p9040_p3), [#allocation18], 36864  }
  0xe8   : > { %8355 = vsyncadd (%p9041_p5), [#allocation18], 4294930432  ;;  %v7034_v0 = vld [vmem:[#allocation8 + $0xe4] ss:$16 sps:$4 sm:$0xff]   ;;  %v7038_v2 = vld [vmem:[#allocation8 + $0xe0] ss:$16 sps:$4 sm:$0xff]  }
  0xe9   : > { %v7036_v1 = vld [vmem:[#allocation8 + $0x2e4] ss:$16 sps:$4 sm:$0xff]   ;;  %2027 = vmatprep.subr.bf16.mxu0 %v7034_v0  ;;  %v7039_v3 = vld [vmem:[#allocation8 + $0x2e0] ss:$16 sps:$4 sm:$0xff]   ;;  %vm8401_vm0 = vmmov 0   ;;  %s6105_s26 = sshll.u32 %s8730_s20, 5 }
  0xea   : > { %2070 = vmatprep.subr.bf16.mxu1 %v7036_v1  ;;  %v7040_v4 = vld [vmem:[#allocation8 + $0xc4] ss:$16 sps:$4 sm:$0xff]   ;;  %2028 = vmatpush1.bf16.msra.mxu0 %v7038_v2  ;;  %v7044_v6 = vld [vmem:[#allocation8 + $0xc0] ss:$16 sps:$4 sm:$0xff]   ;;  %s8826_s5 = scalar_lea.vmem [#allocation21], %s6105_s26  ;;  %s8872_s16 = scalar_lea.vmem [#allocation20], %s6870_s19 }
  0xeb   : > { %2071 = vmatpush1.bf16.msra.mxu1 %v7039_v3  ;;  %v7042_v5 = vld [vmem:[#allocation8 + $0x2c4] ss:$16 sps:$4 sm:$0xff]   ;;  %2029 = vmatprep.subr.bf16.mxu0 %v7040_v4  ;;  %v7045_v7 = vld [vmem:[#allocation8 + $0x2c0] ss:$16 sps:$4 sm:$0xff]   ;;  %s5863_s30 = sshll.u32 %s8826_s5, 4  ;;  %s6772_s6 = sshll.u32 %s8494_s27, 9  ;;  %s8877_s30 = int_to_ptr.vmem [resolvable:$true] %s5863_s30 }
  0xec   : > { %2072 = vmatprep.subr.bf16.mxu1 %v7042_v5  ;;  %v7046_v8 = vld [vmem:[#allocation8 + $0xa4] ss:$16 sps:$4 sm:$0xff]   ;;  %v7050_v10 = vld [vmem:[#allocation8 + $0xa0] ss:$16 sps:$4 sm:$0xff]   ;;  %s8883_s17 = scalar_lea.hbm %s8986_s12, %s6772_s6  ;;  %s5832_s29 = scalar_lea.sflag [#allocation22], %s8730_s20 }
  0xed   : > { %v7048_v9 = vld [vmem:[#allocation8 + $0x2a4] ss:$16 sps:$4 sm:$0xff]   ;;  %v7051_v11 = vld [vmem:[#allocation8 + $0x2a0] ss:$16 sps:$4 sm:$0xff]   ;;  %s8260_s10 = scalar_lea.vmem %s8877_s30, 512  ;;  %p9042_p0 = scmp.ne.s32.totalorder %s9022_s18, 0 }
  0xee   : > { %2030 = vmatpush1.bf16.msra.mxu0 %v7044_v6  ;;  %v7052_v12 = vld [vmem:[#allocation8 + $0x84] ss:$16 sps:$4 sm:$0xff]   ;;  %v7056_v14 = vld [vmem:[#allocation8 + $0x80] ss:$16 sps:$4 sm:$0xff]   ;;  %p8261_p6 = scmp.ne.s32.totalorder %s8877_s30, %s8260_s10  ;;  %s8402_s3 = smov [#allocation21]  }
  0xef   : > { %2073 = vmatpush1.bf16.msra.mxu1 %v7045_v7  ;;  %2031 = vmatprep.subr.bf16.mxu0 %v7046_v8  ;;  %v7054_v13 = vld [vmem:[#allocation8 + $0x284] ss:$16 sps:$4 sm:$0xff]   ;;  %v7057_v15 = vld [vmem:[#allocation8 + $0x280] ss:$16 sps:$4 sm:$0xff]   ;;  %s8264_s19 = sshll.u32 %s8402_s3, 4  ;;  %s8265_s19 = int_to_ptr.vmem [resolvable:$false] %s8264_s19 }
  0xf0   : > { %2074 = vmatprep.subr.bf16.mxu1 %v7048_v9  ;;  %v7058_v16 = vld [vmem:[#allocation8 + $0x64] ss:$16 sps:$4 sm:$0xff]   ;;  %v7062_v18 = vld [vmem:[#allocation8 + $0x60] ss:$16 sps:$4 sm:$0xff]   ;;  %p8262_p8 = pnand %p8261_p6, %p9042_p0  ;;  %s8266_s4 = scalar_lea.vmem %s8265_s19, 1024 }
  0xf1   : > { %v7060_v17 = vld [vmem:[#allocation8 + $0x264] ss:$16 sps:$4 sm:$0xff]   ;;  %v7063_v19 = vld [vmem:[#allocation8 + $0x260] ss:$16 sps:$4 sm:$0xff]   ;;  %p8267_p2 = scmp.lt.s32.totalorder %s8877_s30, %s8265_s19  ;;  %p8268_p4 = scmp.lt.s32.totalorder %s8266_s4, %s8260_s10 }
  0xf2   : > { %2032 = vmatpush1.bf16.msra.mxu0 %v7050_v10  ;;  %v7064_v20 = vld [vmem:[#allocation8 + $0x44] ss:$16 sps:$4 sm:$0xff]   ;;  %v7068_v22 = vld [vmem:[#allocation8 + $0x40] ss:$16 sps:$4 sm:$0xff]   ;;  %p8263_p7 = pneg %p8262_p8 }
  0xf3   : > { %2075 = vmatpush1.bf16.msra.mxu1 %v7051_v11  ;;  %2033 = vmatprep.subr.bf16.mxu0 %v7052_v12  ;;  %v7066_v21 = vld [vmem:[#allocation8 + $0x244] ss:$16 sps:$4 sm:$0xff]   ;;  %v7069_v23 = vld [vmem:[#allocation8 + $0x240] ss:$16 sps:$4 sm:$0xff]   ;;  %p8269_p9 = por %p8268_p4, %p8267_p2 }
  0xf4   : > { %2076 = vmatprep.subr.bf16.mxu1 %v7054_v13  ;;  %v7070_v24 = vld [vmem:[#allocation8 + $0x24] ss:$16 sps:$4 sm:$0xff]   ;;  %v7074_v26 = vld [vmem:[#allocation8 + $0x20] ss:$16 sps:$4 sm:$0xff]  }
  0xf5   : > { %v7072_v25 = vld [vmem:[#allocation8 + $0x224] ss:$16 sps:$4 sm:$0xff]   ;;  %v7075_v27 = vld [vmem:[#allocation8 + $0x220] ss:$16 sps:$4 sm:$0xff]   ;;  %p8270_p11 = pnand %p8269_p9, %p8263_p7 }
  0xf6   : > { %2034 = vmatpush1.bf16.msra.mxu0 %v7056_v14  ;;  %v7076_v28 = vld [vmem:[#allocation8 + $0x4] ss:$16 sps:$4 sm:$0xff]   ;;  %v7080_v30 = vld [vmem:[#allocation8] ss:$16 sps:$4 sm:$0xff]   ;;  %v8399_v14 = vmov 0  }
  0xf7   : > { %2077 = vmatpush1.bf16.msra.mxu1 %v7057_v15  ;;  %2035 = vmatprep.subr.bf16.mxu0 %v7058_v16  ;;  %v7078_v29 = vld [vmem:[#allocation8 + $0x204] ss:$16 sps:$4 sm:$0xff]   ;;  %v7081_v31 = vld [vmem:[#allocation8 + $0x200] ss:$16 sps:$4 sm:$0xff]  }
  0xf8   : > { %2078 = vmatprep.subr.bf16.mxu1 %v7060_v17  ;;  %v7082_v32 = vld [vmem:[#allocation8 + $0x1e4] ss:$16 sps:$4 sm:$0xff]   ;;  %v7086_v34 = vld [vmem:[#allocation8 + $0x1e0] ss:$16 sps:$4 sm:$0xff]  }
  0xf9   : > { %v7084_v33 = vld [vmem:[#allocation8 + $0x3e4] ss:$16 sps:$4 sm:$0xff]   ;;  %v7087_v35 = vld [vmem:[#allocation8 + $0x3e0] ss:$16 sps:$4 sm:$0xff]  }
  0xfa   : > { %2036 = vmatpush1.bf16.msra.mxu0 %v7062_v18  ;;  %v7088_v36 = vld [vmem:[#allocation8 + $0x1c4] ss:$16 sps:$4 sm:$0xff]   ;;  %v7092_v38 = vld [vmem:[#allocation8 + $0x1c0] ss:$16 sps:$4 sm:$0xff]  }
  0xfb   : > { %2079 = vmatpush1.bf16.msra.mxu1 %v7063_v19  ;;  %2037 = vmatprep.subr.bf16.mxu0 %v7064_v20  ;;  %v7090_v37 = vld [vmem:[#allocation8 + $0x3c4] ss:$16 sps:$4 sm:$0xff]   ;;  %v7093_v39 = vld [vmem:[#allocation8 + $0x3c0] ss:$16 sps:$4 sm:$0xff]  }
  0xfc   : > { %2080 = vmatprep.subr.bf16.mxu1 %v7066_v21  ;;  %v7094_v40 = vld [vmem:[#allocation8 + $0x1a4] ss:$16 sps:$4 sm:$0xff]   ;;  %v7098_v42 = vld [vmem:[#allocation8 + $0x1a0] ss:$16 sps:$4 sm:$0xff]  }
  0xfd   : > { %v7096_v41 = vld [vmem:[#allocation8 + $0x3a4] ss:$16 sps:$4 sm:$0xff]   ;;  %v7099_v43 = vld [vmem:[#allocation8 + $0x3a0] ss:$16 sps:$4 sm:$0xff]  }
  0xfe   : > { %2038 = vmatpush1.bf16.msra.mxu0 %v7068_v22  ;;  %v7100_v44 = vld [vmem:[#allocation8 + $0x184] ss:$16 sps:$4 sm:$0xff]   ;;  %v7104_v46 = vld [vmem:[#allocation8 + $0x180] ss:$16 sps:$4 sm:$0xff]  }
  0xff   : > { %2081 = vmatpush1.bf16.msra.mxu1 %v7069_v23  ;;  %2039 = vmatprep.subr.bf16.mxu0 %v7070_v24  ;;  %v7102_v45 = vld [vmem:[#allocation8 + $0x384] ss:$16 sps:$4 sm:$0xff]   ;;  %v7105_v47 = vld [vmem:[#allocation8 + $0x380] ss:$16 sps:$4 sm:$0xff]  }
 0x100   : > { %2082 = vmatprep.subr.bf16.mxu1 %v7072_v25  ;;  %v7106_v48 = vld [vmem:[#allocation8 + $0x164] ss:$16 sps:$4 sm:$0xff]   ;;  %v7110_v52 = vld [vmem:[#allocation8 + $0x160] ss:$16 sps:$4 sm:$0xff]  }
 0x101   : > { %v8771_v49 = vld [vmem:[%s8736_s25 + $0x4] ss:$28 sps:$4 sm:$0xff]   ;;  %v8774_v51 = vld [vmem:[%s8736_s25 + $0xc] ss:$28 sps:$4 sm:$0xff]  }
 0x102   : > { %2040 = vmatpush1.bf16.msra.mxu0 %v7074_v26  ;;  %v7108_v50 = vld [vmem:[#allocation8 + $0x364] ss:$16 sps:$4 sm:$0xff]   ;;  %2059 = vmatprep.mubr.bf16.mxu0 %v8771_v49  ;;  %v7111_v53 = vld [vmem:[#allocation8 + $0x360] ss:$16 sps:$4 sm:$0xff]  }
 0x103   : > { %2083 = vmatpush1.bf16.msra.mxu1 %v7075_v27  ;;  %2041 = vmatprep.subr.bf16.mxu0 %v7076_v28  ;;  %v7112_v54 = vld [vmem:[#allocation8 + $0x144] ss:$16 sps:$4 sm:$0xff]   ;;  %v7116_v56 = vld [vmem:[#allocation8 + $0x140] ss:$16 sps:$4 sm:$0xff]  }
 0x104   : > { %2084 = vmatprep.subr.bf16.mxu1 %v7078_v29  ;;  %2102 = vmatprep.mubr.bf16.mxu1 %v8774_v51  ;;  %v7114_v55 = vld [vmem:[#allocation8 + $0x344] ss:$16 sps:$4 sm:$0xff]   ;;  %v7117_v57 = vld [vmem:[#allocation8 + $0x340] ss:$16 sps:$4 sm:$0xff]  }
 0x105   : > { %v7118_v58 = vld [vmem:[#allocation8 + $0x124] ss:$16 sps:$4 sm:$0xff]   ;;  %v7122_v60 = vld [vmem:[#allocation8 + $0x120] ss:$16 sps:$4 sm:$0xff]  }
 0x106   : > { %2042 = vmatpush1.bf16.msra.mxu0 %v7080_v30  ;;  %v7120_v59 = vld [vmem:[#allocation8 + $0x324] ss:$16 sps:$4 sm:$0xff]   ;;  %v7123_v61 = vld [vmem:[#allocation8 + $0x320] ss:$16 sps:$4 sm:$0xff]  }
 0x107   : > { %2085 = vmatpush1.bf16.msra.mxu1 %v7081_v31  ;;  %2043 = vmatprep.subr.bf16.mxu0 %v7082_v32  ;;  %v7124_v62 = vld [vmem:[#allocation8 + $0x104] ss:$16 sps:$4 sm:$0xff]   ;;  %v7128_v0 = vld [vmem:[#allocation8 + $0x100] ss:$16 sps:$4 sm:$0xff]  }
 0x108   : > { %2086 = vmatprep.subr.bf16.mxu1 %v7084_v33  ;;  %v7126_v63 = vld [vmem:[#allocation8 + $0x304] ss:$16 sps:$4 sm:$0xff]   ;;  %v7129_v1 = vld [vmem:[#allocation8 + $0x300] ss:$16 sps:$4 sm:$0xff]  }
 0x109   : > { %v7138_v2 = vld [vmem:[#allocation8 + $0x4e4] ss:$16 sps:$4 sm:$0xff]   ;;  %v7136_v6 = vld [vmem:[#allocation8 + $0x4e0] ss:$16 sps:$4 sm:$0xff]  }
 0x10a   : > { %2044 = vmatpush2.bf16.msra.mxu0 %v7086_v34  ;;  %v7141_v3 = vld [vmem:[#allocation8 + $0x6e4] ss:$16 sps:$4 sm:$0xff]   ;;  %v7139_v7 = vld [vmem:[#allocation8 + $0x6e0] ss:$16 sps:$4 sm:$0xff]  }
 0x10b   : > { %2087 = vmatpush2.bf16.msra.mxu1 %v7087_v35  ;;  %2045 = vmatprep.subr.bf16.mxu0 %v7088_v36  ;;  %v8779_v4 = vld [vmem:[%s8736_s25] ss:$28 sps:$4 sm:$0xff]   ;;  %v7133_v5 = vld [vmem:[%s8736_s25 + $0x8] ss:$28 sps:$4 sm:$0xff]   ;;  %v8785_v35 = vld [vmem:[%s8736_s25 + $0x14] ss:$28 sps:$4 sm:$0xff]  }
 0x10c   : > { %2088 = vmatprep.subr.bf16.mxu1 %v7090_v37  ;;  %v7144_v8 = vld [vmem:[#allocation8 + $0x4c4] ss:$16 sps:$4 sm:$0xff]   ;;  %v7142_v10 = vld [vmem:[#allocation8 + $0x4c0] ss:$16 sps:$4 sm:$0xff]  }
 0x10d   : > { %v7147_v9 = vld [vmem:[#allocation8 + $0x6c4] ss:$16 sps:$4 sm:$0xff]   ;;  %v7145_v11 = vld [vmem:[#allocation8 + $0x6c0] ss:$16 sps:$4 sm:$0xff]  }
 0x10e   : > { %2046 = vmatpush2.bf16.msra.mxu0 %v7092_v38  ;;  %v7150_v12 = vld [vmem:[#allocation8 + $0x4a4] ss:$16 sps:$4 sm:$0xff]   ;;  %v7148_v15 = vld [vmem:[#allocation8 + $0x4a0] ss:$16 sps:$4 sm:$0xff]  }
 0x10f   : > { %2089 = vmatpush2.bf16.msra.mxu1 %v7093_v39  ;;  %2047 = vmatprep.subr.bf16.mxu0 %v7094_v40  ;;  %v7153_v13 = vld [vmem:[#allocation8 + $0x6a4] ss:$16 sps:$4 sm:$0xff]   ;;  %v7151_v16 = vld [vmem:[#allocation8 + $0x6a0] ss:$16 sps:$4 sm:$0xff]   ;;  %v7190_v39 = vld [vmem:[#allocation8 + $0xec] ss:$16 sps:$4 sm:$0xff]  }
 0x110   : > { %2090 = vmatprep.subr.bf16.mxu1 %v7096_v41  ;;  %v7156_v17 = vld [vmem:[#allocation8 + $0x484] ss:$16 sps:$4 sm:$0xff]   ;;  %v7154_v19 = vld [vmem:[#allocation8 + $0x480] ss:$16 sps:$4 sm:$0xff]  }
 0x111   : > { %v7159_v18 = vld [vmem:[#allocation8 + $0x684] ss:$16 sps:$4 sm:$0xff]   ;;  %v7157_v20 = vld [vmem:[#allocation8 + $0x680] ss:$16 sps:$4 sm:$0xff]  }
 0x112   : > { %2048 = vmatpush2.bf16.msra.mxu0 %v7098_v42  ;;  %v7162_v21 = vld [vmem:[#allocation8 + $0x464] ss:$16 sps:$4 sm:$0xff]   ;;  %v7160_v23 = vld [vmem:[#allocation8 + $0x460] ss:$16 sps:$4 sm:$0xff]   ;;  %v7188_v42 = vld [vmem:[#allocation8 + $0xe8] ss:$16 sps:$4 sm:$0xff]  }
 0x113   : > { %2091 = vmatpush2.bf16.msra.mxu1 %v7099_v43  ;;  %2049 = vmatprep.subr.bf16.mxu0 %v7100_v44  ;;  %v7165_v22 = vld [vmem:[#allocation8 + $0x664] ss:$16 sps:$4 sm:$0xff]   ;;  %v7163_v24 = vld [vmem:[#allocation8 + $0x660] ss:$16 sps:$4 sm:$0xff]   ;;  %v7196_v44 = vld [vmem:[#allocation8 + $0xcc] ss:$16 sps:$4 sm:$0xff]  }
 0x114   : > { %2092 = vmatprep.subr.bf16.mxu1 %v7102_v45  ;;  %v7168_v25 = vld [vmem:[#allocation8 + $0x444] ss:$16 sps:$4 sm:$0xff]   ;;  %v7166_v27 = vld [vmem:[#allocation8 + $0x440] ss:$16 sps:$4 sm:$0xff]  }
 0x115   : > { %v7171_v26 = vld [vmem:[#allocation8 + $0x644] ss:$16 sps:$4 sm:$0xff]   ;;  %v7169_v28 = vld [vmem:[#allocation8 + $0x640] ss:$16 sps:$4 sm:$0xff]  }
 0x116   : > { %2050 = vmatpush2.bf16.msra.mxu0 %v7104_v46  ;;  %v7174_v29 = vld [vmem:[#allocation8 + $0x424] ss:$16 sps:$4 sm:$0xff]   ;;  %v7172_v31 = vld [vmem:[#allocation8 + $0x420] ss:$16 sps:$4 sm:$0xff]   ;;  %v7194_v46 = vld [vmem:[#allocation8 + $0xc8] ss:$16 sps:$4 sm:$0xff]  }
 0x117   : > { %2093 = vmatpush2.bf16.msra.mxu1 %v7105_v47  ;;  %2051 = vmatprep.subr.bf16.mxu0 %v7106_v48  ;;  %v7177_v30 = vld [vmem:[#allocation8 + $0x624] ss:$16 sps:$4 sm:$0xff]   ;;  %v7175_v32 = vld [vmem:[#allocation8 + $0x620] ss:$16 sps:$4 sm:$0xff]   ;;  %v7202_v48 = vld [vmem:[#allocation8 + $0xac] ss:$16 sps:$4 sm:$0xff]  }
 0x118   : > { %2094 = vmatprep.subr.bf16.mxu1 %v7108_v50  ;;  %v7180_v33 = vld [vmem:[#allocation8 + $0x404] ss:$16 sps:$4 sm:$0xff]   ;;  %v7178_v36 = vld [vmem:[#allocation8 + $0x400] ss:$16 sps:$4 sm:$0xff]  }
 0x119   : > { %v7183_v34 = vld [vmem:[#allocation8 + $0x604] ss:$16 sps:$4 sm:$0xff]   ;;  %v7181_v37 = vld [vmem:[#allocation8 + $0x600] ss:$16 sps:$4 sm:$0xff]  }
 0x11a   : > { %2052 = vmatpush2.bf16.msra.mxu0 %v7110_v52  ;;  %v7186_v38 = vld [vmem:[#allocation8 + $0x5e4] ss:$16 sps:$4 sm:$0xff]   ;;  %v7184_v40 = vld [vmem:[#allocation8 + $0x5e0] ss:$16 sps:$4 sm:$0xff]   ;;  %v7200_v52 = vld [vmem:[#allocation8 + $0xa8] ss:$16 sps:$4 sm:$0xff]  }
 0x11b   : > { %2095 = vmatpush2.bf16.msra.mxu1 %v7111_v53  ;;  %2053 = vmatprep.subr.bf16.mxu0 %v7112_v54  ;;  %v7187_v41 = vld [vmem:[%s8736_s25 + $0x18] ss:$28 sps:$4 sm:$0xff]  }
 0x11c   : > { %2096 = vmatprep.subr.bf16.mxu1 %v7114_v55  ;;  %v7193_v43 = vld [vmem:[#allocation8 + $0x5c4] ss:$16 sps:$4 sm:$0xff]   ;;  %v7191_v45 = vld [vmem:[#allocation8 + $0x5c0] ss:$16 sps:$4 sm:$0xff]   ;;  %v7208_v54 = vld [vmem:[#allocation8 + $0x8c] ss:$16 sps:$4 sm:$0xff]  }
 0x11d   : > { %v7199_v47 = vld [vmem:[#allocation8 + $0x5a4] ss:$16 sps:$4 sm:$0xff]   ;;  %v7197_v50 = vld [vmem:[#allocation8 + $0x5a0] ss:$16 sps:$4 sm:$0xff]  }
 0x11e   : > { %2054 = vmatpush2.bf16.msra.mxu0 %v7116_v56  ;;  %v7205_v53 = vld [vmem:[#allocation8 + $0x584] ss:$16 sps:$4 sm:$0xff]   ;;  %v7203_v55 = vld [vmem:[#allocation8 + $0x580] ss:$16 sps:$4 sm:$0xff]   ;;  %v7206_v56 = vld [vmem:[#allocation8 + $0x88] ss:$16 sps:$4 sm:$0xff]  }
 0x11f   : > { %2097 = vmatpush2.bf16.msra.mxu1 %v7117_v57  ;;  %2055 = vmatprep.subr.bf16.mxu0 %v7118_v58  ;;  %v7211_v57 = vld [vmem:[#allocation8 + $0x564] ss:$16 sps:$4 sm:$0xff]   ;;  %v7214_v58 = vld [vmem:[#allocation8 + $0x6c] ss:$16 sps:$4 sm:$0xff]  }
 0x120   : > { %2098 = vmatprep.subr.bf16.mxu1 %v7120_v59  ;;  %v7209_v59 = vld [vmem:[#allocation8 + $0x560] ss:$16 sps:$4 sm:$0xff]  }
 0x122   : > { %2056 = vmatpush2.bf16.msra.mxu0 %v7122_v60  ;;  %v7217_v60 = vld [vmem:[#allocation8 + $0x544] ss:$16 sps:$4 sm:$0xff]  }
 0x123   : > { %2099 = vmatpush2.bf16.msra.mxu1 %v7123_v61  ;;  %2057 = vmatprep.subr.bf16.mxu0 %v7124_v62  ;;  %v7220_v61 = vld [vmem:[#allocation8 + $0x4c] ss:$16 sps:$4 sm:$0xff]   ;;  %v7215_v62 = vld [vmem:[#allocation8 + $0x540] ss:$16 sps:$4 sm:$0xff]  }
 0x124   : > { %2100 = vmatprep.subr.bf16.mxu1 %v7126_v63  ;;  %v7218_v63 = vld [vmem:[#allocation8 + $0x48] ss:$16 sps:$4 sm:$0xff]  }
 0x126   : > { %2058 = vmatpush2.bf16.msra.mxu0 %v7128_v0  ;;  %v7223_v0 = vld [vmem:[#allocation8 + $0x524] ss:$16 sps:$4 sm:$0xff]  }
 0x127   : > { %2101 = vmatpush2.bf16.msra.mxu1 %v7129_v1  ;;  %2113 = vmatprep.subr.bf16.mxu0 %v7138_v2  ;;  %v7226_v1 = vld [vmem:[#allocation8 + $0x2c] ss:$16 sps:$4 sm:$0xff]   ;;  %v7221_v2 = vld [vmem:[#allocation8 + $0x520] ss:$16 sps:$4 sm:$0xff]  }
 0x128   : > { %2156 = vmatprep.subr.bf16.mxu1 %v7141_v3  ;;  %v7224_v3 = vld [vmem:[#allocation8 + $0x28] ss:$16 sps:$4 sm:$0xff]  }
 0x129   : > { %2060 = vmatmul.mubr.bf16.vlgmr.msra.gmra.mxu0 %v8779_v4 }
 0x12a   : > { %2103 = vmatmul.mubr.bf16.vlgmr.msra.gmra.mxu1 %v7133_v5  ;;  %2114 = vmatpush1.bf16.msra.mxu0 %v7136_v6  ;;  %v7229_v5 = vld [vmem:[#allocation8 + $0x504] ss:$16 sps:$4 sm:$0xff]   ;;  %v7232_v6 = vld [vmem:[#allocation8 + $0xc] ss:$16 sps:$4 sm:$0xff]  }
 0x12b   : > { %2157 = vmatpush1.bf16.msra.mxu1 %v7139_v7  ;;  %2115 = vmatprep.subr.bf16.mxu0 %v7144_v8  ;;  %v7227_v7 = vld [vmem:[#allocation8 + $0x500] ss:$16 sps:$4 sm:$0xff]   ;;  %v7230_v8 = vld [vmem:[#allocation8 + $0x8] ss:$16 sps:$4 sm:$0xff]  }
 0x12c   : > { %2158 = vmatprep.subr.bf16.mxu1 %v7147_v9  ;;  %2188 = vmatprep.mubr.bf16.mxu1 %v8399_v14  ;;  %v7238_v9 = vld [vmem:[#allocation8 + $0x1ec] ss:$16 sps:$4 sm:$0xff]  }
 0x12d   : > { %2145 = vmatprep.mubr.bf16.mxu0 %v8785_v35 }
 0x12e   : > { %2116 = vmatpush1.bf16.msra.mxu0 %v7142_v10  ;;  %v7241_v10 = vld [vmem:[#allocation8 + $0x2ec] ss:$16 sps:$4 sm:$0xff]  }
 0x12f   : > { %2159 = vmatpush1.bf16.msra.mxu1 %v7145_v11  ;;  %2117 = vmatprep.subr.bf16.mxu0 %v7150_v12  ;;  %v8791_v11 = vld [vmem:[%s8736_s25 + $0x10] ss:$28 sps:$4 sm:$0xff]  }
 0x130   : > { %2160 = vmatprep.subr.bf16.mxu1 %v7153_v13  ;;  %v7236_v12 = vld [vmem:[#allocation8 + $0x1e8] ss:$16 sps:$4 sm:$0xff]  }
 0x131   : > { %v7239_v13 = vld [vmem:[#allocation8 + $0x2e8] ss:$16 sps:$4 sm:$0xff]  }
 0x132   : > { %2118 = vmatpush1.bf16.msra.mxu0 %v7148_v15  ;;  %v7244_v15 = vld [vmem:[#allocation8 + $0x1cc] ss:$16 sps:$4 sm:$0xff]  }
 0x133   : > { %2161 = vmatpush1.bf16.msra.mxu1 %v7151_v16  ;;  %2119 = vmatprep.subr.bf16.mxu0 %v7156_v17  ;;  %v7247_v16 = vld [vmem:[#allocation8 + $0x2cc] ss:$16 sps:$4 sm:$0xff]   ;;  %v7242_v17 = vld [vmem:[#allocation8 + $0x1c8] ss:$16 sps:$4 sm:$0xff]  }
 0x134   : > { %2162 = vmatprep.subr.bf16.mxu1 %v7159_v18  ;;  %v7245_v18 = vld [vmem:[#allocation8 + $0x2c8] ss:$16 sps:$4 sm:$0xff]  }
 0x136   : > { %2120 = vmatpush1.bf16.msra.mxu0 %v7154_v19  ;;  %v7250_v19 = vld [vmem:[#allocation8 + $0x1ac] ss:$16 sps:$4 sm:$0xff]  }
 0x137   : > { %2163 = vmatpush1.bf16.msra.mxu1 %v7157_v20  ;;  %2121 = vmatprep.subr.bf16.mxu0 %v7162_v21  ;;  %v7253_v20 = vld [vmem:[#allocation8 + $0x2ac] ss:$16 sps:$4 sm:$0xff]   ;;  %v7248_v21 = vld [vmem:[#allocation8 + $0x1a8] ss:$16 sps:$4 sm:$0xff]  }
 0x138   : > { %2164 = vmatprep.subr.bf16.mxu1 %v7165_v22  ;;  %v7251_v22 = vld [vmem:[#allocation8 + $0x2a8] ss:$16 sps:$4 sm:$0xff]  }
 0x13a   : > { %2122 = vmatpush1.bf16.msra.mxu0 %v7160_v23  ;;  %v7256_v23 = vld [vmem:[#allocation8 + $0x18c] ss:$16 sps:$4 sm:$0xff]  }
 0x13b   : > { %2165 = vmatpush1.bf16.msra.mxu1 %v7163_v24  ;;  %2123 = vmatprep.subr.bf16.mxu0 %v7168_v25  ;;  %v7259_v24 = vld [vmem:[#allocation8 + $0x28c] ss:$16 sps:$4 sm:$0xff]   ;;  %v7254_v25 = vld [vmem:[#allocation8 + $0x188] ss:$16 sps:$4 sm:$0xff]  }
 0x13c   : > { %2166 = vmatprep.subr.bf16.mxu1 %v7171_v26  ;;  %v7257_v26 = vld [vmem:[#allocation8 + $0x288] ss:$16 sps:$4 sm:$0xff]  }
 0x13e   : > { %2124 = vmatpush1.bf16.msra.mxu0 %v7166_v27  ;;  %v7262_v27 = vld [vmem:[#allocation8 + $0x16c] ss:$16 sps:$4 sm:$0xff]  }
 0x13f   : > { %2167 = vmatpush1.bf16.msra.mxu1 %v7169_v28  ;;  %2125 = vmatprep.subr.bf16.mxu0 %v7174_v29  ;;  %v7265_v28 = vld [vmem:[#allocation8 + $0x26c] ss:$16 sps:$4 sm:$0xff]   ;;  %v7260_v29 = vld [vmem:[#allocation8 + $0x168] ss:$16 sps:$4 sm:$0xff]  }
 0x140   : > { %2168 = vmatprep.subr.bf16.mxu1 %v7177_v30  ;;  %v7268_v30 = vld [vmem:[#allocation8 + $0x14c] ss:$16 sps:$4 sm:$0xff]  }
 0x142   : > { %2126 = vmatpush1.bf16.msra.mxu0 %v7172_v31  ;;  %v7271_v31 = vld [vmem:[#allocation8 + $0x24c] ss:$16 sps:$4 sm:$0xff]  }
 0x143   : > { %2169 = vmatpush1.bf16.msra.mxu1 %v7175_v32  ;;  %2127 = vmatprep.subr.bf16.mxu0 %v7180_v33  ;;  %v7266_v32 = vld [vmem:[#allocation8 + $0x148] ss:$16 sps:$4 sm:$0xff]  }
 0x144   : > { %2170 = vmatprep.subr.bf16.mxu1 %v7183_v34  ;;  %v7269_v33 = vld [vmem:[#allocation8 + $0x248] ss:$16 sps:$4 sm:$0xff]   ;;  %v7274_v34 = vld [vmem:[#allocation8 + $0x12c] ss:$16 sps:$4 sm:$0xff]  }
 0x146   : > { %2128 = vmatpush1.bf16.msra.mxu0 %v7178_v36  ;;  %v7277_v36 = vld [vmem:[#allocation8 + $0x22c] ss:$16 sps:$4 sm:$0xff]  }
 0x147   : > { %2171 = vmatpush1.bf16.msra.mxu1 %v7181_v37  ;;  %2129 = vmatprep.subr.bf16.mxu0 %v7186_v38  ;;  %v7272_v37 = vld [vmem:[#allocation8 + $0x128] ss:$16 sps:$4 sm:$0xff]  }
 0x148   : > { %2199 = vmatprep.subr.bf16.mxu1 %v7190_v39  ;;  %v7275_v38 = vld [vmem:[#allocation8 + $0x228] ss:$16 sps:$4 sm:$0xff]   ;;  %v7280_v39 = vld [vmem:[#allocation8 + $0x10c] ss:$16 sps:$4 sm:$0xff]  }
 0x14a   : > { %2189 = vmatmul.mubr.bf16.vlgmr.msra.gmra.mxu1 %v7187_v41  ;;  %2130 = vmatpush2.bf16.msra.mxu0 %v7184_v40  ;;  %v7283_v40 = vld [vmem:[#allocation8 + $0x20c] ss:$16 sps:$4 sm:$0xff]   ;;  %v7278_v41 = vld [vmem:[#allocation8 + $0x108] ss:$16 sps:$4 sm:$0xff]  }
 0x14b   : > { %2200 = vmatpush1.bf16.msra.mxu1 %v7188_v42  ;;  %2131 = vmatprep.subr.bf16.mxu0 %v7193_v43  ;;  %v7281_v42 = vld [vmem:[#allocation8 + $0x208] ss:$16 sps:$4 sm:$0xff]   ;;  %v7286_v43 = vld [vmem:[#allocation8 + $0x3ec] ss:$16 sps:$4 sm:$0xff]  }
 0x14c   : > { %2201 = vmatprep.subr.bf16.mxu1 %v7196_v44  ;;  %2231 = vmatprep.mubr.bf16.mxu1 %v8771_v49  ;;  %v7212_v49 = vld [vmem:[#allocation8 + $0x68] ss:$16 sps:$4 sm:$0xff]   ;;  %v7289_v44 = vld [vmem:[#allocation8 + $0x4ec] ss:$16 sps:$4 sm:$0xff]  }
 0x14e   : > { %2132 = vmatpush2.bf16.msra.mxu0 %v7191_v45  ;;  %v7284_v45 = vld [vmem:[#allocation8 + $0x3e8] ss:$16 sps:$4 sm:$0xff]  }
 0x14f   : > { %2202 = vmatpush1.bf16.msra.mxu1 %v7194_v46  ;;  %2133 = vmatprep.subr.bf16.mxu0 %v7199_v47  ;;  %v7287_v46 = vld [vmem:[#allocation8 + $0x4e8] ss:$16 sps:$4 sm:$0xff]   ;;  %v7292_v47 = vld [vmem:[#allocation8 + $0x3cc] ss:$16 sps:$4 sm:$0xff]  }
 0x150   : > { %2203 = vmatprep.subr.bf16.mxu1 %v7202_v48  ;;  %v7295_v48 = vld [vmem:[#allocation8 + $0x4cc] ss:$16 sps:$4 sm:$0xff]  }
 0x152   : > { %2134 = vmatpush2.bf16.msra.mxu0 %v7197_v50  ;;  %v7290_v50 = vld [vmem:[#allocation8 + $0x3c8] ss:$16 sps:$4 sm:$0xff]  }
 0x153   : > { %2204 = vmatpush1.bf16.msra.mxu1 %v7200_v52  ;;  %2135 = vmatprep.subr.bf16.mxu0 %v7205_v53  ;;  %v7293_v52 = vld [vmem:[#allocation8 + $0x4c8] ss:$16 sps:$4 sm:$0xff]   ;;  %v7298_v53 = vld [vmem:[#allocation8 + $0x3ac] ss:$16 sps:$4 sm:$0xff]  }
 0x154   : > { %2205 = vmatprep.subr.bf16.mxu1 %v7208_v54  ;;  %v7301_v54 = vld [vmem:[#allocation8 + $0x4ac] ss:$16 sps:$4 sm:$0xff]  }
 0x156   : > { %2136 = vmatpush2.bf16.msra.mxu0 %v7203_v55  ;;  %v7296_v55 = vld [vmem:[#allocation8 + $0x3a8] ss:$16 sps:$4 sm:$0xff]  }
 0x157   : > { %2206 = vmatpush1.bf16.msra.mxu1 %v7206_v56  ;;  %2137 = vmatprep.subr.bf16.mxu0 %v7211_v57  ;;  %v7299_v56 = vld [vmem:[#allocation8 + $0x4a8] ss:$16 sps:$4 sm:$0xff]   ;;  %v7304_v57 = vld [vmem:[#allocation8 + $0x38c] ss:$16 sps:$4 sm:$0xff]  }
 0x158   : > { %2207 = vmatprep.subr.bf16.mxu1 %v7214_v58  ;;  %v7307_v58 = vld [vmem:[#allocation8 + $0x48c] ss:$16 sps:$4 sm:$0xff]  }
 0x15a   : > { %2138 = vmatpush2.bf16.msra.mxu0 %v7209_v59  ;;  %v7302_v59 = vld [vmem:[#allocation8 + $0x388] ss:$16 sps:$4 sm:$0xff]  }
 0x15b   : > { %2208 = vmatpush1.bf16.msra.mxu1 %v7212_v49  ;;  %2139 = vmatprep.subr.bf16.mxu0 %v7217_v60  ;;  %v7310_v49 = vld [vmem:[#allocation8 + $0x36c] ss:$16 sps:$4 sm:$0xff]  }
 0x15c   : > { %2209 = vmatprep.subr.bf16.mxu1 %v7220_v61  ;;  %v7313_v60 = vld [vmem:[#allocation8 + $0x46c] ss:$16 sps:$4 sm:$0xff]   ;;  %v7308_v61 = vld [vmem:[#allocation8 + $0x368] ss:$16 sps:$4 sm:$0xff]  }
 0x15e   : > { %2140 = vmatpush2.bf16.msra.mxu0 %v7215_v62  ;;  %v7311_v62 = vld [vmem:[#allocation8 + $0x468] ss:$16 sps:$4 sm:$0xff]  }
 0x15f   : > { %2210 = vmatpush1.bf16.msra.mxu1 %v7218_v63  ;;  %2141 = vmatprep.subr.bf16.mxu0 %v7223_v0  ;;  %v7316_v63 = vld [vmem:[#allocation8 + $0x34c] ss:$16 sps:$4 sm:$0xff]  }
 0x160   : > { %2211 = vmatprep.subr.bf16.mxu1 %v7226_v1  ;;  %v7319_v0 = vld [vmem:[#allocation8 + $0x44c] ss:$16 sps:$4 sm:$0xff]   ;;  %v7317_v1 = vld [vmem:[#allocation8 + $0x448] ss:$16 sps:$4 sm:$0xff]  }
 0x162   : > { %2142 = vmatpush2.bf16.msra.mxu0 %v7221_v2  ;;  %v7322_v2 = vld [vmem:[#allocation8 + $0x32c] ss:$16 sps:$4 sm:$0xff]  }
 0x163   : > { %2212 = vmatpush1.bf16.msra.mxu1 %v7224_v3  ;;  %2143 = vmatprep.subr.bf16.mxu0 %v7229_v5  ;;  %v7325_v3 = vld [vmem:[#allocation8 + $0x42c] ss:$16 sps:$4 sm:$0xff]   ;;  %v7320_v5 = vld [vmem:[#allocation8 + $0x328] ss:$16 sps:$4 sm:$0xff]  }
 0x164   : > { %2213 = vmatprep.subr.bf16.mxu1 %v7232_v6  ;;  %v7323_v6 = vld [vmem:[#allocation8 + $0x428] ss:$16 sps:$4 sm:$0xff]  }
 0x166   : > { %2144 = vmatpush2.bf16.msra.mxu0 %v7227_v7  ;;  %v7328_v7 = vld [vmem:[#allocation8 + $0x30c] ss:$16 sps:$4 sm:$0xff]  }
 0x167   : > { %2214 = vmatpush1.bf16.msra.mxu1 %v7230_v8  ;;  %2242 = vmatprep.subr.bf16.mxu0 %v7241_v10  ;;  %v7331_v8 = vld [vmem:[#allocation8 + $0x40c] ss:$16 sps:$4 sm:$0xff]   ;;  %v7329_v10 = vld [vmem:[#allocation8 + $0x408] ss:$16 sps:$4 sm:$0xff]  }
 0x168   : > { %2215 = vmatprep.subr.bf16.mxu1 %v7238_v9  ;;  %v7326_v9 = vld [vmem:[#allocation8 + $0x308] ss:$16 sps:$4 sm:$0xff]  }
 0x169   : > { %2146 = vmatmul.mubr.bf16.vlgmr.msra.gmra.mxu0 %v8791_v11 }
 0x16a   : > { %2243 = vmatpush1.bf16.msra.mxu0 %v7239_v13  ;;  %2274 = vmatprep.mubr.bf16.mxu0 %v8774_v51  ;;  %v7263_v51 = vld [vmem:[#allocation8 + $0x268] ss:$16 sps:$4 sm:$0xff]   ;;  %v7337_v13 = vld [vmem:[#allocation8 + $0x6ec] ss:$16 sps:$4 sm:$0xff]  }
 0x16b   : > { %2216 = vmatpush2.bf16.msra.mxu1 %v7236_v12  ;;  %2244 = vmatprep.subr.bf16.mxu0 %v7247_v16  ;;  %v7334_v12 = vld [vmem:[#allocation8 + $0x5ec] ss:$16 sps:$4 sm:$0xff]   ;;  %v7335_v16 = vld [vmem:[#allocation8 + $0x6e8] ss:$16 sps:$4 sm:$0xff]  }
 0x16c   : > { %2217 = vmatprep.subr.bf16.mxu1 %v7244_v15  ;;  %v7332_v15 = vld [vmem:[#allocation8 + $0x5e8] ss:$16 sps:$4 sm:$0xff]  }
 0x16e   : > { %2245 = vmatpush1.bf16.msra.mxu0 %v7245_v18  ;;  %v7343_v18 = vld [vmem:[#allocation8 + $0x6cc] ss:$16 sps:$4 sm:$0xff]  }
 0x16f   : > { %2218 = vmatpush2.bf16.msra.mxu1 %v7242_v17  ;;  %2246 = vmatprep.subr.bf16.mxu0 %v7253_v20  ;;  %v7340_v17 = vld [vmem:[#allocation8 + $0x5cc] ss:$16 sps:$4 sm:$0xff]   ;;  %v7341_v20 = vld [vmem:[#allocation8 + $0x6c8] ss:$16 sps:$4 sm:$0xff]  }
 0x170   : > { %2219 = vmatprep.subr.bf16.mxu1 %v7250_v19  ;;  %v7338_v19 = vld [vmem:[#allocation8 + $0x5c8] ss:$16 sps:$4 sm:$0xff]  }
 0x172   : > { %2247 = vmatpush1.bf16.msra.mxu0 %v7251_v22  ;;  %v7346_v22 = vld [vmem:[#allocation8 + $0x5ac] ss:$16 sps:$4 sm:$0xff]  }
 0x173   : > { %2220 = vmatpush2.bf16.msra.mxu1 %v7248_v21  ;;  %2248 = vmatprep.subr.bf16.mxu0 %v7259_v24  ;;  %v7968_v21 = vld [vmem:[%s8736_s25 + $0x8] ss:$28 sps:$4 sm:$0xff]  }
 0x174   : > { %2221 = vmatprep.subr.bf16.mxu1 %v7256_v23  ;;  %v7349_v23 = vld [vmem:[#allocation8 + $0x6ac] ss:$16 sps:$4 sm:$0xff]   ;;  %v7344_v24 = vld [vmem:[#allocation8 + $0x5a8] ss:$16 sps:$4 sm:$0xff]  }
 0x176   : > { %2249 = vmatpush1.bf16.msra.mxu0 %v7257_v26  ;;  %v7352_v26 = vld [vmem:[#allocation8 + $0x58c] ss:$16 sps:$4 sm:$0xff]  }
 0x177   : > { %2222 = vmatpush2.bf16.msra.mxu1 %v7254_v25  ;;  %2250 = vmatprep.subr.bf16.mxu0 %v7265_v28  ;;  %v7347_v25 = vld [vmem:[#allocation8 + $0x6a8] ss:$16 sps:$4 sm:$0xff]  }
 0x178   : > { %2223 = vmatprep.subr.bf16.mxu1 %v7262_v27  ;;  %v7355_v27 = vld [vmem:[#allocation8 + $0x68c] ss:$16 sps:$4 sm:$0xff]   ;;  %v7350_v28 = vld [vmem:[#allocation8 + $0x588] ss:$16 sps:$4 sm:$0xff]  }
 0x17a   : > { %2251 = vmatpush1.bf16.msra.mxu0 %v7263_v51  ;;  %v7358_v51 = vld [vmem:[#allocation8 + $0x56c] ss:$16 sps:$4 sm:$0xff]  }
 0x17b   : > { %2224 = vmatpush2.bf16.msra.mxu1 %v7260_v29  ;;  %2252 = vmatprep.subr.bf16.mxu0 %v7271_v31  ;;  %v7353_v29 = vld [vmem:[#allocation8 + $0x688] ss:$16 sps:$4 sm:$0xff]  }
 0x17c   : > { %2225 = vmatprep.subr.bf16.mxu1 %v7268_v30  ;;  %v7361_v30 = vld [vmem:[#allocation8 + $0x66c] ss:$16 sps:$4 sm:$0xff]   ;;  %v7356_v31 = vld [vmem:[#allocation8 + $0x568] ss:$16 sps:$4 sm:$0xff]  }
 0x17e   : > { %2253 = vmatpush1.bf16.msra.mxu0 %v7269_v33  ;;  %v7364_v33 = vld [vmem:[#allocation8 + $0x54c] ss:$16 sps:$4 sm:$0xff]  }
 0x17f   : > { %2226 = vmatpush2.bf16.msra.mxu1 %v7266_v32  ;;  %2254 = vmatprep.subr.bf16.mxu0 %v7277_v36  ;;  %v7359_v32 = vld [vmem:[#allocation8 + $0x668] ss:$16 sps:$4 sm:$0xff]  }
 0x180   : > { %2227 = vmatprep.subr.bf16.mxu1 %v7274_v34  ;;  %v7367_v34 = vld [vmem:[#allocation8 + $0x64c] ss:$16 sps:$4 sm:$0xff]   ;;  %v7362_v36 = vld [vmem:[#allocation8 + $0x548] ss:$16 sps:$4 sm:$0xff]  }
 0x182   : > { %2255 = vmatpush1.bf16.msra.mxu0 %v7275_v38  ;;  %v7370_v38 = vld [vmem:[#allocation8 + $0x52c] ss:$16 sps:$4 sm:$0xff]  }
 0x183   : > { %2228 = vmatpush2.bf16.msra.mxu1 %v7272_v37  ;;  %2256 = vmatprep.subr.bf16.mxu0 %v7283_v40  ;;  %v7365_v37 = vld [vmem:[#allocation8 + $0x648] ss:$16 sps:$4 sm:$0xff]  }
 0x184   : > { %2229 = vmatprep.subr.bf16.mxu1 %v7280_v39  ;;  %v7373_v39 = vld [vmem:[#allocation8 + $0x62c] ss:$16 sps:$4 sm:$0xff]   ;;  %v7368_v40 = vld [vmem:[#allocation8 + $0x528] ss:$16 sps:$4 sm:$0xff]  }
 0x186   : > { %2257 = vmatpush1.bf16.msra.mxu0 %v7281_v42  ;;  %v7376_v42 = vld [vmem:[#allocation8 + $0x50c] ss:$16 sps:$4 sm:$0xff]  }
 0x187   : > { %2230 = vmatpush2.bf16.msra.mxu1 %v7278_v41  ;;  %2258 = vmatprep.subr.bf16.mxu0 %v7286_v43  ;;  %v7371_v41 = vld [vmem:[#allocation8 + $0x628] ss:$16 sps:$4 sm:$0xff]   ;;  %v7379_v43 = vld [vmem:[#allocation8 + $0x60c] ss:$16 sps:$4 sm:$0xff]  }
 0x188   : > { %2285 = vmatprep.subr.bf16.mxu1 %v7289_v44  ;;  %v7374_v44 = vld [vmem:[#allocation8 + $0x508] ss:$16 sps:$4 sm:$0xff]  }
 0x18a   : > { %2232 = vmatmul.mubr.bf16.vlgmr.msra.gmra.mxu1 %v8779_v4  ;;  %2259 = vmatpush2.bf16.msra.mxu0 %v7284_v45  ;;  %v7305_v4 = vld [vmem:[#allocation8 + $0x488] ss:$16 sps:$4 sm:$0xff]  }
 0x18b   : > { %2286 = vmatpush1.bf16.msra.mxu1 %v7287_v46  ;;  %2260 = vmatprep.subr.bf16.mxu0 %v7292_v47  ;;  %v7377_v45 = vld [vmem:[#allocation8 + $0x608] ss:$16 sps:$4 sm:$0xff]   ;;  %v7382_v46 = vld [vmem:[#allocation10 + $0x74] ss:$8 sps:$4 sm:$0xff]  }
 0x18c   : > { %2287 = vmatprep.subr.bf16.mxu1 %v7295_v48  ;;  %2317 = vmatprep.mubr.bf16.mxu1 %v8785_v35  ;;  %v7314_v35 = vld [vmem:[#allocation8 + $0x348] ss:$16 sps:$4 sm:$0xff]   ;;  %v7385_v48 = vld [vmem:[#allocation10 + $0x64] ss:$8 sps:$4 sm:$0xff]  }
 0x18d   : > { %v7380_v47 = vld [vmem:[#allocation10 + $0x70] ss:$8 sps:$4 sm:$0xff]  }
 0x18e   : > { %2261 = vmatpush2.bf16.msra.mxu0 %v7290_v50  ;;  %v7383_v50 = vld [vmem:[#allocation10 + $0x60] ss:$8 sps:$4 sm:$0xff]  }
 0x18f   : > { %2288 = vmatpush1.bf16.msra.mxu1 %v7293_v52  ;;  %2262 = vmatprep.subr.bf16.mxu0 %v7298_v53  ;;  %v7969_v52 = vld [vmem:[%s8736_s25 + $0x18] ss:$28 sps:$4 sm:$0xff]   ;;  %v7388_v53 = vld [vmem:[#allocation10 + $0x54] ss:$8 sps:$4 sm:$0xff]  }
 0x190   : > { %2289 = vmatprep.subr.bf16.mxu1 %v7301_v54  ;;  %v7386_v54 = vld [vmem:[#allocation10 + $0x50] ss:$8 sps:$4 sm:$0xff]  }
 0x192   : > { %2263 = vmatpush2.bf16.msra.mxu0 %v7296_v55  ;;  %v7391_v55 = vld [vmem:[#allocation10 + $0x44] ss:$8 sps:$4 sm:$0xff]  }
 0x193   : > { %2290 = vmatpush1.bf16.msra.mxu1 %v7299_v56  ;;  %2264 = vmatprep.subr.bf16.mxu0 %v7304_v57  ;;  %v7428_v56 = vld [vmem:[#allocation10 + $0x170] ss:$8 sps:$4 sm:$0xff]   ;;  %v7430_v57 = vld [vmem:[#allocation10 + $0x174] ss:$8 sps:$4 sm:$0xff]  }
 0x194   : > { %2291 = vmatprep.subr.bf16.mxu1 %v7307_v58  ;;  %v7389_v58 = vld [vmem:[#allocation10 + $0x40] ss:$8 sps:$4 sm:$0xff]  }
 0x196   : > { %2265 = vmatpush2.bf16.msra.mxu0 %v7302_v59  ;;  %v7394_v59 = vld [vmem:[#allocation10 + $0x34] ss:$8 sps:$4 sm:$0xff]  }
 0x197   : > { %2292 = vmatpush1.bf16.msra.mxu1 %v7305_v4  ;;  %2266 = vmatprep.subr.bf16.mxu0 %v7310_v49  ;;  %v7433_v4 = vld [vmem:[#allocation10 + $0x164] ss:$8 sps:$4 sm:$0xff]   ;;  %v7431_v49 = vld [vmem:[#allocation10 + $0x160] ss:$8 sps:$4 sm:$0xff]  }
 0x198   : > { %2293 = vmatprep.subr.bf16.mxu1 %v7313_v60  ;;  %v7436_v60 = vld [vmem:[#allocation10 + $0x154] ss:$8 sps:$4 sm:$0xff]  }
 0x19a   : > { %2267 = vmatpush2.bf16.msra.mxu0 %v7308_v61  ;;  %v7397_v61 = vld [vmem:[#allocation10 + $0x24] ss:$8 sps:$4 sm:$0xff]  }
 0x19b   : > { %2294 = vmatpush1.bf16.msra.mxu1 %v7311_v62  ;;  %2268 = vmatprep.subr.bf16.mxu0 %v7316_v63  ;;  %v7434_v62 = vld [vmem:[#allocation10 + $0x150] ss:$8 sps:$4 sm:$0xff]   ;;  %v7439_v63 = vld [vmem:[#allocation10 + $0x144] ss:$8 sps:$4 sm:$0xff]  }
 0x19c   : > { %2295 = vmatprep.subr.bf16.mxu1 %v7319_v0  ;;  %v7395_v0 = vld [vmem:[#allocation10 + $0x20] ss:$8 sps:$4 sm:$0xff]  }
 0x19e   : > { %2269 = vmatpush2.bf16.msra.mxu0 %v7314_v35  ;;  %v7400_v35 = vld [vmem:[#allocation10 + $0x14] ss:$8 sps:$4 sm:$0xff]  }
 0x19f   : > { %2296 = vmatpush1.bf16.msra.mxu1 %v7317_v1  ;;  %2270 = vmatprep.subr.bf16.mxu0 %v7322_v2  ;;  %v7437_v1 = vld [vmem:[#allocation10 + $0x140] ss:$8 sps:$4 sm:$0xff]   ;;  %v7398_v2 = vld [vmem:[#allocation10 + $0x10] ss:$8 sps:$4 sm:$0xff]  }
 0x1a0   : > { %2297 = vmatprep.subr.bf16.mxu1 %v7325_v3  ;;  %v7403_v3 = vld [vmem:[#allocation10 + $0x4] ss:$8 sps:$4 sm:$0xff]  }
 0x1a2   : > { %2271 = vmatpush2.bf16.msra.mxu0 %v7320_v5  ;;  %v7401_v5 = vld [vmem:[#allocation10] ss:$8 sps:$4 sm:$0xff]  }
 0x1a3   : > { %2298 = vmatpush1.bf16.msra.mxu1 %v7323_v6  ;;  %2272 = vmatprep.subr.bf16.mxu0 %v7328_v7  ;;  %v7406_v6 = vld [vmem:[#allocation10 + $0xf4] ss:$8 sps:$4 sm:$0xff]   ;;  %v7404_v7 = vld [vmem:[#allocation10 + $0xf0] ss:$8 sps:$4 sm:$0xff]  }
 0x1a4   : > { %2299 = vmatprep.subr.bf16.mxu1 %v7331_v8  ;;  %v7409_v8 = vld [vmem:[#allocation10 + $0xe4] ss:$8 sps:$4 sm:$0xff]  }
 0x1a6   : > { %2273 = vmatpush2.bf16.msra.mxu0 %v7326_v9  ;;  %v7442_v9 = vld [vmem:[#allocation10 + $0x134] ss:$8 sps:$4 sm:$0xff]  }
 0x1a7   : > { %2300 = vmatpush1.bf16.msra.mxu1 %v7329_v10  ;;  %2328 = vmatprep.subr.bf16.mxu0 %v7337_v13  ;;  %v7407_v10 = vld [vmem:[#allocation10 + $0xe0] ss:$8 sps:$4 sm:$0xff]   ;;  %v7412_v13 = vld [vmem:[#allocation10 + $0xd4] ss:$8 sps:$4 sm:$0xff]  }
 0x1a8   : > { %2301 = vmatprep.subr.bf16.mxu1 %v7334_v12  ;;  %v7440_v12 = vld [vmem:[#allocation10 + $0x130] ss:$8 sps:$4 sm:$0xff]  }
 0x1a9   : > { %2275 = vmatmul.mubr.bf16.vlgmr.msra.gmra.mxu0 %v7968_v21  ;;  %v7451_v21 = vld [vmem:[#allocation10 + $0x104] ss:$8 sps:$4 sm:$0xff]  }
 0x1aa   : > { %2329 = vmatpush1.bf16.msra.mxu0 %v7335_v16  ;;  %2360 = vmatprep.mubr.bf16.mxu0 %v8399_v14  ;;  %v7410_v16 = vld [vmem:[#allocation10 + $0xd0] ss:$8 sps:$4 sm:$0xff]  }
 0x1ab   : > { %2302 = vmatpush2.bf16.msra.mxu1 %v7332_v15  ;;  %2330 = vmatprep.subr.bf16.mxu0 %v7343_v18  ;;  %v7445_v15 = vld [vmem:[#allocation10 + $0x124] ss:$8 sps:$4 sm:$0xff]  }
 0x1ac   : > { %2303 = vmatprep.subr.bf16.mxu1 %v7340_v17  ;;  %v7443_v17 = vld [vmem:[#allocation10 + $0x120] ss:$8 sps:$4 sm:$0xff]   ;;  %v7415_v18 = vld [vmem:[#allocation10 + $0xc4] ss:$8 sps:$4 sm:$0xff]  }
 0x1ae   : > { %2331 = vmatpush1.bf16.msra.mxu0 %v7341_v20  ;;  %v7446_v20 = vld [vmem:[#allocation10 + $0x110] ss:$8 sps:$4 sm:$0xff]  }
 0x1af   : > { %2304 = vmatpush2.bf16.msra.mxu1 %v7338_v19  ;;  %2332 = vmatprep.subr.bf16.mxu0 %v7349_v23  ;;  %v7448_v19 = vld [vmem:[#allocation10 + $0x114] ss:$8 sps:$4 sm:$0xff]   ;;  %v7449_v23 = vld [vmem:[#allocation10 + $0x100] ss:$8 sps:$4 sm:$0xff]  }
 0x1b0   : > { %2305 = vmatprep.subr.bf16.mxu1 %v7346_v22  ;;  %v7413_v22 = vld [vmem:[#allocation10 + $0xc0] ss:$8 sps:$4 sm:$0xff]  }
 0x1b2   : > { %2333 = vmatpush1.bf16.msra.mxu0 %v7347_v25  ;;  %v7454_v25 = vld [vmem:[#allocation10 + $0x1f4] ss:$8 sps:$4 sm:$0xff]  }
 0x1b3   : > { %2306 = vmatpush2.bf16.msra.mxu1 %v7344_v24  ;;  %2334 = vmatprep.subr.bf16.mxu0 %v7355_v27  ;;  %v7418_v24 = vld [vmem:[#allocation10 + $0xb4] ss:$8 sps:$4 sm:$0xff]   ;;  %v7452_v27 = vld [vmem:[#allocation10 + $0x1f0] ss:$8 sps:$4 sm:$0xff]  }
 0x1b4   : > { %2307 = vmatprep.subr.bf16.mxu1 %v7352_v26  ;;  %v7416_v26 = vld [vmem:[#allocation10 + $0xb0] ss:$8 sps:$4 sm:$0xff]  }
 0x1b6   : > { %2335 = vmatpush1.bf16.msra.mxu0 %v7353_v29  ;;  %v7457_v29 = vld [vmem:[#allocation10 + $0x1e4] ss:$8 sps:$4 sm:$0xff]  }
 0x1b7   : > { %2308 = vmatpush2.bf16.msra.mxu1 %v7350_v28  ;;  %2336 = vmatprep.subr.bf16.mxu0 %v7361_v30  ;;  %v7421_v28 = vld [vmem:[#allocation10 + $0xa4] ss:$8 sps:$4 sm:$0xff]   ;;  %v7455_v30 = vld [vmem:[#allocation10 + $0x1e0] ss:$8 sps:$4 sm:$0xff]  }
 0x1b8   : > { %2309 = vmatprep.subr.bf16.mxu1 %v7358_v51  ;;  %v7419_v51 = vld [vmem:[#allocation10 + $0xa0] ss:$8 sps:$4 sm:$0xff]  }
 0x1ba   : > { %2337 = vmatpush1.bf16.msra.mxu0 %v7359_v32  ;;  %v7460_v32 = vld [vmem:[#allocation10 + $0x1d4] ss:$8 sps:$4 sm:$0xff]  }
 0x1bb   : > { %2310 = vmatpush2.bf16.msra.mxu1 %v7356_v31  ;;  %2338 = vmatprep.subr.bf16.mxu0 %v7367_v34  ;;  %v7424_v31 = vld [vmem:[#allocation10 + $0x94] ss:$8 sps:$4 sm:$0xff]   ;;  %v7458_v34 = vld [vmem:[#allocation10 + $0x1d0] ss:$8 sps:$4 sm:$0xff]  }
 0x1bc   : > { %2311 = vmatprep.subr.bf16.mxu1 %v7364_v33  ;;  %v7422_v33 = vld [vmem:[#allocation10 + $0x90] ss:$8 sps:$4 sm:$0xff]  }
 0x1be   : > { %2339 = vmatpush1.bf16.msra.mxu0 %v7365_v37  ;;  %v7463_v37 = vld [vmem:[#allocation10 + $0x1c4] ss:$8 sps:$4 sm:$0xff]  }
 0x1bf   : > { %2312 = vmatpush2.bf16.msra.mxu1 %v7362_v36  ;;  %2340 = vmatprep.subr.bf16.mxu0 %v7373_v39  ;;  %v7427_v36 = vld [vmem:[#allocation10 + $0x84] ss:$8 sps:$4 sm:$0xff]   ;;  %v7461_v39 = vld [vmem:[#allocation10 + $0x1c0] ss:$8 sps:$4 sm:$0xff]  }
 0x1c0   : > { %2313 = vmatprep.subr.bf16.mxu1 %v7370_v38  ;;  %v7425_v38 = vld [vmem:[#allocation10 + $0x80] ss:$8 sps:$4 sm:$0xff]  }
 0x1c2   : > { %2341 = vmatpush1.bf16.msra.mxu0 %v7371_v41  ;;  %v7464_v41 = vld [vmem:[#allocation10 + $0x1b0] ss:$8 sps:$4 sm:$0xff]  }
 0x1c3   : > { %2314 = vmatpush2.bf16.msra.mxu1 %v7368_v40  ;;  %2342 = vmatprep.subr.bf16.mxu0 %v7379_v43  ;;  %v7466_v40 = vld [vmem:[#allocation10 + $0x1b4] ss:$8 sps:$4 sm:$0xff]   ;;  %v7467_v43 = vld [vmem:[#allocation10 + $0x1a0] ss:$8 sps:$4 sm:$0xff]  }
 0x1c4   : > { %2315 = vmatprep.subr.bf16.mxu1 %v7376_v42  ;;  %v7469_v42 = vld [vmem:[#allocation10 + $0x1a4] ss:$8 sps:$4 sm:$0xff]  }
 0x1c6   : > { %2343 = vmatpush1.bf16.msra.mxu0 %v7377_v45  ;;  %v7470_v45 = vld [vmem:[#allocation10 + $0x190] ss:$8 sps:$4 sm:$0xff]  }
 0x1c7   : > { %2316 = vmatpush2.bf16.msra.mxu1 %v7374_v44  ;;  %2780 = vmatprep.subr.bf16.mxu0 %v7382_v46  ;;  %v7472_v44 = vld [vmem:[#allocation10 + $0x194] ss:$8 sps:$4 sm:$0xff]   ;;  %v851_v46 = vlaneseq }
 0x1c8   : > { %2823 = vmatprep.subr.bf16.mxu1 %v7430_v57  ;;  %v849_v57 = vld [vmem:[#allocation7] ss:$8 sm:$0xf] }
 0x1c9   : > { %2361 = vmatmul.mubr.bf16.vlgmr.msra.gmra.mxu0 %v7969_v52 }
 0x1ca   : > { %2318 = vmatmul.mubr.bf16.vlgmr.msra.gmra.mxu1 %v8791_v11  ;;  %2781 = vmatpush1.bf16.msra.mxu0 %v7380_v47  ;;  %v7392_v11 = vld [vmem:[#allocation10 + $0x30] ss:$8 sps:$4 sm:$0xff]   ;;  %v7475_v47 = vld [vmem:[#allocation10 + $0x184] ss:$8 sps:$4 sm:$0xff]  }
 0x1cb   : > { %2782 = vmatprep.subr.bf16.mxu0 %v7385_v48  ;;  %2824 = vmatpush1.bf16.msra.mxu1 %v7428_v56  ;;  %v7473_v48 = vld [vmem:[#allocation10 + $0x180] ss:$8 sps:$4 sm:$0xff]  }
 0x1cc   : > { %2825 = vmatprep.subr.bf16.mxu1 %v7433_v4 }
 0x1ce   : > { %2783 = vmatpush1.bf16.msra.mxu0 %v7383_v50  ;;  %v8801_v50 = vshrl.u32 %v851_v46, 7 }
 0x1cf   : > { %2784 = vmatprep.subr.bf16.mxu0 %v7388_v53  ;;  %2826 = vmatpush1.bf16.msra.mxu1 %v7431_v49 }
 0x1d0   : > { %2827 = vmatprep.subr.bf16.mxu1 %v7436_v60  ;;  %v8804_v53 = vsub.s32 0, %v8801_v50 }
 0x1d2   : > { %2785 = vmatpush1.bf16.msra.mxu0 %v7386_v54  ;;  %v854_v49 = vrot.slane %v849_v57, %v8804_v53 }
 0x1d3   : > { %2786 = vmatprep.subr.bf16.mxu0 %v7391_v55  ;;  %2828 = vmatpush1.bf16.msra.mxu1 %v7434_v62  ;;  %v8807_v55 = vsub.s32 1, %v8801_v50 }
 0x1d4   : > { %2829 = vmatprep.subr.bf16.mxu1 %v7439_v63 }
 0x1d5   : > { %v858_v4 = vrot.slane %v849_v57, %v8807_v55 }
 0x1d6   : > { %2787 = vmatpush1.bf16.msra.mxu0 %v7389_v58 }
 0x1d7   : > { %2788 = vmatprep.subr.bf16.mxu0 %v7394_v59  ;;  %2830 = vmatpush1.bf16.msra.mxu1 %v7437_v1 }
 0x1d8   : > { %2831 = vmatprep.subr.bf16.mxu1 %v7442_v9 }
 0x1da   : > { %2789 = vmatpush1.bf16.msra.mxu0 %v7392_v11 }
 0x1db   : > { %2790 = vmatprep.subr.bf16.mxu0 %v7397_v61  ;;  %2832 = vmatpush1.bf16.msra.mxu1 %v7440_v12 }
 0x1dc   : > { %2833 = vmatprep.subr.bf16.mxu1 %v7445_v15 }
 0x1de   : > { %2791 = vmatpush1.bf16.msra.mxu0 %v7395_v0 }
 0x1df   : > { %2792 = vmatprep.subr.bf16.mxu0 %v7400_v35  ;;  %2834 = vmatpush1.bf16.msra.mxu1 %v7443_v17 }
 0x1e0   : > { %2835 = vmatprep.subr.bf16.mxu1 %v7448_v19 }
 0x1e2   : > { %2793 = vmatpush1.bf16.msra.mxu0 %v7398_v2 }
 0x1e3   : > { %2794 = vmatprep.subr.bf16.mxu0 %v7403_v3  ;;  %2836 = vmatpush1.bf16.msra.mxu1 %v7446_v20 }
 0x1e4   : > { %2837 = vmatprep.subr.bf16.mxu1 %v7451_v21 }
 0x1e6   : > { %2795 = vmatpush1.bf16.msra.mxu0 %v7401_v5 }
 0x1e7   : > { %2796 = vmatprep.subr.bf16.mxu0 %v7406_v6  ;;  %2838 = vmatpush1.bf16.msra.mxu1 %v7449_v23 }
 0x1e8   : > { %2839 = vmatprep.subr.bf16.mxu1 %v7454_v25 }
 0x1e9   : > { %v2061_v54 = vpop.f32.mrf.mxu0 }
 0x1ea   : > { %2797 = vmatpush2.bf16.msra.mxu0 %v7404_v7  ;;  %v2104_v52 = vpop.f32.mrf.mxu1  ;;  %v2062_v63 = vadd.f32 %v2061_v54, %v854_v49 }
 0x1eb   : > { %2798 = vmatprep.subr.bf16.mxu0 %v7409_v8  ;;  %2840 = vmatpush2.bf16.msra.mxu1 %v7452_v27  ;;  %v2063_v58 = vpop.f32.mrf.mxu0 }
 0x1ec   : > { %2841 = vmatprep.subr.bf16.mxu1 %v7457_v29  ;;  %v2106_v56 = vpop.f32.mrf.mxu1  ;;  %v2064_v62 = vadd.f32 %v2063_v58, %v858_v4  ;;  %v2105_v6 = vadd.f32 %v2104_v52, %v2062_v63  ;;  %v7482_v52 = vld [vmem:[#allocation11 + $0x60] sm:$0xff]  }
 0x1ed   : > { %v2065_v60 = vpop.f32.mrf.mxu0 }
 0x1ee   : > { %2799 = vmatpush2.bf16.msra.mxu0 %v7407_v10  ;;  %v2108_v59 = vpop.f32.mrf.mxu1  ;;  %v2066_v35 = vadd.f32 %v2065_v60, %v854_v49  ;;  %v2107_v3 = vadd.f32 %v2106_v56, %v2064_v62 }
 0x1ef   : > { %2800 = vmatprep.subr.bf16.mxu0 %v7412_v13  ;;  %2842 = vmatpush2.bf16.msra.mxu1 %v7455_v30  ;;  %v2067_v0 = vpop.f32.mrf.mxu0 }
 0x1f0   : > { %2843 = vmatprep.subr.bf16.mxu1 %v7460_v32  ;;  %v2110_v11 = vpop.f32.mrf.mxu1  ;;  %v2068_v5 = vadd.f32 %v2067_v0, %v858_v4  ;;  %v2109_v8 = vadd.f32 %v2108_v59, %v2066_v35  ;;  %v7484_v0 = vld [vmem:[#allocation11 + $0x58] sm:$0xff]  }
 0x1f2   : > { %2801 = vmatpush2.bf16.msra.mxu0 %v7410_v16  ;;  %v2111_v15 = vadd.f32 %v2110_v11, %v2068_v5 }
 0x1f3   : > { %2802 = vmatprep.subr.bf16.mxu0 %v7415_v18  ;;  %2844 = vmatpush2.bf16.msra.mxu1 %v7458_v34  ;;  %v7476_v34 = vld [vmem:[#allocation11 + $0x78] sm:$0xff]  }
 0x1f4   : > { %2845 = vmatprep.subr.bf16.mxu1 %v7463_v37  ;;  %v7478_v37 = vld [vmem:[#allocation11 + $0x70] sm:$0xff]  }
 0x1f6   : > { %2803 = vmatpush2.bf16.msra.mxu0 %v7413_v22 }
 0x1f7   : > { %2804 = vmatprep.subr.bf16.mxu0 %v7418_v24  ;;  %2846 = vmatpush2.bf16.msra.mxu1 %v7461_v39 }
 0x1f8   : > { %2847 = vmatprep.subr.bf16.mxu1 %v7466_v40 }
 0x1fa   : > { %2805 = vmatpush2.bf16.msra.mxu0 %v7416_v26 }
 0x1fb   : > { %2806 = vmatprep.subr.bf16.mxu0 %v7421_v28  ;;  %2848 = vmatpush2.bf16.msra.mxu1 %v7464_v41  ;;  %v7479_v41 = vld [vmem:[#allocation11 + $0x30] sm:$0xff]  }
 0x1fc   : > { %2849 = vmatprep.subr.bf16.mxu1 %v7469_v42 }
 0x1fe   : > { %2807 = vmatpush2.bf16.msra.mxu0 %v7419_v51 }
 0x1ff   : > { %2808 = vmatprep.subr.bf16.mxu0 %v7424_v31  ;;  %2850 = vmatpush2.bf16.msra.mxu1 %v7467_v43  ;;  %v7480_v43 = vld [vmem:[#allocation11 + $0x68] sm:$0xff]  }
 0x200   : > { %2851 = vmatprep.subr.bf16.mxu1 %v7472_v44 }
 0x202   : > { %2809 = vmatpush2.bf16.msra.mxu0 %v7422_v33  ;;  %v8812_v33 = vsub.s32 3, %v8801_v50 }
 0x203   : > { %2810 = vmatprep.subr.bf16.mxu0 %v7427_v36  ;;  %2852 = vmatpush2.bf16.msra.mxu1 %v7470_v45  ;;  %v7477_v36 = vld [vmem:[#allocation11 + $0x38] sm:$0xff]  }
 0x204   : > { %2853 = vmatprep.subr.bf16.mxu1 %v7475_v47  ;;  %v866_v42 = vrot.slane %v849_v57, %v8812_v33  ;;  %v7481_v47 = vld [vmem:[#allocation11 + $0x28] sm:$0xff]  }
 0x206   : > { %2811 = vmatpush2.bf16.msra.mxu0 %v7425_v38  ;;  %v8815_v38 = vsub.s32 2, %v8801_v50 }
 0x207   : > { %2854 = vmatpush2.bf16.msra.mxu1 %v7473_v48  ;;  %6773 = vmatprep.subr.bf16.mxu0 %v7476_v34  ;;  %v7503_v34 = vld [vmem:[#allocation13 + $0x44] ss:$8 sps:$4 sm:$0xff]  }
 0x208   : > { %v862_v44 = vrot.slane %v849_v57, %v8815_v38 }
 0x20a   : > { %v2190_v61 = vpop.f32.mrf.mxu1 }
 0x20c   : > { %v2192_v1 = vpop.f32.mrf.mxu1 }
 0x20e   : > { %v2194_v10 = vpop.f32.mrf.mxu1 }
 0x210   : > { %v2196_v21 = vpop.f32.mrf.mxu1 }
 0x229   : > { %v2147_v2 = vpop.f32.mrf.mxu0 }
 0x22a   : > { %v2148_v12 = vadd.f32 %v2147_v2, %v2105_v6 }
 0x22b   : > { %v2149_v7 = vpop.f32.mrf.mxu0 }
 0x22c   : > { %v2150_v9 = vadd.f32 %v2149_v7, %v2107_v3  ;;  %v2191_v22 = vadd.f32 %v2190_v61, %v2148_v12  ;;  %v7483_v61 = vld [vmem:[#allocation11 + $0x20] sm:$0xff]   ;;  %v7485_v7 = vld [vmem:[#allocation11 + $0x18] sm:$0xff]  }
 0x22d   : > { %v2151_v13 = vpop.f32.mrf.mxu0 }
 0x22e   : > { %v2152_v16 = vadd.f32 %v2151_v13, %v2109_v8  ;;  %v2193_v18 = vadd.f32 %v2192_v1, %v2150_v9  ;;  %v2371_v27 = vmax.f32 %v2191_v22, 0.0  ;;  %v7486_v22 = vld [vmem:[#allocation11 + $0x50] sm:$0xff]  }
 0x22f   : > { %v2153_v17 = vpop.f32.mrf.mxu0 }
 0x230   : > { %v2195_v19 = vadd.f32 %v2194_v10, %v2152_v16  ;;  %v2154_v20 = vadd.f32 %v2153_v17, %v2111_v15  ;;  %v2372_v25 = vmax.f32 %v2193_v18, 0.0 }
 0x232   : > { %v2197_v23 = vadd.f32 %v2196_v21, %v2154_v20  ;;  %v2375_v24 = vmax.f32 %v2195_v19, 0.0 }
 0x234   : > { %v2376_v26 = vmax.f32 %v2197_v23, 0.0  ;;  %v2379_v29 = vpack.c.bf16 %v2375_v24, %v2371_v27  ;;  %v7487_v23 = vld [vmem:[#allocation11 + $0x10] sm:$0xff]   ;;  %v7488_v24 = vld [vmem:[#allocation11 + $0x48] sm:$0xff]   ;;  %v7491_v27 = vld [vmem:[#allocation11] sm:$0xff]  }
 0x236   : > { %v2380_v28 = vpack.c.bf16 %v2376_v26, %v2372_v25  ;;  %v7489_v25 = vld [vmem:[#allocation11 + $0x8] sm:$0xff]   ;;  %v7490_v26 = vld [vmem:[#allocation11 + $0x40] sm:$0xff]  }
 0x238   : > { %2812 = vmatprep.mubr.bf16.mxu0 %v2380_v28  ;;  %v7492_v28 = vld [vmem:[#allocation13 + $0x70] ss:$8 sps:$4 sm:$0xff]  }
 0x239   : > { %2813 = vmatmul.mubr.bf16.vlgmr.msra.gmra.mxu0 %v2379_v29  ;;  %v7494_v29 = vld [vmem:[#allocation13 + $0x74] ss:$8 sps:$4 sm:$0xff]  }
 0x23a   : > { %6774 = vmatpush3.bf16.msra.mxu0 %v7477_v36  ;;  %3154 = vmatprep.subr.bf16.mxu1 %v7494_v29  ;;  %v7501_v36 = vld [vmem:[#allocation13 + $0x40] ss:$8 sps:$4 sm:$0xff]   ;;  %v7521_v29 = vld [vmem:[#allocation14 + $0x10] sm:$0xff]  }
 0x23b   : > { %6775 = vmatprep.subr.bf16.mxu0 %v7478_v37  ;;  %v7506_v37 = vld [vmem:[#allocation13 + $0x34] ss:$8 sps:$4 sm:$0xff]  }
 0x23e   : > { %6776 = vmatpush3.bf16.msra.mxu0 %v7479_v41 }
 0x23f   : > { %6777 = vmatprep.subr.bf16.mxu0 %v7480_v43 }
 0x242   : > { %6778 = vmatpush3.bf16.msra.mxu0 %v7481_v47 }
 0x243   : > { %6779 = vmatprep.subr.bf16.mxu0 %v7482_v52 }
 0x246   : > { %6780 = vmatpush3.bf16.msra.mxu0 %v7483_v61 }
 0x247   : > { %6781 = vmatprep.subr.bf16.mxu0 %v7484_v0 }
 0x24a   : > { %v2233_v51 = vpop.f32.mrf.mxu1  ;;  %6782 = vmatpush3.bf16.msra.mxu0 %v7485_v7  ;;  %v7515_v7 = vld [vmem:[#allocation13 + $0x4] ss:$8 sps:$4 sm:$0xff]  }
 0x24b   : > { %v2234_v54 = vadd.f32 %v2233_v51, %v862_v44  ;;  %6783 = vmatprep.subr.bf16.mxu0 %v7486_v22  ;;  %v7497_v51 = vld [vmem:[#allocation13 + $0x64] ss:$8 sps:$4 sm:$0xff]  }
 0x24c   : > { %v2235_v31 = vpop.f32.mrf.mxu1 }
 0x24d   : > { %v2236_v48 = vadd.f32 %v2235_v31, %v866_v42  ;;  %v7500_v31 = vld [vmem:[#allocation13 + $0x54] ss:$8 sps:$4 sm:$0xff]  }
 0x24e   : > { %v2237_v39 = vpop.f32.mrf.mxu1  ;;  %6784 = vmatpush3.bf16.msra.mxu0 %v7487_v23  ;;  %v7516_v23 = vld [vmem:[#allocation14 + $0x38] sm:$0xff]  }
 0x24f   : > { %v2238_v59 = vadd.f32 %v2237_v39, %v862_v44  ;;  %6785 = vmatprep.subr.bf16.mxu0 %v7488_v24  ;;  %v7504_v39 = vld [vmem:[#allocation13 + $0x30] ss:$8 sps:$4 sm:$0xff]   ;;  %v8400_v24 = vmov 0.0  }
 0x250   : > { %v2239_v45 = vpop.f32.mrf.mxu1 }
 0x251   : > { %v2240_v62 = vadd.f32 %v2239_v45, %v866_v42  ;;  %v2448_v42 = vld [vmem:[#allocation7 + $0x1] ss:$8 sm:$0x3] }
 0x252   : > { %6786 = vmatpush3.bf16.msra.mxu0 %v7489_v25  ;;  %v2457_v44 = vrot.slane %v2448_v42, %v8807_v55  ;;  %v2453_v45 = vrot.slane %v2448_v42, %v8804_v53  ;;  %v7517_v25 = vld [vmem:[#allocation14 + $0x30] sm:$0xff]  }
 0x253   : > { %6787 = vmatprep.subr.bf16.mxu0 %v7490_v26  ;;  %v7518_v26 = vld [vmem:[#allocation14 + $0x28] sm:$0xff]   ;;  %v7536_v42 = vld [vmem:[#allocation16 + $0x30] ss:$8 sps:$4 sm:$0xff]  }
 0x256   : > { %6788 = vmatpush3.bf16.msra.mxu0 %v7491_v27  ;;  %v7519_v27 = vld [vmem:[#allocation14 + $0x20] sm:$0xff]  }
 0x257   : > { %6848 = vmatprep.subr.bf16.mxu0 %v8400_v24 }
 0x269   : > { %v2276_v30 = vpop.f32.mrf.mxu0 }
 0x26a   : > { %v2277_v49 = vadd.f32 %v2276_v30, %v2234_v54  ;;  %v7495_v30 = vld [vmem:[#allocation13 + $0x60] ss:$8 sps:$4 sm:$0xff]  }
 0x26b   : > { %v2278_v32 = vpop.f32.mrf.mxu0 }
 0x26c   : > { %v2279_v4 = vadd.f32 %v2278_v32, %v2236_v48  ;;  %v7498_v32 = vld [vmem:[#allocation13 + $0x50] ss:$8 sps:$4 sm:$0xff]  }
 0x26d   : > { %v2280_v40 = vpop.f32.mrf.mxu0 }
 0x26e   : > { %v2281_v63 = vadd.f32 %v2280_v40, %v2238_v59 }
 0x26f   : > { %v2282_v46 = vpop.f32.mrf.mxu0 }
 0x270   : > { %v2283_v3 = vadd.f32 %v2282_v46, %v2240_v62 }
 0x289   : > { %v2362_v58 = vpop.f32.mrf.mxu0 }
 0x28a   : > { %v2319_v56 = vpop.f32.mrf.mxu1 }
 0x28b   : > { %v2364_v11 = vpop.f32.mrf.mxu0  ;;  %v2320_v35 = vadd.f32 %v2319_v56, %v2277_v49 }
 0x28c   : > { %v2321_v60 = vpop.f32.mrf.mxu1 }
 0x28d   : > { %v2322_v57 = vadd.f32 %v2321_v60, %v2279_v4  ;;  %v2366_v2 = vpop.f32.mrf.mxu0  ;;  %v2363_v12 = vadd.f32 %v2362_v58, %v2320_v35 }
 0x28e   : > { %v2323_v1 = vpop.f32.mrf.mxu1 }
 0x28f   : > { %v2324_v5 = vadd.f32 %v2323_v1, %v2281_v63  ;;  %v2365_v8 = vadd.f32 %v2364_v11, %v2322_v57  ;;  %v2368_v13 = vpop.f32.mrf.mxu0  ;;  %v2373_v19 = vmax.f32 %v2363_v12, 0.0 }
 0x290   : > { %v2325_v6 = vpop.f32.mrf.mxu1 }
 0x291   : > { %v2367_v9 = vadd.f32 %v2366_v2, %v2324_v5  ;;  %v2326_v10 = vadd.f32 %v2325_v6, %v2283_v3  ;;  %v2374_v17 = vmax.f32 %v2365_v8, 0.0  ;;  %v7509_v2 = vld [vmem:[#allocation13 + $0x24] ss:$8 sps:$4 sm:$0xff]   ;;  %v7507_v3 = vld [vmem:[#allocation13 + $0x20] ss:$8 sps:$4 sm:$0xff]  }
 0x292   : > { %v7512_v5 = vld [vmem:[#allocation13 + $0x14] ss:$8 sps:$4 sm:$0xff]   ;;  %v7510_v6 = vld [vmem:[#allocation13 + $0x10] ss:$8 sps:$4 sm:$0xff]   ;;  %v7513_v8 = vld [vmem:[#allocation13] ss:$8 sps:$4 sm:$0xff]  }
 0x293   : > { %v2369_v15 = vadd.f32 %v2368_v13, %v2326_v10  ;;  %v2377_v16 = vmax.f32 %v2367_v9, 0.0  ;;  %v2904_v13 = vld [vmem:[#allocation7 + $0x2] ss:$0 sm:$0xff] }
 0x295   : > { %v2378_v18 = vmax.f32 %v2369_v15, 0.0  ;;  %v2381_v21 = vpack.c.bf16 %v2377_v16, %v2373_v19 }
 0x297   : > { %v2382_v20 = vpack.c.bf16 %v2378_v18, %v2374_v17 }
 0x299   : > { %2855 = vmatprep.mubr.bf16.mxu1 %v2382_v20 }
 0x29a   : > { %2856 = vmatmul.mubr.bf16.vlgmr.msra.gmra.mxu1 %v2381_v21 }
 0x29b   : > { %3186 = vmatprep.mubr.bf16.mxu1 %v8399_v14  ;;  %3155 = vmatpush1.bf16.msra.mxu1 %v7492_v28  ;;  %v7520_v28 = vld [vmem:[#allocation14 + $0x18] sm:$0xff]  }
 0x29c   : > { %3156 = vmatprep.subr.bf16.mxu1 %v7497_v51  ;;  %v7523_v51 = vld [vmem:[#allocation14] sm:$0xff]  }
 0x29f   : > { %3157 = vmatpush1.bf16.msra.mxu1 %v7495_v30  ;;  %v7524_v30 = vld [vmem:[#allocation16 + $0x70] ss:$8 sps:$4 sm:$0xff]  }
 0x2a0   : > { %3158 = vmatprep.subr.bf16.mxu1 %v7500_v31  ;;  %v7526_v31 = vld [vmem:[#allocation16 + $0x74] ss:$8 sps:$4 sm:$0xff]  }
 0x2a3   : > { %3159 = vmatpush1.bf16.msra.mxu1 %v7498_v32  ;;  %v7529_v32 = vld [vmem:[#allocation16 + $0x64] ss:$8 sps:$4 sm:$0xff]  }
 0x2a4   : > { %3160 = vmatprep.subr.bf16.mxu1 %v7503_v34  ;;  %v7527_v34 = vld [vmem:[#allocation16 + $0x60] ss:$8 sps:$4 sm:$0xff]  }
 0x2a7   : > { %3161 = vmatpush1.bf16.msra.mxu1 %v7501_v36  ;;  %v7532_v36 = vld [vmem:[#allocation16 + $0x54] ss:$8 sps:$4 sm:$0xff]  }
 0x2a8   : > { %3162 = vmatprep.subr.bf16.mxu1 %v7506_v37  ;;  %v7530_v37 = vld [vmem:[#allocation16 + $0x50] ss:$8 sps:$4 sm:$0xff]  }
 0x2ab   : > { %3163 = vmatpush1.bf16.msra.mxu1 %v7504_v39  ;;  %v7535_v39 = vld [vmem:[#allocation16 + $0x44] ss:$8 sps:$4 sm:$0xff]  }
 0x2ac   : > { %3164 = vmatprep.subr.bf16.mxu1 %v7509_v2 }
 0x2af   : > { %3165 = vmatpush1.bf16.msra.mxu1 %v7507_v3 }
 0x2b0   : > { %3166 = vmatprep.subr.bf16.mxu1 %v7512_v5 }
 0x2b3   : > { %3167 = vmatpush1.bf16.msra.mxu1 %v7510_v6 }
 0x2b4   : > { %3168 = vmatprep.subr.bf16.mxu1 %v7515_v7  ;;  %v7544_v7 = vld [vmem:[#allocation16 + $0x14] ss:$8 sps:$4 sm:$0xff]  }
 0x2b7   : > { %3169 = vmatpush1.bf16.msra.mxu1 %v7513_v8  ;;  %v7542_v8 = vld [vmem:[#allocation16 + $0x10] ss:$8 sps:$4 sm:$0xff]  }
 0x2b8   : > { %3428 = vmatprep.subr.bf16.mxu1 %v7526_v31  ;;  %v7602_v31 = vld [vmem:[#allocation17 + $0x1c0] ss:$16 sps:$4 sm:$0xff]  }
 0x2f9   : > { %v2814_v40 = vpop.f32.mrf.mxu0 }
 0x2fa   : > { %v2815_v56 = vadd.f32 %v2814_v40, %v2453_v45  ;;  %v7533_v40 = vld [vmem:[#allocation16 + $0x40] ss:$8 sps:$4 sm:$0xff]  }
 0x2fb   : > { %v2816_v41 = vpop.f32.mrf.mxu0 }
 0x2fc   : > { %v2817_v52 = vadd.f32 %v2816_v41, %v2457_v44  ;;  %v7538_v41 = vld [vmem:[#allocation16 + $0x34] ss:$8 sps:$4 sm:$0xff]  }
 0x2fd   : > { %v2818_v43 = vpop.f32.mrf.mxu0 }
 0x2fe   : > { %v2819_v54 = vadd.f32 %v2818_v43, %v2453_v45  ;;  %v7541_v43 = vld [vmem:[#allocation16 + $0x24] ss:$8 sps:$4 sm:$0xff]   ;;  %v3062_v45 = vld [vmem:[#allocation7 + $0x3] ss:$8 sm:$0x3] }
 0x2ff   : > { %v2820_v47 = vpop.f32.mrf.mxu0 }
 0x300   : > { %v2821_v59 = vadd.f32 %v2820_v47, %v2457_v44  ;;  %v7539_v44 = vld [vmem:[#allocation16 + $0x20] ss:$8 sps:$4 sm:$0xff]   ;;  %v3071_v47 = vrot.slane %v3062_v45, %v8807_v55 }
 0x35a   : > { %v2857_v46 = vpop.f32.mrf.mxu1 }
 0x35b   : > { %v2858_v60 = vadd.f32 %v2857_v46, %v2815_v56  ;;  %v3067_v46 = vrot.slane %v3062_v45, %v8804_v53 }
 0x35c   : > { %v2859_v48 = vpop.f32.mrf.mxu1 }
 0x35d   : > { %v2860_v4 = vadd.f32 %v2859_v48, %v2817_v52  ;;  %v2866_v0 = vmax.f32 %v2858_v60, 0.0 }
 0x35e   : > { %v2861_v58 = vpop.f32.mrf.mxu1 }
 0x35f   : > { %v2862_v49 = vadd.f32 %v2861_v58, %v2819_v54  ;;  %v2867_v63 = vmax.f32 %v2860_v4, 0.0 }
 0x360   : > { %v2863_v11 = vpop.f32.mrf.mxu1 }
 0x361   : > { %v2864_v61 = vadd.f32 %v2863_v11, %v2821_v59  ;;  %v2868_v62 = vmax.f32 %v2862_v49, 0.0 }
 0x363   : > { %v2869_v57 = vmax.f32 %v2864_v61, 0.0  ;;  %v2870_v1 = vpack.c.bf16 %v2868_v62, %v2866_v0  ;;  %v3204_v0 = vld [vmem:[%s8744_s2 + $0x8] sm:$0xff] }
 0x365   : > { %v2871_v35 = vpack.c.bf16 %v2869_v57, %v2867_v63  ;;  %v3203_v57 = vld [vmem:[%s8744_s2] sm:$0xff] }
 0x367   : > { %3033 = vmatprep.mubr.bf16.mxu0 %v2871_v35 }
 0x368   : > { %3034 = vmatmul.mubr.bf16.vlgmr.msra.gmra.mxu0 %v2870_v1 }
 0x369   : > { %6849 = vmatpush3.bf16.msra.mxu0 %v7516_v23  ;;  %6864 = vmatprep.mubr.msk.bf16.mxu0 %vm8401_vm0, %v8400_v24  ;;  %v7572_v23 = vld [vmem:[#allocation17 + $0x60] ss:$16 sps:$4 sm:$0xff]  }
 0x36a   : > { %6850 = vmatprep.subr.bf16.mxu0 %v8400_v24 }
 0x36d   : > { %6851 = vmatpush3.bf16.msra.mxu0 %v7517_v25  ;;  %v7578_v25 = vld [vmem:[#allocation17 + $0x40] ss:$16 sps:$4 sm:$0xff]  }
 0x36e   : > { %6852 = vmatprep.subr.bf16.mxu0 %v8400_v24 }
 0x371   : > { %6853 = vmatpush3.bf16.msra.mxu0 %v7518_v26  ;;  %v7586_v26 = vld [vmem:[#allocation17 + $0x24] ss:$16 sps:$4 sm:$0xff]  }
 0x372   : > { %6854 = vmatprep.subr.bf16.mxu0 %v8400_v24 }
 0x375   : > { %6855 = vmatpush3.bf16.msra.mxu0 %v7519_v27  ;;  %v7584_v27 = vld [vmem:[#allocation17 + $0x20] ss:$16 sps:$4 sm:$0xff]  }
 0x376   : > { %6856 = vmatprep.subr.bf16.mxu0 %v8400_v24 }
 0x379   : > { %6857 = vmatpush3.bf16.msra.mxu0 %v7520_v28  ;;  %v7592_v28 = vld [vmem:[#allocation17 + $0x4] ss:$16 sps:$4 sm:$0xff]  }
 0x37a   : > { %6858 = vmatprep.subr.bf16.mxu0 %v8400_v24 }
 0x37d   : > { %6859 = vmatpush3.bf16.msra.mxu0 %v7521_v29  ;;  %v7590_v29 = vld [vmem:[#allocation17] ss:$16 sps:$4 sm:$0xff]  }
 0x37e   : > { %6860 = vmatprep.subr.bf16.mxu0 %v8400_v24 }
 0x428   : > { %v6789_v9 = vpop.f32.mrf.mxu0 }
 0x42a   : > { %v6790_v10 = vpop.f32.mrf.mxu0 }
 0x42b   : > { %v6791_v12 = vadd.f32 %v6790_v10, %v6789_v9  ;;  %v7547_v9 = vld [vmem:[#allocation16 + $0x4] ss:$8 sps:$4 sm:$0xff]   ;;  %v7545_v10 = vld [vmem:[#allocation16] ss:$8 sps:$4 sm:$0xff]  }
 0x42c   : > { %v6792_v15 = vpop.f32.mrf.mxu0 }
 0x42d   : > { %v3036_v17 = vadd.f32 %v6791_v12, %v2904_v13  ;;  %v7548_v12 = vld [vmem:[#allocation17 + $0xe0] ss:$16 sps:$4 sm:$0xff]  }
 0x42e   : > { %v6793_v16 = vpop.f32.mrf.mxu0 }
 0x42f   : > { %v6794_v18 = vadd.f32 %v6793_v16, %v6792_v15  ;;  %v3042_v20 = vmax.f32 %v3036_v17, 0.0  ;;  %v7553_v15 = vld [vmem:[#allocation17 + $0xec] ss:$16 sps:$4 sm:$0xff]   ;;  %v7556_v16 = vld [vmem:[#allocation17 + $0xc4] ss:$16 sps:$4 sm:$0xff]  }
 0x430   : > { %v7554_v17 = vld [vmem:[#allocation17 + $0xc0] ss:$16 sps:$4 sm:$0xff]  }
 0x431   : > { %v3039_v19 = vadd.f32 %v6794_v18, %v2904_v13  ;;  %v7550_v13 = vld [vmem:[#allocation17 + $0xe4] ss:$16 sps:$4 sm:$0xff]  }
 0x432   : > { %v7562_v18 = vld [vmem:[#allocation17 + $0xa4] ss:$16 sps:$4 sm:$0xff]  }
 0x433   : > { %v3043_v21 = vmax.f32 %v3039_v19, 0.0  ;;  %v7560_v19 = vld [vmem:[#allocation17 + $0xa0] ss:$16 sps:$4 sm:$0xff]  }
 0x435   : > { %v3044_v22 = vpack.c.bf16 %v3043_v21, %v3042_v20  ;;  %v7568_v20 = vld [vmem:[#allocation17 + $0x84] ss:$16 sps:$4 sm:$0xff]   ;;  %v7566_v21 = vld [vmem:[#allocation17 + $0x80] ss:$16 sps:$4 sm:$0xff]  }
 0x437   : > { %3187 = vmatmul.mubr.bf16.vlgmr.msra.gmra.mxu1 %v3044_v22  ;;  %v7574_v22 = vld [vmem:[#allocation17 + $0x64] ss:$16 sps:$4 sm:$0xff]  }
 0x438   : > { %3460 = vmatprep.mubr.bf16.mxu1 %v8399_v14  ;;  %v7522_v14 = vld [vmem:[#allocation14 + $0x8] sm:$0xff]   ;;  %3429 = vmatpush1.bf16.msra.mxu1 %v7524_v30  ;;  %v7604_v30 = vld [vmem:[#allocation17 + $0x1c4] ss:$16 sps:$4 sm:$0xff]  }
 0x439   : > { %6861 = vmatpush3.bf16.msra.mxu0 %v7522_v14  ;;  %3430 = vmatprep.subr.bf16.mxu1 %v7529_v32  ;;  %v7598_v14 = vld [vmem:[#allocation17 + $0x1e4] ss:$16 sps:$4 sm:$0xff]  }
 0x43a   : > { %6862 = vmatprep.subr.bf16.mxu0 %v8400_v24  ;;  %v7580_v24 = vld [vmem:[#allocation17 + $0x44] ss:$16 sps:$4 sm:$0xff]  }
 0x43b   : > { %v7610_v32 = vld [vmem:[#allocation17 + $0x1a4] ss:$16 sps:$4 sm:$0xff]  }
 0x43c   : > { %3431 = vmatpush1.bf16.msra.mxu1 %v7527_v34  ;;  %v7608_v34 = vld [vmem:[#allocation17 + $0x1a0] ss:$16 sps:$4 sm:$0xff]  }
 0x43d   : > { %6863 = vmatpush3.bf16.msra.mxu0 %v7523_v51  ;;  %3432 = vmatprep.subr.bf16.mxu1 %v7532_v36  ;;  %v7596_v51 = vld [vmem:[#allocation17 + $0x1e0] ss:$16 sps:$4 sm:$0xff]   ;;  %v7616_v36 = vld [vmem:[#allocation17 + $0x184] ss:$16 sps:$4 sm:$0xff]  }
 0x43e   : > { %3884 = vmatprep.subr.bf16.mxu0 %v7550_v13  ;;  %v7625_v13 = vld [vmem:[#allocation17 + $0x16c] ss:$16 sps:$4 sm:$0xff]  }
 0x440   : > { %3433 = vmatpush1.bf16.msra.mxu1 %v7530_v37  ;;  %v7614_v37 = vld [vmem:[#allocation17 + $0x180] ss:$16 sps:$4 sm:$0xff]  }
 0x441   : > { %3434 = vmatprep.subr.bf16.mxu1 %v7535_v39  ;;  %v7622_v39 = vld [vmem:[#allocation17 + $0x164] ss:$16 sps:$4 sm:$0xff]  }
 0x444   : > { %3435 = vmatpush1.bf16.msra.mxu1 %v7533_v40  ;;  %v7620_v40 = vld [vmem:[#allocation17 + $0x160] ss:$16 sps:$4 sm:$0xff]  }
 0x445   : > { %3436 = vmatprep.subr.bf16.mxu1 %v7538_v41  ;;  %v3226_v41 = vld [vmem:[#allocation7 + $0x4] ss:$0 sm:$0xff] }
 0x448   : > { %3437 = vmatpush1.bf16.msra.mxu1 %v7536_v42 }
 0x449   : > { %3438 = vmatprep.subr.bf16.mxu1 %v7541_v43 }
 0x44c   : > { %3439 = vmatpush1.bf16.msra.mxu1 %v7539_v44 }
 0x44d   : > { %3440 = vmatprep.subr.bf16.mxu1 %v7544_v7  ;;  %v7605_v7 = vld [vmem:[#allocation17 + $0x1c8] ss:$16 sps:$4 sm:$0xff]  }
 0x450   : > { %3441 = vmatpush1.bf16.msra.mxu1 %v7542_v8  ;;  %v7613_v8 = vld [vmem:[#allocation17 + $0x1ac] ss:$16 sps:$4 sm:$0xff]  }
 0x451   : > { %3442 = vmatprep.subr.bf16.mxu1 %v7547_v9  ;;  %v7611_v9 = vld [vmem:[#allocation17 + $0x1a8] ss:$16 sps:$4 sm:$0xff]  }
 0x454   : > { %3443 = vmatpush1.bf16.msra.mxu1 %v7545_v10  ;;  %v7619_v10 = vld [vmem:[#allocation17 + $0x18c] ss:$16 sps:$4 sm:$0xff]  }
 0x455   : > { %3927 = vmatprep.subr.bf16.mxu1 %v7553_v15  ;;  %v7623_v15 = vld [vmem:[#allocation17 + $0x168] ss:$16 sps:$4 sm:$0xff]  }
 0x4f7   : > { %v3188_v48 = vpop.f32.mrf.mxu1 }
 0x4f8   : > { %v3189_v52 = vadd.f32 %v3188_v48, %v3067_v46 }
 0x4f9   : > { %v3190_v54 = vpop.f32.mrf.mxu1 }
 0x4fa   : > { %5822 = vst [vmem:[%s8826_s5] sm:$0xff] %v3189_v52  ;;  %v3191_v56 = vadd.f32 %v3190_v54, %v3071_v47  ;;  %v7551_v54 = vld [vmem:[#allocation17 + $0xe8] ss:$16 sps:$4 sm:$0xff]  }
 0x4fb   : > { %v3192_v58 = vpop.f32.mrf.mxu1 }
 0x4fc   : > { %v3197_v59 = vmul.f32 0.5, %v3191_v56  ;;  %5823 = vst [vmem:[%s8826_s5 + $0x8] sm:$0xff] %v3191_v56  ;;  %v3193_v4 = vadd.f32 %v3192_v58, %v3067_v46  ;;  %v7559_v58 = vld [vmem:[#allocation17 + $0xcc] ss:$16 sps:$4 sm:$0xff]  }
 0x4fd   : > { %v3194_v49 = vpop.f32.mrf.mxu1 }
 0x4fe   : > { %v3199_v60 = vmul.f32 1.442695, %v3197_v59  ;;  %5824 = vst [vmem:[%s8826_s5 + $0x10] sm:$0xff] %v3193_v4  ;;  %v3195_v11 = vadd.f32 %v3194_v49, %v3071_v47  ;;  %v7557_v59 = vld [vmem:[#allocation17 + $0xc8] ss:$16 sps:$4 sm:$0xff]  }
 0x4ff   : > { %v7563_v49 = vld [vmem:[#allocation17 + $0xa8] ss:$16 sps:$4 sm:$0xff]  }
 0x500   : > { %7964 = vpow2.f32 %v3199_v60  ;;  %v3198_v61 = vmul.f32 0.5, %v3195_v11  ;;  %5825 = vst [vmem:[%s8826_s5 + $0x18] sm:$0xff] %v3195_v11  ;;  %v7571_v60 = vld [vmem:[#allocation17 + $0x8c] ss:$16 sps:$4 sm:$0xff]   ;;  %v7569_v11 = vld [vmem:[#allocation17 + $0x88] ss:$16 sps:$4 sm:$0xff]  }
 0x502   : > { %v3201_v62 = vmul.f32 1.442695, %v3198_v61  ;;  %v7577_v61 = vld [vmem:[#allocation17 + $0x6c] ss:$16 sps:$4 sm:$0xff]  }
 0x504   : > { %7966 = vpow2.f32 %v3201_v62  ;;  %v7575_v62 = vld [vmem:[#allocation17 + $0x68] ss:$16 sps:$4 sm:$0xff]  }
 0x50d   : > { %v7965_v63 = vpop.eup %7964 }
 0x50e   : > { %v3205_v35 = vmul.f32 %v7965_v63, %v3203_v57  ;;  %v7583_v63 = vld [vmem:[#allocation17 + $0x4c] ss:$16 sps:$4 sm:$0xff]   ;;  %v7581_v57 = vld [vmem:[#allocation17 + $0x48] ss:$16 sps:$4 sm:$0xff]  }
 0x510   : > { %v3207_v3 = vadd.f32 %v3205_v35, %v3189_v52  ;;  %v7587_v35 = vld [vmem:[#allocation17 + $0x28] ss:$16 sps:$4 sm:$0xff]  }
 0x511   : > { %v7967_v1 = vpop.eup %7966 }
 0x512   : > { %v3206_v2 = vmul.f32 %v7967_v1, %v3204_v0  ;;  %v7589_v0 = vld [vmem:[#allocation17 + $0x2c] ss:$16 sps:$4 sm:$0xff]  }
 0x513   : > { %v7595_v1 = vld [vmem:[#allocation17 + $0xc] ss:$16 sps:$4 sm:$0xff]  }
 0x514   : > { %v3208_v5 = vadd.f32 %v3206_v2, %v3193_v4  ;;  %v7565_v4 = vld [vmem:[#allocation17 + $0xac] ss:$16 sps:$4 sm:$0xff]   ;;  %v7593_v2 = vld [vmem:[#allocation17 + $0x8] ss:$16 sps:$4 sm:$0xff]  }
 0x516   : > { %v3209_v6 = vpack.c.bf16 %v3208_v5, %v3207_v3  ;;  %v7601_v3 = vld [vmem:[#allocation17 + $0x1ec] ss:$16 sps:$4 sm:$0xff]   ;;  %v7599_v5 = vld [vmem:[#allocation17 + $0x1e8] ss:$16 sps:$4 sm:$0xff]  }
 0x518   : > { %6865 = vmatmul.mubr.bf16.vlgmr.msra.gmra.mxu0 %v3209_v6  ;;  %v7607_v6 = vld [vmem:[#allocation17 + $0x1cc] ss:$16 sps:$4 sm:$0xff]  }
 0x519   : > { %3885 = vmatpush1.bf16.msra.mxu0 %v7548_v12  ;;  %v7617_v12 = vld [vmem:[#allocation17 + $0x188] ss:$16 sps:$4 sm:$0xff]  }
 0x51a   : > { %3886 = vmatprep.subr.bf16.mxu0 %v7556_v16  ;;  %v7628_v16 = vld [vmem:[#allocation17 + $0x144] ss:$16 sps:$4 sm:$0xff]  }
 0x51d   : > { %3887 = vmatpush1.bf16.msra.mxu0 %v7554_v17  ;;  %v7631_v17 = vld [vmem:[#allocation17 + $0x14c] ss:$16 sps:$4 sm:$0xff]  }
 0x51e   : > { %3888 = vmatprep.subr.bf16.mxu0 %v7562_v18  ;;  %v7626_v18 = vld [vmem:[#allocation17 + $0x140] ss:$16 sps:$4 sm:$0xff]  }
 0x521   : > { %3889 = vmatpush1.bf16.msra.mxu0 %v7560_v19  ;;  %v7629_v19 = vld [vmem:[#allocation17 + $0x148] ss:$16 sps:$4 sm:$0xff]  }
 0x522   : > { %3890 = vmatprep.subr.bf16.mxu0 %v7568_v20  ;;  %v7634_v20 = vld [vmem:[#allocation17 + $0x124] ss:$16 sps:$4 sm:$0xff]  }
 0x525   : > { %3891 = vmatpush1.bf16.msra.mxu0 %v7566_v21  ;;  %v7637_v21 = vld [vmem:[#allocation17 + $0x12c] ss:$16 sps:$4 sm:$0xff]  }
 0x526   : > { %3892 = vmatprep.subr.bf16.mxu0 %v7574_v22  ;;  %v7632_v22 = vld [vmem:[#allocation17 + $0x120] ss:$16 sps:$4 sm:$0xff]  }
 0x529   : > { %3893 = vmatpush1.bf16.msra.mxu0 %v7572_v23  ;;  %v7635_v23 = vld [vmem:[#allocation17 + $0x128] ss:$16 sps:$4 sm:$0xff]  }
 0x52a   : > { %3894 = vmatprep.subr.bf16.mxu0 %v7580_v24  ;;  %v7640_v24 = vld [vmem:[#allocation17 + $0x104] ss:$16 sps:$4 sm:$0xff]  }
 0x52d   : > { %3895 = vmatpush1.bf16.msra.mxu0 %v7578_v25  ;;  %v7643_v25 = vld [vmem:[#allocation17 + $0x10c] ss:$16 sps:$4 sm:$0xff]  }
 0x52e   : > { %3896 = vmatprep.subr.bf16.mxu0 %v7586_v26  ;;  %v7638_v26 = vld [vmem:[#allocation17 + $0x100] ss:$16 sps:$4 sm:$0xff]  }
 0x531   : > { %3897 = vmatpush1.bf16.msra.mxu0 %v7584_v27  ;;  %v7641_v27 = vld [vmem:[#allocation17 + $0x108] ss:$16 sps:$4 sm:$0xff]  }
 0x532   : > { %3898 = vmatprep.subr.bf16.mxu0 %v7592_v28  ;;  %v7646_v28 = vld [vmem:[#allocation19 + $0x18c] ss:$28 sps:$4 sm:$0xff]  }
 0x535   : > { %3899 = vmatpush1.bf16.msra.mxu0 %v7590_v29  ;;  %v7649_v29 = vld [vmem:[#allocation19 + $0x50c] ss:$28 sps:$4 sm:$0xff]  }
 0x536   : > { %3900 = vmatprep.subr.bf16.mxu0 %v7598_v14  ;;  %v3336_v14 = vld [vmem:[#allocation7 + $0x5] ss:$8 sm:$0x3] }
 0x539   : > { %3901 = vmatpush2.bf16.msra.mxu0 %v7596_v51 }
 0x53a   : > { %3902 = vmatprep.subr.bf16.mxu0 %v7604_v30  ;;  %v3345_v30 = vrot.slane %v3336_v14, %v8807_v55 }
 0x53d   : > { %3903 = vmatpush2.bf16.msra.mxu0 %v7602_v31  ;;  %v3341_v31 = vrot.slane %v3336_v14, %v8804_v53  ;;  %v7712_v14 = vld [vmem:[#allocation19 + $0x2a4] ss:$28 sps:$4 sm:$0xff]  }
 0x53e   : > { %3904 = vmatprep.subr.bf16.mxu0 %v7610_v32 }
 0x541   : > { %3905 = vmatpush2.bf16.msra.mxu0 %v7608_v34 }
 0x542   : > { %3906 = vmatprep.subr.bf16.mxu0 %v7616_v36 }
 0x545   : > { %3907 = vmatpush2.bf16.msra.mxu0 %v7614_v37 }
 0x546   : > { %3908 = vmatprep.subr.bf16.mxu0 %v7622_v39 }
 0x549   : > { %3909 = vmatpush2.bf16.msra.mxu0 %v7620_v40 }
 0x54a   : > { %3910 = vmatprep.subr.bf16.mxu0 %v7628_v16  ;;  %v7686_v16 = vld [vmem:[#allocation19] ss:$28 sps:$4 sm:$0xff]  }
 0x54d   : > { %3911 = vmatpush2.bf16.msra.mxu0 %v7626_v18  ;;  %v7694_v18 = vld [vmem:[#allocation19 + $0x34c] ss:$28 sps:$4 sm:$0xff]  }
 0x54e   : > { %3912 = vmatprep.subr.bf16.mxu0 %v7634_v20  ;;  %v7692_v20 = vld [vmem:[#allocation19 + $0x348] ss:$28 sps:$4 sm:$0xff]  }
 0x551   : > { %3913 = vmatpush2.bf16.msra.mxu0 %v7632_v22  ;;  %v7700_v22 = vld [vmem:[#allocation19 + $0x314] ss:$28 sps:$4 sm:$0xff]  }
 0x552   : > { %3914 = vmatprep.subr.bf16.mxu0 %v7640_v24  ;;  %v7698_v24 = vld [vmem:[#allocation19 + $0x310] ss:$28 sps:$4 sm:$0xff]  }
 0x555   : > { %3915 = vmatpush2.bf16.msra.mxu0 %v7638_v26  ;;  %v7706_v26 = vld [vmem:[#allocation19 + $0x2dc] ss:$28 sps:$4 sm:$0xff]  }
 0x556   : > { %5430 = vmatprep.subr.bf16.mxu0 %v7646_v28  ;;  %v7704_v28 = vld [vmem:[#allocation19 + $0x2d8] ss:$28 sps:$4 sm:$0xff]  }
 0x5d8   : > { %v3309_v42 = vpop.f32.mrf.mxu0 }
 0x5d9   : > { %v3310_v44 = vadd.f32 %v3309_v42, %v3226_v41 }
 0x5da   : > { %v6866_v43 = vpop.f32.mrf.mxu0 }
 0x5db   : > { %v3316_v48 = vmax.f32 %v3310_v44, 0.0 }
 0x5dc   : > { %v3312_v45 = vpop.f32.mrf.mxu0 }
 0x5dd   : > { %v3313_v46 = vadd.f32 %v3312_v45, %v3226_v41 }
 0x5de   : > { %v6867_v47 = vpop.f32.mrf.mxu0 }
 0x5df   : > { %v3317_v52 = vmax.f32 %v3313_v46, 0.0  ;;  %v7644_v47 = vld [vmem:[#allocation19 + $0x188] ss:$28 sps:$4 sm:$0xff]  }
 0x5e1   : > { %v3318_v56 = vpack.c.bf16 %v3317_v52, %v3316_v48  ;;  %v7647_v48 = vld [vmem:[#allocation19 + $0x508] ss:$28 sps:$4 sm:$0xff]  }
 0x5e3   : > { %3461 = vmatmul.mubr.bf16.vlgmr.msra.gmra.mxu1 %v3318_v56  ;;  %v7655_v56 = vld [vmem:[#allocation19 + $0x4d4] ss:$28 sps:$4 sm:$0xff]  }
 0x5e4   : > { %3928 = vmatpush1.bf16.msra.mxu1 %v7551_v54  ;;  %v7652_v54 = vld [vmem:[#allocation19 + $0x154] ss:$28 sps:$4 sm:$0xff]  }
 0x5e5   : > { %3929 = vmatprep.subr.bf16.mxu1 %v7559_v58  ;;  %v7650_v58 = vld [vmem:[#allocation19 + $0x150] ss:$28 sps:$4 sm:$0xff]  }
 0x5e8   : > { %3930 = vmatpush1.bf16.msra.mxu1 %v7557_v59  ;;  %v7653_v59 = vld [vmem:[#allocation19 + $0x4d0] ss:$28 sps:$4 sm:$0xff]  }
 0x5e9   : > { %3931 = vmatprep.subr.bf16.mxu1 %v7565_v4  ;;  %v7658_v4 = vld [vmem:[#allocation19 + $0x11c] ss:$28 sps:$4 sm:$0xff]  }
 0x5ec   : > { %3932 = vmatpush1.bf16.msra.mxu1 %v7563_v49  ;;  %v7661_v49 = vld [vmem:[#allocation19 + $0x49c] ss:$28 sps:$4 sm:$0xff]  }
 0x5ed   : > { %3933 = vmatprep.subr.bf16.mxu1 %v7571_v60  ;;  %v7656_v60 = vld [vmem:[#allocation19 + $0x118] ss:$28 sps:$4 sm:$0xff]  }
 0x5f0   : > { %3934 = vmatpush1.bf16.msra.mxu1 %v7569_v11  ;;  %v7659_v11 = vld [vmem:[#allocation19 + $0x498] ss:$28 sps:$4 sm:$0xff]  }
 0x5f1   : > { %3935 = vmatprep.subr.bf16.mxu1 %v7577_v61  ;;  %v7664_v61 = vld [vmem:[#allocation19 + $0xe4] ss:$28 sps:$4 sm:$0xff]  }
 0x5f4   : > { %3936 = vmatpush1.bf16.msra.mxu1 %v7575_v62  ;;  %v7667_v62 = vld [vmem:[#allocation19 + $0x464] ss:$28 sps:$4 sm:$0xff]  }
 0x5f5   : > { %3937 = vmatprep.subr.bf16.mxu1 %v7583_v63  ;;  %v7662_v63 = vld [vmem:[#allocation19 + $0xe0] ss:$28 sps:$4 sm:$0xff]  }
 0x5f8   : > { %3938 = vmatpush1.bf16.msra.mxu1 %v7581_v57  ;;  %v7665_v57 = vld [vmem:[#allocation19 + $0x460] ss:$28 sps:$4 sm:$0xff]  }
 0x5f9   : > { %3939 = vmatprep.subr.bf16.mxu1 %v7589_v0  ;;  %v7670_v0 = vld [vmem:[#allocation19 + $0xac] ss:$28 sps:$4 sm:$0xff]  }
 0x5fc   : > { %3940 = vmatpush1.bf16.msra.mxu1 %v7587_v35  ;;  %v7673_v35 = vld [vmem:[#allocation19 + $0x42c] ss:$28 sps:$4 sm:$0xff]  }
 0x5fd   : > { %3941 = vmatprep.subr.bf16.mxu1 %v7595_v1  ;;  %v7668_v1 = vld [vmem:[#allocation19 + $0xa8] ss:$28 sps:$4 sm:$0xff]  }
 0x600   : > { %3942 = vmatpush1.bf16.msra.mxu1 %v7593_v2  ;;  %v7671_v2 = vld [vmem:[#allocation19 + $0x428] ss:$28 sps:$4 sm:$0xff]  }
 0x601   : > { %3943 = vmatprep.subr.bf16.mxu1 %v7601_v3  ;;  %v7676_v3 = vld [vmem:[#allocation19 + $0x74] ss:$28 sps:$4 sm:$0xff]  }
 0x604   : > { %3944 = vmatpush2.bf16.msra.mxu1 %v7599_v5  ;;  %v7679_v5 = vld [vmem:[#allocation19 + $0x3f4] ss:$28 sps:$4 sm:$0xff]  }
 0x605   : > { %3945 = vmatprep.subr.bf16.mxu1 %v7607_v6  ;;  %v7674_v6 = vld [vmem:[#allocation19 + $0x70] ss:$28 sps:$4 sm:$0xff]  }
 0x608   : > { %3946 = vmatpush2.bf16.msra.mxu1 %v7605_v7  ;;  %v7677_v7 = vld [vmem:[#allocation19 + $0x3f0] ss:$28 sps:$4 sm:$0xff]  }
 0x609   : > { %3947 = vmatprep.subr.bf16.mxu1 %v7613_v8  ;;  %v7682_v8 = vld [vmem:[#allocation19 + $0x3c] ss:$28 sps:$4 sm:$0xff]  }
 0x60c   : > { %3948 = vmatpush2.bf16.msra.mxu1 %v7611_v9  ;;  %v7685_v9 = vld [vmem:[#allocation19 + $0x3bc] ss:$28 sps:$4 sm:$0xff]  }
 0x60d   : > { %3949 = vmatprep.subr.bf16.mxu1 %v7619_v10  ;;  %v7680_v10 = vld [vmem:[#allocation19 + $0x38] ss:$28 sps:$4 sm:$0xff]  }
 0x610   : > { %3950 = vmatpush2.bf16.msra.mxu1 %v7617_v12  ;;  %v7683_v12 = vld [vmem:[#allocation19 + $0x3b8] ss:$28 sps:$4 sm:$0xff]  }
 0x611   : > { %3951 = vmatprep.subr.bf16.mxu1 %v7625_v13  ;;  %v7688_v13 = vld [vmem:[#allocation19 + $0x4] ss:$28 sps:$4 sm:$0xff]  }
 0x614   : > { %3952 = vmatpush2.bf16.msra.mxu1 %v7623_v15  ;;  %v7691_v15 = vld [vmem:[#allocation19 + $0x384] ss:$28 sps:$4 sm:$0xff]  }
 0x615   : > { %3953 = vmatprep.subr.bf16.mxu1 %v7631_v17  ;;  %v7689_v17 = vld [vmem:[#allocation19 + $0x380] ss:$28 sps:$4 sm:$0xff]  }
 0x618   : > { %3954 = vmatpush2.bf16.msra.mxu1 %v7629_v19  ;;  %v7697_v19 = vld [vmem:[#allocation19 + $0x6cc] ss:$28 sps:$4 sm:$0xff]  }
 0x619   : > { %3955 = vmatprep.subr.bf16.mxu1 %v7637_v21  ;;  %v7695_v21 = vld [vmem:[#allocation19 + $0x6c8] ss:$28 sps:$4 sm:$0xff]  }
 0x61c   : > { %3956 = vmatpush2.bf16.msra.mxu1 %v7635_v23  ;;  %v7703_v23 = vld [vmem:[#allocation19 + $0x694] ss:$28 sps:$4 sm:$0xff]  }
 0x61d   : > { %3957 = vmatprep.subr.bf16.mxu1 %v7643_v25  ;;  %v7701_v25 = vld [vmem:[#allocation19 + $0x690] ss:$28 sps:$4 sm:$0xff]  }
 0x620   : > { %3958 = vmatpush2.bf16.msra.mxu1 %v7641_v27  ;;  %v7709_v27 = vld [vmem:[#allocation19 + $0x65c] ss:$28 sps:$4 sm:$0xff]  }
 0x621   : > { %5473 = vmatprep.subr.bf16.mxu1 %v7649_v29  ;;  %v7707_v29 = vld [vmem:[#allocation19 + $0x658] ss:$28 sps:$4 sm:$0xff]  }
 0x6a3   : > { %v3462_v51 = vpop.f32.mrf.mxu1 }
 0x6a4   : > { %v3463_v39 = vadd.f32 %v3462_v51, %v3341_v31  ;;  %v7715_v51 = vld [vmem:[#allocation19 + $0x624] ss:$28 sps:$4 sm:$0xff]  }
 0x6a5   : > { %v3464_v32 = vpop.f32.mrf.mxu1 }
 0x6a6   : > { %v3465_v36 = vadd.f32 %v3464_v32, %v3345_v30  ;;  %v3471_v45 = vmax.f32 %v3463_v39, 0.0  ;;  %v7718_v32 = vld [vmem:[#allocation19 + $0x26c] ss:$28 sps:$4 sm:$0xff]   ;;  %v7724_v39 = vld [vmem:[#allocation19 + $0x234] ss:$28 sps:$4 sm:$0xff]  }
 0x6a7   : > { %v3466_v34 = vpop.f32.mrf.mxu1 }
 0x6a8   : > { %v3467_v37 = vadd.f32 %v3466_v34, %v3341_v31  ;;  %v3472_v43 = vmax.f32 %v3465_v36, 0.0  ;;  %v7713_v31 = vld [vmem:[#allocation19 + $0x620] ss:$28 sps:$4 sm:$0xff]   ;;  %v7721_v34 = vld [vmem:[#allocation19 + $0x5ec] ss:$28 sps:$4 sm:$0xff]  }
 0x6a9   : > { %v3468_v40 = vpop.f32.mrf.mxu1  ;;  %v7716_v36 = vld [vmem:[#allocation19 + $0x268] ss:$28 sps:$4 sm:$0xff]  }
 0x6aa   : > { %v3469_v41 = vadd.f32 %v3468_v40, %v3345_v30  ;;  %v3473_v42 = vmax.f32 %v3467_v37, 0.0  ;;  %v7710_v30 = vld [vmem:[#allocation19 + $0x2a0] ss:$28 sps:$4 sm:$0xff]   ;;  %v7719_v37 = vld [vmem:[#allocation19 + $0x5e8] ss:$28 sps:$4 sm:$0xff]  }
 0x6ab   : > { %v7727_v40 = vld [vmem:[#allocation19 + $0x5b4] ss:$28 sps:$4 sm:$0xff]  }
 0x6ac   : > { %v3474_v44 = vmax.f32 %v3469_v41, 0.0  ;;  %v3475_v52 = vpack.c.bf16 %v3473_v42, %v3471_v45  ;;  %v7722_v41 = vld [vmem:[#allocation19 + $0x230] ss:$28 sps:$4 sm:$0xff]   ;;  %v7728_v45 = vld [vmem:[#allocation19 + $0x1f8] ss:$28 sps:$4 sm:$0xff]  }
 0x6ad   : > { %v7725_v42 = vld [vmem:[#allocation19 + $0x5b0] ss:$28 sps:$4 sm:$0xff]  }
 0x6ae   : > { %v3476_v46 = vpack.c.bf16 %v3474_v44, %v3472_v43  ;;  %v7730_v43 = vld [vmem:[#allocation19 + $0x1fc] ss:$28 sps:$4 sm:$0xff]  }
 0x6af   : > { %v7733_v44 = vld [vmem:[#allocation19 + $0x57c] ss:$28 sps:$4 sm:$0xff]  }
 0x6b0   : > { %3916 = vmatprep.mubr.bf16.mxu0 %v3476_v46  ;;  %3959 = vmatprep.mubr.bf16.mxu1 %v3476_v46  ;;  %v7731_v46 = vld [vmem:[#allocation19 + $0x578] ss:$28 sps:$4 sm:$0xff]  }
 0x6b1   : > { %3917 = vmatmul.mubr.bf16.vlgmr.msra.gmra.mxu0 %v3475_v52  ;;  %3960 = vmatmul.mubr.bf16.vlgmr.msra.gmra.mxu1 %v3475_v52  ;;  %v7734_v52 = vld [vmem:[#allocation19 + $0x1c0] ss:$28 sps:$4 sm:$0xff]  }
 0x6b2   : > { %5431 = vmatpush1.bf16.msra.mxu0 %v7644_v47  ;;  %5474 = vmatpush1.bf16.msra.mxu1 %v7647_v48  ;;  %v7736_v47 = vld [vmem:[#allocation19 + $0x1c4] ss:$28 sps:$4 sm:$0xff]  }
 0x6b3   : > { %5432 = vmatprep.subr.bf16.mxu0 %v7652_v54  ;;  %5475 = vmatprep.subr.bf16.mxu1 %v7655_v56  ;;  %v7739_v48 = vld [vmem:[#allocation19 + $0x544] ss:$28 sps:$4 sm:$0xff]   ;;  %v7742_v56 = vld [vmem:[#allocation19 + $0x194] ss:$28 sps:$4 sm:$0xff]  }
 0x6b4   : > { %v7737_v54 = vld [vmem:[#allocation19 + $0x540] ss:$28 sps:$4 sm:$0xff]  }
 0x6b6   : > { %5433 = vmatpush1.bf16.msra.mxu0 %v7650_v58  ;;  %5476 = vmatpush1.bf16.msra.mxu1 %v7653_v59  ;;  %v7745_v58 = vld [vmem:[#allocation19 + $0x514] ss:$28 sps:$4 sm:$0xff]  }
 0x6b7   : > { %5434 = vmatprep.subr.bf16.mxu0 %v7658_v4  ;;  %5477 = vmatprep.subr.bf16.mxu1 %v7661_v49  ;;  %v3542_v59 = vld [vmem:[#allocation7 + $0x6] ss:$8 sm:$0xf] }
 0x6ba   : > { %5435 = vmatpush1.bf16.msra.mxu0 %v7656_v60  ;;  %5478 = vmatpush1.bf16.msra.mxu1 %v7659_v11  ;;  %v3551_v60 = vrot.slane %v3542_v59, %v8807_v55  ;;  %v3559_v11 = vrot.slane %v3542_v59, %v8812_v33 }
 0x6bb   : > { %5436 = vmatprep.subr.bf16.mxu0 %v7664_v61  ;;  %5479 = vmatprep.subr.bf16.mxu1 %v7667_v62  ;;  %v3547_v61 = vrot.slane %v3542_v59, %v8804_v53  ;;  %v3555_v62 = vrot.slane %v3542_v59, %v8815_v38  ;;  %v7784_v59 = vld [vmem:[#allocation19 + $0xc] ss:$28 sps:$4 sm:$0xff]  }
 0x6be   : > { %5437 = vmatpush1.bf16.msra.mxu0 %v7662_v63  ;;  %5480 = vmatpush1.bf16.msra.mxu1 %v7665_v57 }
 0x6bf   : > { %5438 = vmatprep.subr.bf16.mxu0 %v7670_v0  ;;  %5481 = vmatprep.subr.bf16.mxu1 %v7673_v35 }
 0x6c2   : > { %5439 = vmatpush1.bf16.msra.mxu0 %v7668_v1  ;;  %5482 = vmatpush1.bf16.msra.mxu1 %v7671_v2 }
 0x6c3   : > { %5440 = vmatprep.subr.bf16.mxu0 %v7676_v3  ;;  %5483 = vmatprep.subr.bf16.mxu1 %v7679_v5 }
 0x6c6   : > { %5441 = vmatpush1.bf16.msra.mxu0 %v7674_v6  ;;  %5484 = vmatpush1.bf16.msra.mxu1 %v7677_v7 }
 0x6c7   : > { %5442 = vmatprep.subr.bf16.mxu0 %v7682_v8  ;;  %5485 = vmatprep.subr.bf16.mxu1 %v7685_v9 }
 0x6ca   : > { %5443 = vmatpush1.bf16.msra.mxu0 %v7680_v10  ;;  %5486 = vmatpush1.bf16.msra.mxu1 %v7683_v12 }
 0x6cb   : > { %5444 = vmatprep.subr.bf16.mxu0 %v7688_v13  ;;  %5487 = vmatprep.subr.bf16.mxu1 %v7691_v15 }
 0x6ce   : > { %5445 = vmatpush1.bf16.msra.mxu0 %v7686_v16  ;;  %5488 = vmatpush1.bf16.msra.mxu1 %v7689_v17 }
 0x6cf   : > { %5446 = vmatprep.subr.bf16.mxu0 %v7694_v18  ;;  %5489 = vmatprep.subr.bf16.mxu1 %v7697_v19 }
 0x6d2   : > { %5447 = vmatpush2.bf16.msra.mxu0 %v7692_v20  ;;  %5490 = vmatpush2.bf16.msra.mxu1 %v7695_v21 }
 0x6d3   : > { %5448 = vmatprep.subr.bf16.mxu0 %v7700_v22  ;;  %5491 = vmatprep.subr.bf16.mxu1 %v7703_v23 }
 0x6d6   : > { %5449 = vmatpush2.bf16.msra.mxu0 %v7698_v24  ;;  %5492 = vmatpush2.bf16.msra.mxu1 %v7701_v25  ;;  %v7740_v24 = vld [vmem:[#allocation19 + $0x190] ss:$28 sps:$4 sm:$0xff]  }
 0x6d7   : > { %5450 = vmatprep.subr.bf16.mxu0 %v7706_v26  ;;  %5493 = vmatprep.subr.bf16.mxu1 %v7709_v27  ;;  %v7743_v25 = vld [vmem:[#allocation19 + $0x510] ss:$28 sps:$4 sm:$0xff]  }
 0x6da   : > { %5451 = vmatpush2.bf16.msra.mxu0 %v7704_v28  ;;  %5494 = vmatpush2.bf16.msra.mxu1 %v7707_v29  ;;  %v7748_v28 = vld [vmem:[#allocation19 + $0x15c] ss:$28 sps:$4 sm:$0xff]  }
 0x6db   : > { %5452 = vmatprep.subr.bf16.mxu0 %v7712_v14  ;;  %5495 = vmatprep.subr.bf16.mxu1 %v7715_v51  ;;  %v7751_v29 = vld [vmem:[#allocation19 + $0x4dc] ss:$28 sps:$4 sm:$0xff]  }
 0x6dc   : > { %v7746_v14 = vld [vmem:[#allocation19 + $0x158] ss:$28 sps:$4 sm:$0xff]  }
 0x6dd   : > { %v7749_v51 = vld [vmem:[#allocation19 + $0x4d8] ss:$28 sps:$4 sm:$0xff]  }
 0x6de   : > { %5453 = vmatpush2.bf16.msra.mxu0 %v7710_v30  ;;  %5496 = vmatpush2.bf16.msra.mxu1 %v7713_v31  ;;  %v7754_v30 = vld [vmem:[#allocation19 + $0x124] ss:$28 sps:$4 sm:$0xff]  }
 0x6df   : > { %5454 = vmatprep.subr.bf16.mxu0 %v7718_v32  ;;  %5497 = vmatprep.subr.bf16.mxu1 %v7721_v34  ;;  %v7757_v31 = vld [vmem:[#allocation19 + $0x4a4] ss:$28 sps:$4 sm:$0xff]  }
 0x6e0   : > { %v7752_v32 = vld [vmem:[#allocation19 + $0x120] ss:$28 sps:$4 sm:$0xff]  }
 0x6e1   : > { %v7755_v34 = vld [vmem:[#allocation19 + $0x4a0] ss:$28 sps:$4 sm:$0xff]  }
 0x6e2   : > { %5455 = vmatpush2.bf16.msra.mxu0 %v7716_v36  ;;  %5498 = vmatpush2.bf16.msra.mxu1 %v7719_v37  ;;  %v7760_v36 = vld [vmem:[#allocation19 + $0xec] ss:$28 sps:$4 sm:$0xff]  }
 0x6e3   : > { %5456 = vmatprep.subr.bf16.mxu0 %v7724_v39  ;;  %5499 = vmatprep.subr.bf16.mxu1 %v7727_v40  ;;  %v7763_v37 = vld [vmem:[#allocation19 + $0x46c] ss:$28 sps:$4 sm:$0xff]  }
 0x6e4   : > { %v7758_v39 = vld [vmem:[#allocation19 + $0xe8] ss:$28 sps:$4 sm:$0xff]  }
 0x6e5   : > { %v7761_v40 = vld [vmem:[#allocation19 + $0x468] ss:$28 sps:$4 sm:$0xff]  }
 0x6e6   : > { %5457 = vmatpush2.bf16.msra.mxu0 %v7722_v41  ;;  %5500 = vmatpush2.bf16.msra.mxu1 %v7725_v42  ;;  %v7766_v41 = vld [vmem:[#allocation19 + $0xb4] ss:$28 sps:$4 sm:$0xff]  }
 0x6e7   : > { %5458 = vmatprep.subr.bf16.mxu0 %v7730_v43  ;;  %5501 = vmatprep.subr.bf16.mxu1 %v7733_v44  ;;  %v7769_v42 = vld [vmem:[#allocation19 + $0x434] ss:$28 sps:$4 sm:$0xff]  }
 0x6e8   : > { %v7764_v43 = vld [vmem:[#allocation19 + $0xb0] ss:$28 sps:$4 sm:$0xff]  }
 0x6e9   : > { %v7767_v44 = vld [vmem:[#allocation19 + $0x430] ss:$28 sps:$4 sm:$0xff]  }
 0x6ea   : > { %5459 = vmatpush2.bf16.msra.mxu0 %v7728_v45  ;;  %5502 = vmatpush2.bf16.msra.mxu1 %v7731_v46  ;;  %v7772_v45 = vld [vmem:[#allocation19 + $0x7c] ss:$28 sps:$4 sm:$0xff]  }
 0x6eb   : > { %5460 = vmatprep.subr.bf16.mxu0 %v7736_v47  ;;  %5503 = vmatprep.subr.bf16.mxu1 %v7739_v48  ;;  %v7775_v46 = vld [vmem:[#allocation19 + $0x3fc] ss:$28 sps:$4 sm:$0xff]  }
 0x6ec   : > { %v7770_v47 = vld [vmem:[#allocation19 + $0x78] ss:$28 sps:$4 sm:$0xff]  }
 0x6ed   : > { %v7773_v48 = vld [vmem:[#allocation19 + $0x3f8] ss:$28 sps:$4 sm:$0xff]  }
 0x6ee   : > { %5461 = vmatpush2.bf16.msra.mxu0 %v7734_v52  ;;  %5504 = vmatpush2.bf16.msra.mxu1 %v7737_v54  ;;  %v7778_v52 = vld [vmem:[#allocation19 + $0x44] ss:$28 sps:$4 sm:$0xff]  }
 0x6ef   : > { %5516 = vmatprep.subr.bf16.mxu0 %v7742_v56  ;;  %5559 = vmatprep.subr.bf16.mxu1 %v7745_v58  ;;  %v7781_v54 = vld [vmem:[#allocation19 + $0x3c4] ss:$28 sps:$4 sm:$0xff]  }
 0x6f0   : > { %v7776_v56 = vld [vmem:[#allocation19 + $0x40] ss:$28 sps:$4 sm:$0xff]  }
 0x6f1   : > { %v7779_v58 = vld [vmem:[#allocation19 + $0x3c0] ss:$28 sps:$4 sm:$0xff]  }
 0x771   : > { %v3918_v4 = vpop.f32.mrf.mxu0  ;;  %v3961_v49 = vpop.f32.mrf.mxu1 }
 0x772   : > { %v3919_v6 = vadd.f32 %v3918_v4, %v3547_v61  ;;  %v3962_v7 = vadd.f32 %v3961_v49, %v3555_v62  ;;  %v7787_v4 = vld [vmem:[#allocation19 + $0x38c] ss:$28 sps:$4 sm:$0xff]  }
 0x773   : > { %v3920_v63 = vpop.f32.mrf.mxu0  ;;  %v3963_v57 = vpop.f32.mrf.mxu1  ;;  %v7782_v49 = vld [vmem:[#allocation19 + $0x8] ss:$28 sps:$4 sm:$0xff]  }
 0x774   : > { %v3921_v1 = vadd.f32 %v3920_v63, %v3551_v60  ;;  %v3964_v2 = vadd.f32 %v3963_v57, %v3559_v11  ;;  %v3970_v20 = vmax.f32 %v3919_v6, 0.0  ;;  %v3972_v21 = vmax.f32 %v3962_v7, 0.0  ;;  %v7791_v63 = vld [vmem:[#allocation19 + $0x6d0] ss:$28 sps:$4 sm:$0xff]   ;;  %v7796_v57 = vld [vmem:[#allocation19 + $0x31c] ss:$28 sps:$4 sm:$0xff]  }
 0x775   : > { %v3922_v0 = vpop.f32.mrf.mxu0  ;;  %v3965_v35 = vpop.f32.mrf.mxu1  ;;  %v7803_v6 = vld [vmem:[#allocation19 + $0x660] ss:$28 sps:$4 sm:$0xff]   ;;  %v7808_v7 = vld [vmem:[#allocation19 + $0x2ac] ss:$28 sps:$4 sm:$0xff]  }
 0x776   : > { %v3923_v3 = vadd.f32 %v3922_v0, %v3547_v61  ;;  %v3966_v5 = vadd.f32 %v3965_v35, %v3555_v62  ;;  %v3971_v16 = vmax.f32 %v3921_v1, 0.0  ;;  %v3973_v17 = vmax.f32 %v3964_v2, 0.0  ;;  %v7793_v61 = vld [vmem:[#allocation19 + $0x6d4] ss:$28 sps:$4 sm:$0xff]   ;;  %v7799_v0 = vld [vmem:[#allocation19 + $0x69c] ss:$28 sps:$4 sm:$0xff]  }
 0x777   : > { %v3924_v8 = vpop.f32.mrf.mxu0  ;;  %v3967_v9 = vpop.f32.mrf.mxu1  ;;  %v7788_v62 = vld [vmem:[#allocation19 + $0x350] ss:$28 sps:$4 sm:$0xff]   ;;  %v7794_v35 = vld [vmem:[#allocation19 + $0x318] ss:$28 sps:$4 sm:$0xff]   ;;  %v7802_v2 = vld [vmem:[#allocation19 + $0x2e4] ss:$28 sps:$4 sm:$0xff]  }
 0x778   : > { %v3925_v10 = vadd.f32 %v3924_v8, %v3551_v60  ;;  %v3968_v12 = vadd.f32 %v3967_v9, %v3559_v11  ;;  %v3974_v13 = vmax.f32 %v3923_v3, 0.0  ;;  %v3976_v15 = vmax.f32 %v3966_v5, 0.0  ;;  %v7785_v60 = vld [vmem:[#allocation19 + $0x388] ss:$28 sps:$4 sm:$0xff]   ;;  %v7790_v11 = vld [vmem:[#allocation19 + $0x354] ss:$28 sps:$4 sm:$0xff]  }
 0x779   : > { %v7797_v1 = vld [vmem:[#allocation19 + $0x698] ss:$28 sps:$4 sm:$0xff]   ;;  %v7805_v3 = vld [vmem:[#allocation19 + $0x664] ss:$28 sps:$4 sm:$0xff]   ;;  %v7811_v8 = vld [vmem:[#allocation19 + $0x62c] ss:$28 sps:$4 sm:$0xff]  }
 0x77a   : > { %v3975_v18 = vmax.f32 %v3925_v10, 0.0  ;;  %v3977_v19 = vmax.f32 %v3968_v12, 0.0  ;;  %v8844_v26 = vpack.c.bf16 %v3974_v13, %v3970_v20  ;;  %v8846_v27 = vpack.c.bf16 %v3976_v15, %v3972_v21  ;;  %v7800_v5 = vld [vmem:[#allocation19 + $0x2e0] ss:$28 sps:$4 sm:$0xff]   ;;  %v7806_v9 = vld [vmem:[#allocation19 + $0x2a8] ss:$28 sps:$4 sm:$0xff]  }
 0x77b   : > { %v7809_v10 = vld [vmem:[#allocation19 + $0x628] ss:$28 sps:$4 sm:$0xff]   ;;  %v7814_v12 = vld [vmem:[#allocation19 + $0x274] ss:$28 sps:$4 sm:$0xff]  }
 0x77c   : > { %v8840_v22 = vpack.c.bf16 %v3975_v18, %v3971_v16  ;;  %v8842_v23 = vpack.c.bf16 %v3977_v19, %v3973_v17  ;;  %v7817_v13 = vld [vmem:[#allocation19 + $0x5f4] ss:$28 sps:$4 sm:$0xff]   ;;  %v7820_v17 = vld [vmem:[#allocation19 + $0x23c] ss:$28 sps:$4 sm:$0xff]   ;;  %v7826_v21 = vld [vmem:[#allocation19 + $0x204] ss:$28 sps:$4 sm:$0xff]  }
 0x77d   : > { %v7812_v15 = vld [vmem:[#allocation19 + $0x270] ss:$28 sps:$4 sm:$0xff]   ;;  %v7823_v18 = vld [vmem:[#allocation19 + $0x5bc] ss:$28 sps:$4 sm:$0xff]  }
 0x77e   : > { %5462 = vmatprep.mubr.bf16.mxu0 %v8840_v22  ;;  %5505 = vmatprep.mubr.bf16.mxu1 %v8842_v23  ;;  %v7815_v16 = vld [vmem:[#allocation19 + $0x5f0] ss:$28 sps:$4 sm:$0xff]   ;;  %v7818_v19 = vld [vmem:[#allocation19 + $0x238] ss:$28 sps:$4 sm:$0xff]  }
 0x77f   : > { %5463 = vmatmul.mubr.bf16.vlgmr.msra.gmra.mxu0 %v8844_v26  ;;  %5506 = vmatmul.mubr.bf16.vlgmr.msra.gmra.mxu1 %v8846_v27  ;;  %v7821_v20 = vld [vmem:[#allocation19 + $0x5b8] ss:$28 sps:$4 sm:$0xff]  }
 0x780   : > { %5517 = vmatpush1.bf16.msra.mxu0 %v7740_v24  ;;  %5560 = vmatpush1.bf16.msra.mxu1 %v7743_v25  ;;  %v7829_v24 = vld [vmem:[#allocation19 + $0x584] ss:$28 sps:$4 sm:$0xff]  }
 0x781   : > { %5548 = vmatprep.mubr.bf16.mxu0 %v8840_v22  ;;  %5591 = vmatprep.mubr.bf16.mxu1 %v8842_v23  ;;  %v7824_v25 = vld [vmem:[#allocation19 + $0x200] ss:$28 sps:$4 sm:$0xff]  }
 0x782   : > { %5518 = vmatprep.subr.bf16.mxu0 %v7748_v28  ;;  %5561 = vmatprep.subr.bf16.mxu1 %v7751_v29  ;;  %v7827_v28 = vld [vmem:[#allocation19 + $0x580] ss:$28 sps:$4 sm:$0xff]   ;;  %v7832_v29 = vld [vmem:[#allocation19 + $0x1cc] ss:$28 sps:$4 sm:$0xff]  }
 0x784   : > { %5519 = vmatpush1.bf16.msra.mxu0 %v7746_v14  ;;  %5562 = vmatpush1.bf16.msra.mxu1 %v7749_v51  ;;  %v7835_v14 = vld [vmem:[#allocation19 + $0x54c] ss:$28 sps:$4 sm:$0xff]  }
 0x785   : > { %5520 = vmatprep.subr.bf16.mxu0 %v7754_v30  ;;  %5563 = vmatprep.subr.bf16.mxu1 %v7757_v31  ;;  %v7830_v51 = vld [vmem:[#allocation19 + $0x1c8] ss:$28 sps:$4 sm:$0xff]   ;;  %v7838_v31 = vld [vmem:[#allocation19 + $0x19c] ss:$28 sps:$4 sm:$0xff]  }
 0x786   : > { %v7833_v30 = vld [vmem:[#allocation19 + $0x548] ss:$28 sps:$4 sm:$0xff]  }
 0x788   : > { %5521 = vmatpush1.bf16.msra.mxu0 %v7752_v32  ;;  %5564 = vmatpush1.bf16.msra.mxu1 %v7755_v34  ;;  %v7841_v32 = vld [vmem:[#allocation19 + $0x51c] ss:$28 sps:$4 sm:$0xff]  }
 0x789   : > { %5522 = vmatprep.subr.bf16.mxu0 %v7760_v36  ;;  %5565 = vmatprep.subr.bf16.mxu1 %v7763_v37  ;;  %v7836_v34 = vld [vmem:[#allocation19 + $0x198] ss:$28 sps:$4 sm:$0xff]   ;;  %v7844_v37 = vld [vmem:[#allocation19 + $0x164] ss:$28 sps:$4 sm:$0xff]  }
 0x78a   : > { %v7839_v36 = vld [vmem:[#allocation19 + $0x518] ss:$28 sps:$4 sm:$0xff]  }
 0x78c   : > { %5523 = vmatpush1.bf16.msra.mxu0 %v7758_v39  ;;  %5566 = vmatpush1.bf16.msra.mxu1 %v7761_v40  ;;  %v7847_v39 = vld [vmem:[#allocation19 + $0x4e4] ss:$28 sps:$4 sm:$0xff]  }
 0x78d   : > { %5524 = vmatprep.subr.bf16.mxu0 %v7766_v41  ;;  %5567 = vmatprep.subr.bf16.mxu1 %v7769_v42  ;;  %v7842_v40 = vld [vmem:[#allocation19 + $0x160] ss:$28 sps:$4 sm:$0xff]   ;;  %v7850_v42 = vld [vmem:[#allocation19 + $0x12c] ss:$28 sps:$4 sm:$0xff]  }
 0x78e   : > { %v7845_v41 = vld [vmem:[#allocation19 + $0x4e0] ss:$28 sps:$4 sm:$0xff]  }
 0x790   : > { %5525 = vmatpush1.bf16.msra.mxu0 %v7764_v43  ;;  %5568 = vmatpush1.bf16.msra.mxu1 %v7767_v44  ;;  %v7853_v43 = vld [vmem:[#allocation19 + $0x4ac] ss:$28 sps:$4 sm:$0xff]  }
 0x791   : > { %5526 = vmatprep.subr.bf16.mxu0 %v7772_v45  ;;  %5569 = vmatprep.subr.bf16.mxu1 %v7775_v46  ;;  %v7848_v44 = vld [vmem:[#allocation19 + $0x128] ss:$28 sps:$4 sm:$0xff]   ;;  %v7856_v46 = vld [vmem:[#allocation19 + $0xf4] ss:$28 sps:$4 sm:$0xff]  }
 0x792   : > { %v7851_v45 = vld [vmem:[#allocation19 + $0x4a8] ss:$28 sps:$4 sm:$0xff]  }
 0x794   : > { %5527 = vmatpush1.bf16.msra.mxu0 %v7770_v47  ;;  %5570 = vmatpush1.bf16.msra.mxu1 %v7773_v48  ;;  %v7859_v47 = vld [vmem:[#allocation19 + $0x474] ss:$28 sps:$4 sm:$0xff]  }
 0x795   : > { %5528 = vmatprep.subr.bf16.mxu0 %v7778_v52  ;;  %5571 = vmatprep.subr.bf16.mxu1 %v7781_v54  ;;  %v7854_v48 = vld [vmem:[#allocation19 + $0xf0] ss:$28 sps:$4 sm:$0xff]   ;;  %v7862_v54 = vld [vmem:[#allocation19 + $0xbc] ss:$28 sps:$4 sm:$0xff]  }
 0x796   : > { %v7857_v52 = vld [vmem:[#allocation19 + $0x470] ss:$28 sps:$4 sm:$0xff]  }
 0x798   : > { %5529 = vmatpush1.bf16.msra.mxu0 %v7776_v56  ;;  %5572 = vmatpush1.bf16.msra.mxu1 %v7779_v58  ;;  %v7865_v56 = vld [vmem:[#allocation19 + $0x43c] ss:$28 sps:$4 sm:$0xff]  }
 0x799   : > { %5530 = vmatprep.subr.bf16.mxu0 %v7784_v59  ;;  %5573 = vmatprep.subr.bf16.mxu1 %v7787_v4  ;;  %v7860_v58 = vld [vmem:[#allocation19 + $0xb8] ss:$28 sps:$4 sm:$0xff]   ;;  %v7868_v4 = vld [vmem:[#allocation19 + $0x84] ss:$28 sps:$4 sm:$0xff]  }
 0x79a   : > { %v7863_v59 = vld [vmem:[#allocation19 + $0x438] ss:$28 sps:$4 sm:$0xff]  }
 0x79c   : > { %5531 = vmatpush1.bf16.msra.mxu0 %v7782_v49  ;;  %5574 = vmatpush1.bf16.msra.mxu1 %v7785_v60  ;;  %v7871_v49 = vld [vmem:[#allocation19 + $0x404] ss:$28 sps:$4 sm:$0xff]  }
 0x79d   : > { %5532 = vmatprep.subr.bf16.mxu0 %v7790_v11  ;;  %5575 = vmatprep.subr.bf16.mxu1 %v7793_v61  ;;  %v7866_v60 = vld [vmem:[#allocation19 + $0x80] ss:$28 sps:$4 sm:$0xff]   ;;  %v7874_v61 = vld [vmem:[#allocation19 + $0x4c] ss:$28 sps:$4 sm:$0xff]  }
 0x79e   : > { %v7869_v11 = vld [vmem:[#allocation19 + $0x400] ss:$28 sps:$4 sm:$0xff]  }
 0x7a0   : > { %5533 = vmatpush2.bf16.msra.mxu0 %v7788_v62  ;;  %5576 = vmatpush2.bf16.msra.mxu1 %v7791_v63  ;;  %v7877_v62 = vld [vmem:[#allocation19 + $0x3cc] ss:$28 sps:$4 sm:$0xff]  }
 0x7a1   : > { %5534 = vmatprep.subr.bf16.mxu0 %v7796_v57  ;;  %5577 = vmatprep.subr.bf16.mxu1 %v7799_v0  ;;  %v7872_v63 = vld [vmem:[#allocation19 + $0x48] ss:$28 sps:$4 sm:$0xff]   ;;  %v7880_v0 = vld [vmem:[#allocation19 + $0x14] ss:$28 sps:$4 sm:$0xff]  }
 0x7a2   : > { %v7875_v57 = vld [vmem:[#allocation19 + $0x3c8] ss:$28 sps:$4 sm:$0xff]  }
 0x7a4   : > { %5535 = vmatpush2.bf16.msra.mxu0 %v7794_v35  ;;  %5578 = vmatpush2.bf16.msra.mxu1 %v7797_v1  ;;  %v7883_v35 = vld [vmem:[#allocation19 + $0x394] ss:$28 sps:$4 sm:$0xff]  }
 0x7a5   : > { %5536 = vmatprep.subr.bf16.mxu0 %v7802_v2  ;;  %5579 = vmatprep.subr.bf16.mxu1 %v7805_v3  ;;  %v7878_v1 = vld [vmem:[#allocation19 + $0x10] ss:$28 sps:$4 sm:$0xff]   ;;  %v7886_v3 = vld [vmem:[#allocation19 + $0x35c] ss:$28 sps:$4 sm:$0xff]  }
 0x7a6   : > { %v7881_v2 = vld [vmem:[#allocation19 + $0x390] ss:$28 sps:$4 sm:$0xff]  }
 0x7a8   : > { %5537 = vmatpush2.bf16.msra.mxu0 %v7800_v5  ;;  %5580 = vmatpush2.bf16.msra.mxu1 %v7803_v6  ;;  %v7889_v5 = vld [vmem:[#allocation19 + $0x6dc] ss:$28 sps:$4 sm:$0xff]  }
 0x7a9   : > { %5538 = vmatprep.subr.bf16.mxu0 %v7808_v7  ;;  %5581 = vmatprep.subr.bf16.mxu1 %v7811_v8  ;;  %v7884_v6 = vld [vmem:[#allocation19 + $0x358] ss:$28 sps:$4 sm:$0xff]   ;;  %v7892_v8 = vld [vmem:[#allocation19 + $0x324] ss:$28 sps:$4 sm:$0xff]  }
 0x7aa   : > { %v7887_v7 = vld [vmem:[#allocation19 + $0x6d8] ss:$28 sps:$4 sm:$0xff]  }
 0x7ac   : > { %5539 = vmatpush2.bf16.msra.mxu0 %v7806_v9  ;;  %5582 = vmatpush2.bf16.msra.mxu1 %v7809_v10  ;;  %v7895_v9 = vld [vmem:[#allocation19 + $0x6a4] ss:$28 sps:$4 sm:$0xff]  }
 0x7ad   : > { %5540 = vmatprep.subr.bf16.mxu0 %v7814_v12  ;;  %5583 = vmatprep.subr.bf16.mxu1 %v7817_v13  ;;  %v7890_v10 = vld [vmem:[#allocation19 + $0x320] ss:$28 sps:$4 sm:$0xff]   ;;  %v7898_v13 = vld [vmem:[#allocation19 + $0x2ec] ss:$28 sps:$4 sm:$0xff]  }
 0x7ae   : > { %v7893_v12 = vld [vmem:[#allocation19 + $0x6a0] ss:$28 sps:$4 sm:$0xff]  }
 0x7b0   : > { %5541 = vmatpush2.bf16.msra.mxu0 %v7812_v15  ;;  %5584 = vmatpush2.bf16.msra.mxu1 %v7815_v16  ;;  %v7901_v15 = vld [vmem:[#allocation19 + $0x66c] ss:$28 sps:$4 sm:$0xff]  }
 0x7b1   : > { %5542 = vmatprep.subr.bf16.mxu0 %v7820_v17  ;;  %5585 = vmatprep.subr.bf16.mxu1 %v7823_v18  ;;  %v7896_v16 = vld [vmem:[#allocation19 + $0x2e8] ss:$28 sps:$4 sm:$0xff]   ;;  %v7904_v18 = vld [vmem:[#allocation19 + $0x2b4] ss:$28 sps:$4 sm:$0xff]  }
 0x7b2   : > { %v7899_v17 = vld [vmem:[#allocation19 + $0x668] ss:$28 sps:$4 sm:$0xff]  }
 0x7b4   : > { %5543 = vmatpush2.bf16.msra.mxu0 %v7818_v19  ;;  %5586 = vmatpush2.bf16.msra.mxu1 %v7821_v20  ;;  %v7907_v19 = vld [vmem:[#allocation19 + $0x634] ss:$28 sps:$4 sm:$0xff]  }
 0x7b5   : > { %5544 = vmatprep.subr.bf16.mxu0 %v7826_v21  ;;  %5587 = vmatprep.subr.bf16.mxu1 %v7829_v24  ;;  %v7902_v20 = vld [vmem:[#allocation19 + $0x2b0] ss:$28 sps:$4 sm:$0xff]   ;;  %v7910_v24 = vld [vmem:[#allocation19 + $0x27c] ss:$28 sps:$4 sm:$0xff]  }
 0x7b6   : > { %v7905_v21 = vld [vmem:[#allocation19 + $0x630] ss:$28 sps:$4 sm:$0xff]  }
 0x7b8   : > { %5545 = vmatpush2.bf16.msra.mxu0 %v7824_v25  ;;  %5588 = vmatpush2.bf16.msra.mxu1 %v7827_v28  ;;  %v7913_v25 = vld [vmem:[#allocation19 + $0x5fc] ss:$28 sps:$4 sm:$0xff]  }
 0x7b9   : > { %5546 = vmatprep.subr.bf16.mxu0 %v7832_v29  ;;  %5589 = vmatprep.subr.bf16.mxu1 %v7835_v14  ;;  %v7908_v28 = vld [vmem:[#allocation19 + $0x278] ss:$28 sps:$4 sm:$0xff]   ;;  %v7916_v14 = vld [vmem:[#allocation19 + $0x244] ss:$28 sps:$4 sm:$0xff]  }
 0x7ba   : > { %v7911_v29 = vld [vmem:[#allocation19 + $0x5f8] ss:$28 sps:$4 sm:$0xff]  }
 0x7bc   : > { %5547 = vmatpush2.bf16.msra.mxu0 %v7830_v51  ;;  %5590 = vmatpush2.bf16.msra.mxu1 %v7833_v30  ;;  %v7919_v51 = vld [vmem:[#allocation19 + $0x5c4] ss:$28 sps:$4 sm:$0xff]  }
 0x7bd   : > { %5602 = vmatprep.subr.bf16.mxu0 %v7838_v31  ;;  %5645 = vmatprep.subr.bf16.mxu1 %v7841_v32  ;;  %v7914_v30 = vld [vmem:[#allocation19 + $0x240] ss:$28 sps:$4 sm:$0xff]   ;;  %v7922_v32 = vld [vmem:[#allocation19 + $0x20c] ss:$28 sps:$4 sm:$0xff]  }
 0x7be   : > { %v7917_v31 = vld [vmem:[#allocation19 + $0x5c0] ss:$28 sps:$4 sm:$0xff]  }
 0x7bf   : > { %5549 = vmatmul.mubr.bf16.vlgmr.msra.gmra.mxu0 %v8844_v26  ;;  %5592 = vmatmul.mubr.bf16.vlgmr.msra.gmra.mxu1 %v8846_v27 }
 0x7c0   : > { %5603 = vmatpush1.bf16.msra.mxu0 %v7836_v34  ;;  %5634 = vmatprep.mubr.bf16.mxu0 %v8840_v22  ;;  %v7925_v34 = vld [vmem:[#allocation19 + $0x58c] ss:$28 sps:$4 sm:$0xff]  }
 0x7c1   : > { %5646 = vmatpush1.bf16.msra.mxu1 %v7839_v36  ;;  %5677 = vmatprep.mubr.bf16.mxu1 %v8842_v23  ;;  %v7920_v36 = vld [vmem:[#allocation19 + $0x208] ss:$28 sps:$4 sm:$0xff]  }
 0x7c2   : > { %5604 = vmatprep.subr.bf16.mxu0 %v7844_v37  ;;  %5647 = vmatprep.subr.bf16.mxu1 %v7847_v39  ;;  %v7923_v37 = vld [vmem:[#allocation19 + $0x588] ss:$28 sps:$4 sm:$0xff]   ;;  %v7928_v39 = vld [vmem:[#allocation19 + $0x1d4] ss:$28 sps:$4 sm:$0xff]  }
 0x7c4   : > { %5605 = vmatpush1.bf16.msra.mxu0 %v7842_v40  ;;  %v7931_v40 = vld [vmem:[#allocation19 + $0x554] ss:$28 sps:$4 sm:$0xff]  }
 0x7c5   : > { %5648 = vmatpush1.bf16.msra.mxu1 %v7845_v41  ;;  %5606 = vmatprep.subr.bf16.mxu0 %v7850_v42  ;;  %v7926_v41 = vld [vmem:[#allocation19 + $0x1d0] ss:$28 sps:$4 sm:$0xff]  }
 0x7c6   : > { %5649 = vmatprep.subr.bf16.mxu1 %v7853_v43  ;;  %v7929_v42 = vld [vmem:[#allocation19 + $0x550] ss:$28 sps:$4 sm:$0xff]   ;;  %v7932_v43 = vld [vmem:[#allocation19 + $0x360] ss:$28 sps:$4 sm:$0xff]  }
 0x7c8   : > { %5607 = vmatpush1.bf16.msra.mxu0 %v7848_v44  ;;  %v7933_v44 = vld [vmem:[#allocation19 + $0x6e0] ss:$28 sps:$4 sm:$0xff]  }
 0x7c9   : > { %5650 = vmatpush1.bf16.msra.mxu1 %v7851_v45  ;;  %5608 = vmatprep.subr.bf16.mxu0 %v7856_v46  ;;  %v7934_v45 = vld [vmem:[#allocation19 + $0x1a0] ss:$28 sps:$4 sm:$0xff]  }
 0x7ca   : > { %5651 = vmatprep.subr.bf16.mxu1 %v7859_v47  ;;  %v7935_v46 = vld [vmem:[#allocation19 + $0x520] ss:$28 sps:$4 sm:$0xff]   ;;  %v7936_v47 = vld [vmem:[#allocation19 + $0x328] ss:$28 sps:$4 sm:$0xff]  }
 0x7cc   : > { %5609 = vmatpush1.bf16.msra.mxu0 %v7854_v48  ;;  %v7937_v48 = vld [vmem:[#allocation19 + $0x6a8] ss:$28 sps:$4 sm:$0xff]  }
 0x7cd   : > { %5652 = vmatpush1.bf16.msra.mxu1 %v7857_v52  ;;  %5610 = vmatprep.subr.bf16.mxu0 %v7862_v54  ;;  %v7938_v52 = vld [vmem:[#allocation19 + $0x168] ss:$28 sps:$4 sm:$0xff]  }
 0x7ce   : > { %5653 = vmatprep.subr.bf16.mxu1 %v7865_v56  ;;  %v7939_v54 = vld [vmem:[#allocation19 + $0x4e8] ss:$28 sps:$4 sm:$0xff]   ;;  %v7940_v56 = vld [vmem:[#allocation19 + $0x2f0] ss:$28 sps:$4 sm:$0xff]  }
 0x7d0   : > { %5611 = vmatpush1.bf16.msra.mxu0 %v7860_v58  ;;  %v7941_v58 = vld [vmem:[#allocation19 + $0x670] ss:$28 sps:$4 sm:$0xff]  }
 0x7d1   : > { %5654 = vmatpush1.bf16.msra.mxu1 %v7863_v59  ;;  %5612 = vmatprep.subr.bf16.mxu0 %v7868_v4  ;;  %v7942_v59 = vld [vmem:[#allocation19 + $0x130] ss:$28 sps:$4 sm:$0xff]  }
 0x7d2   : > { %5655 = vmatprep.subr.bf16.mxu1 %v7871_v49  ;;  %v7943_v4 = vld [vmem:[#allocation19 + $0x4b0] ss:$28 sps:$4 sm:$0xff]   ;;  %v7944_v49 = vld [vmem:[#allocation19 + $0x2b8] ss:$28 sps:$4 sm:$0xff]  }
 0x7d4   : > { %5613 = vmatpush1.bf16.msra.mxu0 %v7866_v60  ;;  %v7945_v60 = vld [vmem:[#allocation19 + $0x638] ss:$28 sps:$4 sm:$0xff]  }
 0x7d5   : > { %5656 = vmatpush1.bf16.msra.mxu1 %v7869_v11  ;;  %5614 = vmatprep.subr.bf16.mxu0 %v7874_v61  ;;  %v7946_v11 = vld [vmem:[#allocation19 + $0xf8] ss:$28 sps:$4 sm:$0xff]   ;;  %v7948_v61 = vld [vmem:[#allocation19 + $0x280] ss:$28 sps:$4 sm:$0xff]  }
 0x7d6   : > { %5657 = vmatprep.subr.bf16.mxu1 %v7877_v62  ;;  %v7949_v62 = vld [vmem:[#allocation19 + $0x600] ss:$28 sps:$4 sm:$0xff]  }
 0x7d8   : > { %5615 = vmatpush1.bf16.msra.mxu0 %v7872_v63  ;;  %v7951_v63 = vld [vmem:[#allocation19 + $0x440] ss:$28 sps:$4 sm:$0xff]  }
 0x7d9   : > { %5658 = vmatpush1.bf16.msra.mxu1 %v7875_v57  ;;  %5616 = vmatprep.subr.bf16.mxu0 %v7880_v0  ;;  %v7952_v57 = vld [vmem:[#allocation19 + $0x248] ss:$28 sps:$4 sm:$0xff]  }
 0x7da   : > { %5659 = vmatprep.subr.bf16.mxu1 %v7883_v35  ;;  %v7953_v0 = vld [vmem:[#allocation19 + $0x5c8] ss:$28 sps:$4 sm:$0xff]  }
 0x7db   : > { %v7954_v35 = vld [vmem:[#allocation19 + $0x88] ss:$28 sps:$4 sm:$0xff]  }
 0x7dc   : > { %5617 = vmatpush1.bf16.msra.mxu0 %v7878_v1  ;;  %v7955_v1 = vld [vmem:[#allocation19 + $0x408] ss:$28 sps:$4 sm:$0xff]  }
 0x7dd   : > { %5660 = vmatpush1.bf16.msra.mxu1 %v7881_v2  ;;  %5618 = vmatprep.subr.bf16.mxu0 %v7886_v3  ;;  %v7956_v2 = vld [vmem:[#allocation19 + $0x210] ss:$28 sps:$4 sm:$0xff]  }
 0x7de   : > { %5661 = vmatprep.subr.bf16.mxu1 %v7889_v5  ;;  %v7957_v3 = vld [vmem:[#allocation19 + $0x590] ss:$28 sps:$4 sm:$0xff]  }
 0x7df   : > { %v7958_v5 = vld [vmem:[#allocation19 + $0x50] ss:$28 sps:$4 sm:$0xff]  }
 0x7e0   : > { %5619 = vmatpush2.bf16.msra.mxu0 %v7884_v6  ;;  %v7959_v6 = vld [vmem:[#allocation19 + $0x3d0] ss:$28 sps:$4 sm:$0xff]  }
 0x7e1   : > { %5662 = vmatpush2.bf16.msra.mxu1 %v7887_v7  ;;  %5620 = vmatprep.subr.bf16.mxu0 %v7892_v8  ;;  %v7960_v7 = vld [vmem:[#allocation19 + $0x1d8] ss:$28 sps:$4 sm:$0xff]  }
 0x7e2   : > { %5663 = vmatprep.subr.bf16.mxu1 %v7895_v9  ;;  %v7961_v8 = vld [vmem:[#allocation19 + $0x558] ss:$28 sps:$4 sm:$0xff]  }
 0x7e3   : > { %v7962_v9 = vld [vmem:[#allocation19 + $0x18] ss:$28 sps:$4 sm:$0xff]  }
 0x7e4   : > { %5621 = vmatpush2.bf16.msra.mxu0 %v7890_v10  ;;  %v7963_v10 = vld [vmem:[#allocation19 + $0x398] ss:$28 sps:$4 sm:$0xff]  }
 0x7e5   : > { %5664 = vmatpush2.bf16.msra.mxu1 %v7893_v12  ;;  %5622 = vmatprep.subr.bf16.mxu0 %v7898_v13  ;;  %v4239_v12 = vld [vmem:[#allocation7 + $0x7] ss:$8 sm:$0xf] }
 0x7e6   : > { %5665 = vmatprep.subr.bf16.mxu1 %v7901_v15  ;;  %v4240_v13 = vld [vmem:[#allocation7 + $0x7] ss:$8 sm:$0xf0] }
 0x7e7   : > { %v8864_v15 = vor.u32 %v4240_v13, %v4239_v12 }
 0x7e8   : > { %5623 = vmatpush2.bf16.msra.mxu0 %v7896_v16 }
 0x7e9   : > { %5666 = vmatpush2.bf16.msra.mxu1 %v7899_v17  ;;  %5624 = vmatprep.subr.bf16.mxu0 %v7904_v18  ;;  %v4246_v16 = vrot.slane %v8864_v15, %v8804_v53  ;;  %v4250_v17 = vrot.slane %v8864_v15, %v8807_v55 }
 0x7ea   : > { %5667 = vmatprep.subr.bf16.mxu1 %v7907_v19 }
 0x7ec   : > { %5625 = vmatpush2.bf16.msra.mxu0 %v7902_v20 }
 0x7ed   : > { %5668 = vmatpush2.bf16.msra.mxu1 %v7905_v21  ;;  %5626 = vmatprep.subr.bf16.mxu0 %v7910_v24 }
 0x7ee   : > { %5669 = vmatprep.subr.bf16.mxu1 %v7913_v25 }
 0x7f0   : > { %5627 = vmatpush2.bf16.msra.mxu0 %v7908_v28 }
 0x7f1   : > { %5670 = vmatpush2.bf16.msra.mxu1 %v7911_v29  ;;  %5628 = vmatprep.subr.bf16.mxu0 %v7916_v14 }
 0x7f2   : > { %5671 = vmatprep.subr.bf16.mxu1 %v7919_v51 }
 0x7f4   : > { %5629 = vmatpush2.bf16.msra.mxu0 %v7914_v30 }
 0x7f5   : > { %5672 = vmatpush2.bf16.msra.mxu1 %v7917_v31  ;;  %5630 = vmatprep.subr.bf16.mxu0 %v7922_v32 }
 0x7f6   : > { %5673 = vmatprep.subr.bf16.mxu1 %v7925_v34 }
 0x7f8   : > { %5631 = vmatpush2.bf16.msra.mxu0 %v7920_v36 }
 0x7f9   : > { %5674 = vmatpush2.bf16.msra.mxu1 %v7923_v37  ;;  %5632 = vmatprep.subr.bf16.mxu0 %v7928_v39 }
 0x7fa   : > { %5675 = vmatprep.subr.bf16.mxu1 %v7931_v40 }
 0x7fc   : > { %5633 = vmatpush2.bf16.msra.mxu0 %v7926_v41 }
 0x7fd   : > { %5676 = vmatpush2.bf16.msra.mxu1 %v7929_v42  ;;  %6804 = vmatprep.subr.bf16.mxu0 %v7932_v43 }
 0x7fe   : > { %6826 = vmatprep.subr.bf16.mxu1 %v7933_v44 }
 0x7ff   : > { %5635 = vmatmul.mubr.bf16.vlgmr.msra.gmra.mxu0 %v8844_v26 }
 0x800   : > { %5678 = vmatmul.mubr.bf16.vlgmr.msra.gmra.mxu1 %v8846_v27  ;;  %6805 = vmatpush3.bf16.msra.mxu0 %v7934_v45 }
 0x801   : > { %5720 = vmatprep.mubr.bf16.mxu0 %v8840_v22  ;;  %6827 = vmatpush3.bf16.msra.mxu1 %v7935_v46  ;;  %v7947_v22 = vld [vmem:[#allocation19 + $0x478] ss:$28 sps:$4 sm:$0xff]  }
 0x802   : > { %5761 = vmatprep.mubr.bf16.mxu1 %v8842_v23  ;;  %6806 = vmatprep.subr.bf16.mxu0 %v7936_v47  ;;  %v7950_v23 = vld [vmem:[#allocation19 + $0xc0] ss:$28 sps:$4 sm:$0xff]  }
 0x803   : > { %6828 = vmatprep.subr.bf16.mxu1 %v7937_v48 }
 0x804   : > { %6807 = vmatpush3.bf16.msra.mxu0 %v7938_v52 }
 0x805   : > { %6829 = vmatpush3.bf16.msra.mxu1 %v7939_v54  ;;  %6808 = vmatprep.subr.bf16.mxu0 %v7940_v56 }
 0x806   : > { %6830 = vmatprep.subr.bf16.mxu1 %v7941_v58 }
 0x808   : > { %6809 = vmatpush3.bf16.msra.mxu0 %v7942_v59 }
 0x809   : > { %6831 = vmatpush3.bf16.msra.mxu1 %v7943_v4  ;;  %6810 = vmatprep.subr.bf16.mxu0 %v7944_v49 }
 0x80a   : > { %6832 = vmatprep.subr.bf16.mxu1 %v7945_v60 }
 0x80c   : > { %6811 = vmatpush3.bf16.msra.mxu0 %v7946_v11 }
 0x80d   : > { %6833 = vmatpush3.bf16.msra.mxu1 %v7947_v22  ;;  %6812 = vmatprep.subr.bf16.mxu0 %v7948_v61 }
 0x80e   : > { %6834 = vmatprep.subr.bf16.mxu1 %v7949_v62 }
 0x810   : > { %6813 = vmatpush3.bf16.msra.mxu0 %v7950_v23 }
 0x811   : > { %6835 = vmatpush3.bf16.msra.mxu1 %v7951_v63  ;;  %6814 = vmatprep.subr.bf16.mxu0 %v7952_v57 }
 0x812   : > { %6836 = vmatprep.subr.bf16.mxu1 %v7953_v0 }
 0x814   : > { %6815 = vmatpush3.bf16.msra.mxu0 %v7954_v35 }
 0x815   : > { %6837 = vmatpush3.bf16.msra.mxu1 %v7955_v1  ;;  %6816 = vmatprep.subr.bf16.mxu0 %v7956_v2 }
 0x816   : > { %6838 = vmatprep.subr.bf16.mxu1 %v7957_v3 }
 0x818   : > { %6817 = vmatpush3.bf16.msra.mxu0 %v7958_v5 }
 0x819   : > { %6839 = vmatpush3.bf16.msra.mxu1 %v7959_v6  ;;  %6818 = vmatprep.subr.bf16.mxu0 %v7960_v7 }
 0x81a   : > { %6840 = vmatprep.subr.bf16.mxu1 %v7961_v8 }
 0x81c   : > { %6819 = vmatpush3.bf16.msra.mxu0 %v7962_v9 }
 0x81d   : > { %6841 = vmatpush3.bf16.msra.mxu1 %v7963_v10 }
 0x81f   : > { %5721 = vmatmul.mubr.bf16.vlgmr.msra.gmra.mxu0 %v8844_v26 }
 0x820   : > { %5762 = vmatmul.mubr.bf16.vlgmr.msra.gmra.mxu1 %v8846_v27 }
 0x83f   : > { %v5464_v18 = vpop.f32.mrf.mxu0  ;;  %v5507_v19 = vpop.f32.mrf.mxu1 }
 0x840   : > { %v5465_v20 = vadd.f32 %v5464_v18, %v4246_v16 }
 0x841   : > { %v5466_v21 = vpop.f32.mrf.mxu0  ;;  %v5509_v24 = vpop.f32.mrf.mxu1 }
 0x842   : > { %v5467_v25 = vadd.f32 %v5466_v21, %v4250_v17  ;;  %v5508_v28 = vadd.f32 %v5507_v19, %v5465_v20 }
 0x843   : > { %v5468_v26 = vpop.f32.mrf.mxu0  ;;  %v5511_v27 = vpop.f32.mrf.mxu1 }
 0x844   : > { %v5510_v29 = vadd.f32 %v5509_v24, %v5467_v25  ;;  %v5469_v14 = vadd.f32 %v5468_v26, %v4246_v16 }
 0x845   : > { %v5470_v51 = vpop.f32.mrf.mxu0  ;;  %v5513_v55 = vpop.f32.mrf.mxu1 }
 0x846   : > { %v6763_v53 = vpack.c.bf16 %v5510_v29, %v5508_v28  ;;  %v5471_v30 = vadd.f32 %v5470_v51, %v4250_v17  ;;  %v5512_v31 = vadd.f32 %v5511_v27, %v5469_v14 }
 0x848   : > { %5814 = vst [vmem:[%s8872_s16] sm:$0xff] %v6763_v53  ;;  %v5514_v32 = vadd.f32 %v5513_v55, %v5471_v30 }
 0x84a   : > { %v6767_v34 = vpack.c.bf16 %v5514_v32, %v5512_v31 }
 0x84c   : > { %5818 = vst [vmem:[%s8872_s16 + $0x1c] sm:$0xff] %v6767_v34 }
 0x84d   : > { %8273 = shalt.err (!%p8270_p11)
}
 0x84e   : > { %s8274_s25 = scalar_lea.hbm %s8883_s17, 512  ;;  %s8278_s28 = scalar_lea.hbm %s8986_s12, 1024 }
 0x84f   : > { %p8275_p12 = scmp.ne.s32.totalorder %s8883_s17, %s8274_s25  ;;  %p8279_p1 = scmp.lt.s32.totalorder %s8883_s17, %s8986_s12 }
 0x850   : > { %p8280_p3 = scmp.lt.s32.totalorder %s8278_s28, %s8274_s25 }
 0x851   : > { %p8276_p13 = pnand %p8275_p12, %p9042_p0 }
 0x852   : > { %p8281_p5 = por %p8280_p3, %p8279_p1 }
 0x853   : > { %p8277_p10 = pneg %p8276_p13 }
 0x855   : > { %p8282_p6 = pnand %p8281_p5, %p8277_p10 }
 0x857   : > { %8285 = shalt.err (!%p8282_p6)
}
 0x858   : > { %s8403_s5 = smov 256   ;;  %s8404_s6 = smov 16   ;;  %v4254_v36 = vrot.slane %v8864_v15, %v8815_v38  ;;  %v4258_v37 = vrot.slane %v8864_v15, %v8812_v33  ;;  %v4261_v49 = vsub.s32 4, %v8801_v50  ;;  %v4265_v60 = vsub.s32 5, %v8801_v50 }
 0x859   : > { %6913 = dma.vmem_to_hbm [thread:$0]  (%p9042_p0), %s8877_s30, 512, %s8883_s17, %s5832_s29, %s8403_s5, %s8403_s5, %s8404_s6   ;;  %v4269_v16 = vsub.s32 6, %v8801_v50 }
 0x85a   : > { %v4262_v11 = vrot.slane %v8864_v15, %v4261_v49  ;;  %v4266_v22 = vrot.slane %v8864_v15, %v4265_v60  ;;  %s5846_s30 = sshll.u32 %s8872_s16, 4  ;;  %s6871_s8 = smul.u32 896, %s8494_s27  ;;  %s8924_s30 = int_to_ptr.vmem [resolvable:$true] %s5846_s30 }
 0x85b   : > { %v4270_v19 = vrot.slane %v8864_v15, %v4269_v16  ;;  %s5827_s10 = scalar_lea.sflag [#allocation4], %s8730_s20  ;;  %s8286_s3 = scalar_lea.vmem %s8924_s30, 896 }
 0x85c   : > { %s8930_s29 = scalar_lea.hbm %s8985_s11, %s6871_s8  ;;  %p8287_p8 = scmp.ne.s32.totalorder %s8924_s30, %s8286_s3 }
 0x85d   : > { %s8405_s27 = smov [#allocation20]  }
 0x85e   : > { %p8288_p7 = pnand %p8287_p8, %p9042_p0  ;;  %s8290_s19 = sshll.u32 %s8405_s27, 4  ;;  %s8291_s19 = int_to_ptr.vmem [resolvable:$false] %s8290_s19 }
 0x85f   : > { %s8292_s4 = scalar_lea.vmem %s8291_s19, 1792  ;;  %p8293_p4 = scmp.lt.s32.totalorder %s8924_s30, %s8291_s19 }
 0x860   : > { %p8289_p2 = pneg %p8288_p7  ;;  %p8294_p9 = scmp.lt.s32.totalorder %s8292_s4, %s8286_s3 }
 0x862   : > { %p8295_p11 = por %p8294_p9, %p8293_p4 }
 0x864   : > { %p8296_p12 = pnand %p8295_p11, %p8289_p2 }
 0x87f   : > { %v5550_v39 = vpop.f32.mrf.mxu0  ;;  %v5593_v40 = vpop.f32.mrf.mxu1 }
 0x880   : > { %v5551_v41 = vadd.f32 %v5550_v39, %v4254_v36 }
 0x881   : > { %v5552_v42 = vpop.f32.mrf.mxu0  ;;  %v5595_v43 = vpop.f32.mrf.mxu1 }
 0x882   : > { %v5553_v44 = vadd.f32 %v5552_v42, %v4258_v37  ;;  %v5594_v47 = vadd.f32 %v5593_v40, %v5551_v41 }
 0x883   : > { %v5554_v45 = vpop.f32.mrf.mxu0  ;;  %v5597_v46 = vpop.f32.mrf.mxu1 }
 0x884   : > { %v5596_v48 = vadd.f32 %v5595_v43, %v5553_v44  ;;  %v5555_v52 = vadd.f32 %v5554_v45, %v4254_v36 }
 0x885   : > { %v5556_v54 = vpop.f32.mrf.mxu0  ;;  %v5599_v38 = vpop.f32.mrf.mxu1 }
 0x886   : > { %v6764_v56 = vpack.c.bf16 %v5596_v48, %v5594_v47  ;;  %v5557_v58 = vadd.f32 %v5556_v54, %v4258_v37  ;;  %v5598_v59 = vadd.f32 %v5597_v46, %v5555_v52 }
 0x888   : > { %5815 = vst [vmem:[%s8872_s16 + $0x8] sm:$0xff] %v6764_v56  ;;  %v5600_v33 = vadd.f32 %v5599_v38, %v5557_v58 }
 0x88a   : > { %v6768_v4 = vpack.c.bf16 %v5600_v33, %v5598_v59 }
 0x88c   : > { %5819 = vst [vmem:[%s8872_s16 + $0x24] sm:$0xff] %v6768_v4 }
 0x8bf   : > { %v5636_v61 = vpop.f32.mrf.mxu0 }
 0x8c0   : > { %v5637_v62 = vadd.f32 %v5636_v61, %v4262_v11  ;;  %v5679_v23 = vpop.f32.mrf.mxu1 }
 0x8c1   : > { %v5638_v63 = vpop.f32.mrf.mxu0 }
 0x8c2   : > { %v5639_v57 = vadd.f32 %v5638_v63, %v4266_v22  ;;  %v5681_v0 = vpop.f32.mrf.mxu1  ;;  %v5680_v1 = vadd.f32 %v5679_v23, %v5637_v62 }
 0x8c3   : > { %v5640_v35 = vpop.f32.mrf.mxu0 }
 0x8c4   : > { %v5682_v2 = vadd.f32 %v5681_v0, %v5639_v57  ;;  %v5641_v3 = vadd.f32 %v5640_v35, %v4262_v11  ;;  %v5683_v5 = vpop.f32.mrf.mxu1 }
 0x8c5   : > { %v5642_v6 = vpop.f32.mrf.mxu0 }
 0x8c6   : > { %v6765_v7 = vpack.c.bf16 %v5682_v2, %v5680_v1  ;;  %v5643_v8 = vadd.f32 %v5642_v6, %v4266_v22  ;;  %v5685_v9 = vpop.f32.mrf.mxu1  ;;  %v5684_v10 = vadd.f32 %v5683_v5, %v5641_v3 }
 0x8c8   : > { %5816 = vst [vmem:[%s8872_s16 + $0x10] sm:$0xff] %v6765_v7  ;;  %v5686_v12 = vadd.f32 %v5685_v9, %v5643_v8 }
 0x8ca   : > { %v6769_v13 = vpack.c.bf16 %v5686_v12, %v5684_v10 }
 0x8cc   : > { %5820 = vst [vmem:[%s8872_s16 + $0x2c] sm:$0xff] %v6769_v13 }
 0x8df   : > { %v6820_v17 = vpop.f32.mrf.mxu0 }
 0x8e0   : > { %v6842_v18 = vpop.f32.mrf.mxu1 }
 0x8e1   : > { %v6821_v20 = vpop.f32.mrf.mxu0 }
 0x8e2   : > { %v6822_v21 = vadd.f32 %v6821_v20, %v6820_v17  ;;  %v6843_v24 = vpop.f32.mrf.mxu1 }
 0x8e3   : > { %v6823_v25 = vpop.f32.mrf.mxu0  ;;  %v6844_v27 = vadd.f32 %v6843_v24, %v6842_v18 }
 0x8e4   : > { %v5723_v26 = vadd.f32 %v6822_v21, %v4270_v19  ;;  %v6845_v28 = vpop.f32.mrf.mxu1 }
 0x8e5   : > { %v6824_v29 = vpop.f32.mrf.mxu0 }
 0x8e6   : > { %v5764_v14 = vadd.f32 %v6844_v27, %v5723_v26  ;;  %v6825_v51 = vadd.f32 %v6824_v29, %v6823_v25  ;;  %v6846_v50 = vpop.f32.mrf.mxu1 }
 0x8e7   : > { %v6847_v15 = vadd.f32 %v6846_v50, %v6845_v28 }
 0x8e8   : > { %v6766_v53 = vpack.c.bf16 %v5764_v14, %v5764_v14  ;;  %v5726_v30 = vadd.f32 %v6825_v51, %v4270_v19 }
 0x8ea   : > { %5817 = vst [vmem:[%s8872_s16 + $0x18] sm:$0xf] %v6766_v53  ;;  %v5767_v55 = vadd.f32 %v6847_v15, %v5726_v30 }
 0x8ec   : > { %v6770_v31 = vpack.c.bf16 %v5767_v55, %v5767_v55 }
 0x8ee   : > { %5821 = vst [vmem:[%s8872_s16 + $0x34] sm:$0xf] %v6770_v31 }
 0x8ef   : > { %8299 = shalt.err (!%p8296_p12)
}
 0x8f0   : > { %s8300_s16 = scalar_lea.hbm %s8930_s29, 896  ;;  %s8304_s9 = scalar_lea.hbm %s8985_s11, 1792 }
 0x8f1   : > { %p8301_p13 = scmp.ne.s32.totalorder %s8930_s29, %s8300_s16  ;;  %p8305_p3 = scmp.lt.s32.totalorder %s8930_s29, %s8985_s11 }
 0x8f2   : > { %p8306_p5 = scmp.lt.s32.totalorder %s8304_s9, %s8300_s16 }
 0x8f3   : > { %p8302_p10 = pnand %p8301_p13, %p9042_p0 }
 0x8f4   : > { %p8307_p6 = por %p8306_p5, %p8305_p3 }
 0x8f5   : > { %p8303_p1 = pneg %p8302_p10 }
 0x8f7   : > { %p8308_p8 = pnand %p8307_p6, %p8303_p1 }
 0x8f9   : > { %8311 = shalt.err (!%p8308_p8)
}
 0x8fa   : > { %s8406_s26 = smov 448   ;;  %s8407_s5 = smov 28  }
 0x8fb   : > { %6912 = dma.vmem_to_hbm [thread:$0]  (%p9042_p0), %s8924_s30, 896, %s8930_s29, %s5827_s10, %s8406_s26, %s8406_s26, %s8407_s5  }
 0x8fc PF: > { %s5878_s6 = sand.u32 1, %s8366_s21   ;;  %p9043_p7 = scmp.ne.s32.totalorder %s9023_s14, 0 }
 0x8fd   : > { %p9044_p2 = scmp.ge.s32.totalorder %s8378_s24, 2  ;;  %s5879_s8 = scalar_lea.sflag [#allocation4], %s5878_s6 }
 0x8ff   : > { %p6952_p4 = pnand %p9044_p2, %p9043_p7 }
 0x901   : > { %p6953_p9 = pneg %p6952_p4 }
 0x903   : > { %8357 = dma.done.wait (%p6953_p9), %s5879_s8, 896  }
 0x904   : > { %8359 = vsyncadd (%p6953_p9), %s5879_s8, 4294966400  ;;  %s5888_s7 = scalar_lea.sflag [#allocation22], %s5878_s6 }
 0x905   : > { %8361 = dma.done.wait (%p6953_p9), %s5888_s7, 512  }
 0x906   : > { %8363 = vsyncadd (%p6953_p9), %s5888_s7, 4294966784  ;;  %p36_p0 = scmp.ge.s32.totalorder %s8615_s15, 4   ;;  %s9045_s21 = smov %s8370_s22 }
 0x907   : > { %s9046_s22 = smov %s8374_s23  ;;  %s9047_s23 = smov %s8627_s13 }
 0x908   : > { %s9048_s24 = smov %s8615_s15  ;;  %38 = sbr.rel (!%p36_p0) target bundleno = 24 (0x18), region = 180 }
 0x90d   :  { %5893 = vsyncpa [#allocation3], 1 }
 0x90e   :  { %5895 = vsyncpa [#allocation3 + $0x1], 1 }
 0x90f   :  { %5896 = vsyncpa [#allocation6], 1 }
 0x910   :  { %5898 = vsyncpa [#allocation6 + $0x1], 1 }
 0x911   :  { %5899 = vsyncpa [#allocation9], 1 }
 0x912   :  { %5900 = vsyncpa [#allocation12], 1 }
 0x913   :  { %5901 = vsyncpa [#allocation15], 1 }
 0x914   :  { %5902 = vsyncpa [#allocation18], 1 }
 0x915   :  { %5903 = vsyncpa [#allocation4], 1 }
 0x916   :  { %5905 = vsyncpa [#allocation4 + $0x1], 1 }
 0x917   :  { %5906 = vsyncpa [#allocation22], 1 }
 0x918   :  { %5908 = vsyncpa [#allocation22 + $0x1], 1 }

</bundles_post_ra>
